<compile_context>
chip_gen: v6e
topology: v6e:2x2x1
jax: 0.10.0
libtpu: 0.0.40
codegen_flags: <defaults>
</compile_context>

<pallas_src>
import functools
import math

import jax
import jax.numpy as jnp
from jax import lax
from jax.experimental import pallas as pl
from jax.experimental.pallas import tpu as pltpu


def _flash_fwd_kernel(q_ref, k_ref, v_ref, o_ref, q_sc, m_sc, l_sc, acc_sc, *,
                      scale):
    kv = pl.program_id(2)

    @pl.when(kv == 0)
    def _():
        # Stage the scaled q tile once; it stays resident across the kv axis.
        q_sc[...] = q_ref[0] * scale
        m_sc[...] = jnp.full_like(m_sc, -jnp.inf)
        l_sc[...] = jnp.zeros_like(l_sc)
        acc_sc[...] = jnp.zeros_like(acc_sc)

    q = q_sc[...]          # (tq, Dp), native dtype (bf16 stays bf16 for MXU)
    k = k_ref[0]           # (tk, Dp), native dtype
    v = v_ref[0]           # (tk, Dp)

    # QK^T: contract on D directly (no explicit transpose), f32 accumulation.
    s = lax.dot_general(q, k, (((1,), (1,)), ((), ())),
                        preferred_element_type=jnp.float32)       # (tq, tk)

    m_prev = m_sc[...]
    m_new = jnp.maximum(m_prev, s.max(axis=-1, keepdims=True))
    alpha = jnp.exp(m_prev - m_new)
    p = jnp.exp(s - m_new)
    # TODO(synk): on v6e/v7x with tiny head dims a bf16 exp path would relieve
    # the EUP; kept f32 here for portability (v5e EUP has no bf16 path).

    l_sc[...] = alpha * l_sc[...] + p.sum(axis=-1, keepdims=True)
    acc_sc[...] = alpha * acc_sc[...] + jnp.dot(
        p.astype(v.dtype), v, preferred_element_type=jnp.float32)
    m_sc[...] = m_new

    @pl.when(kv == pl.num_programs(2) - 1)
    def _():
        o_ref[0] = (acc_sc[...] *
                    pl.reciprocal(l_sc[...], approx=True)).astype(o_ref.dtype)


def _pick_tile(s, target):
    """Largest tile <= target that divides s and is sublane-aligned."""
    target = min(s, target)
    if s % target == 0 and (target % 8 == 0 or target == s):
        return target
    for t in range(target - target % 8, 7, -8):
        if s % t == 0:
            return t
    return s


def attend_forward(q, k, v, *, tq=None, tk=None):
    """Pallas flash-attention forward equivalent to Attend.forward(q, k, v).

    q: (B, H, Sq, D); k, v: (B, H, Sk, D).  Returns (B, H, Sq, D) in q.dtype.
    """
    B, H, Sq, D = q.shape
    Sk = k.shape[2]
    scale = 1.0 / math.sqrt(D)

    # Lane-dense head dim: zero-pad D to a multiple of 128 (exact, see header).
    Dp = D if D % 128 == 0 else ((D + 127) // 128) * 128
    if Dp != D:
        pad = [(0, 0), (0, 0), (0, 0), (0, Dp - D)]
        q = jnp.pad(q, pad)
        k = jnp.pad(k, pad)
        v = jnp.pad(v, pad)

    # Real tile defaults (256/512 targets -> MXU-filling, amortize grid-step
    # overhead) rather than full-sequence blocks.
    tq = _pick_tile(Sq, 256 if tq is None else tq)
    tk = _pick_tile(Sk, 512 if tk is None else tk)

    qf = q.reshape(B * H, Sq, Dp)
    kf = k.reshape(B * H, Sk, Dp)
    vf = v.reshape(B * H, Sk, Dp)

    kernel = functools.partial(_flash_fwd_kernel, scale=scale)

    # VMEM budget: double-buffered q/k/v/out blocks + scratch + s/p headroom.
    itemsize = jnp.dtype(q.dtype).itemsize
    est = 2 * (2 * tq * Dp + 2 * tk * Dp) * itemsize
    est += tq * Dp * itemsize + (tq * Dp + 2 * tq) * 4
    est += 4 * tq * tk * 4
    vmem_limit = int(min(64 * 2**20, max(32 * 2**20, 2 * est)))

    out = pl.pallas_call(
        kernel,
        out_shape=jax.ShapeDtypeStruct((B * H, Sq, Dp), q.dtype),
        grid_spec=pltpu.PrefetchScalarGridSpec(
            num_scalar_prefetch=0,
            grid=(B * H, Sq // tq, Sk // tk),
            in_specs=[
                pl.BlockSpec((1, tq, Dp), lambda b, qi, ki: (b, qi, 0)),
                pl.BlockSpec((1, tk, Dp), lambda b, qi, ki: (b, ki, 0)),
                pl.BlockSpec((1, tk, Dp), lambda b, qi, ki: (b, ki, 0)),
            ],
            out_specs=pl.BlockSpec((1, tq, Dp), lambda b, qi, ki: (b, qi, 0)),
            scratch_shapes=[
                pltpu.VMEM((tq, Dp), q.dtype),      # staged scaled q tile
                pltpu.VMEM((tq, 1), jnp.float32),   # running max
                pltpu.VMEM((tq, 1), jnp.float32),   # running denom
                pltpu.VMEM((tq, Dp), jnp.float32),  # running numerator
            ],
        ),
        compiler_params=pltpu.CompilerParams(
            dimension_semantics=("parallel", "parallel", "arbitrary"),
            vmem_limit_bytes=vmem_limit),
    )(qf, kf, vf)

    out = out.reshape(B, H, Sq, Dp)
    if Dp != D:
        out = out[..., :D]
    return out


def _reference(q, k, v):
    qf, kf, vf = (t.astype(jnp.float32) for t in (q, k, v))
    scale = 1.0 / math.sqrt(q.shape[-1])
    s = jnp.einsum("bhqd,bhkd->bhqk", qf, kf) * scale
    p = jax.nn.softmax(s, axis=-1)
    return jnp.einsum("bhqk,bhkd->bhqd", p, vf)


if __name__ == "__main__":
    keys = jax.random.split(jax.random.PRNGKey(0), 6)

    # Test 1: bf16 inputs, lane-dense head dim (D=128), multi-step kv loop.
    B, H, Sq, Sk, D = 2, 2, 512, 512, 128
    q = jax.random.normal(keys[0], (B, H, Sq, D), jnp.float32).astype(jnp.bfloat16)
    k = jax.random.normal(keys[1], (B, H, Sk, D), jnp.float32).astype(jnp.bfloat16)
    v = jax.random.normal(keys[2], (B, H, Sk, D), jnp.float32).astype(jnp.bfloat16)
    out = jax.block_until_ready(attend_forward(q, k, v, tk=256))
    ref = _reference(q, k, v)
    assert out.shape == (B, H, Sq, D)
    err = float(jnp.max(jnp.abs(out.astype(jnp.float32) - ref)))
    assert err < 3e-2, f"bf16 mismatch vs reference: max abs err {err}"

    # Test 2: f32 inputs, small head dim (D=64 -> padded to 128 internally),
    # cross-attention lengths (Sq != Sk), several kv steps.
    B, H, Sq, Sk, D = 2, 2, 256, 384, 64
    q = jax.random.normal(keys[3], (B, H, Sq, D), jnp.float32)
    k = jax.random.normal(keys[4], (B, H, Sk, D), jnp.float32)
    v = jax.random.normal(keys[5], (B, H, Sk, D), jnp.float32)
    out = jax.block_until_ready(attend_forward(q, k, v, tk=128))
    ref = _reference(q, k, v)
    assert out.shape == (B, H, Sq, D)
    assert jnp.allclose(out, ref, atol=1e-3, rtol=1e-3), "f32 mismatch vs reference"

    print("KERNEL_OK")
</pallas_src>

<mosaic_0001>
module attributes {stable_mosaic.version = 11 : i64} {
  func.func @_flash_fwd_kernel(%arg0: i32, %arg1: i32, %arg2: i32, %arg3: memref<1x256x128xbf16, #tpu.memory_space<vmem>>, %arg4: memref<1x256x128xbf16, #tpu.memory_space<vmem>>, %arg5: memref<1x256x128xbf16, #tpu.memory_space<vmem>>, %arg6: memref<1x256x128xbf16, #tpu.memory_space<vmem>>, %arg7: memref<256x128xbf16, #tpu.memory_space<vmem>>, %arg8: memref<256x1xf32, #tpu.memory_space<vmem>>, %arg9: memref<256x1xf32, #tpu.memory_space<vmem>>, %arg10: memref<256x128xf32, #tpu.memory_space<vmem>>) attributes {dimension_semantics = [#tpu.dimension_semantics<parallel>, #tpu.dimension_semantics<parallel>, #tpu.dimension_semantics<arbitrary>], iteration_bounds = array<i64: 4, 2, 2>, scalar_prefetch = 0 : i64, scratch_operands = 4 : i64, tpu.core_type = #tpu.core_type<tc>, window_params = [{transform_indices = @transform_0, window_bounds = array<i64: 1, 256, 128>}, {transform_indices = @transform_1, window_bounds = array<i64: 1, 256, 128>}, {transform_indices = @transform_2, window_bounds = array<i64: 1, 256, 128>}, {transform_indices = @transform_3, window_bounds = array<i64: 1, 256, 128>}]} {
    %c0_i32 = arith.constant 0 : i32
    %0 = arith.cmpi eq, %arg2, %c0_i32 : i32
    %1 = arith.extui %0 : i1 to i32
    %c0_i32_0 = arith.constant 0 : i32
    %2 = arith.cmpi ne, %1, %c0_i32_0 : i32
    scf.if %2 {
      %c0_24 = arith.constant 0 : index
      %c0_25 = arith.constant 0 : index
      %c0_26 = arith.constant 0 : index
      %35 = vector.load %arg3[%c0_24, %c0_25, %c0_26] : memref<1x256x128xbf16, #tpu.memory_space<vmem>>, vector<1x256x128xbf16>
      %36 = vector.shape_cast %35 : vector<1x256x128xbf16> to vector<256x128xbf16>
      %cst_27 = arith.constant 8.837890e-02 : bf16
      %37 = vector.broadcast %cst_27 : bf16 to vector<256x128xbf16>
      %38 = arith.mulf %36, %37 : vector<256x128xbf16>
      %c0_28 = arith.constant 0 : index
      %c0_29 = arith.constant 0 : index
      %39 = vector.load %arg7[%c0_28, %c0_29] : memref<256x128xbf16, #tpu.memory_space<vmem>>, vector<256x128xbf16>
      tpu.vector_store %arg7[%c0_28, %c0_29], %38 {strides = array<i32>} : memref<256x128xbf16, #tpu.memory_space<vmem>>, vector<256x128xbf16>,
      %cst_30 = arith.constant 0xFF800000 : f32
      %40 = vector.broadcast %cst_30 : f32 to vector<256x1xf32>
      %c0_31 = arith.constant 0 : index
      %c0_32 = arith.constant 0 : index
      %41 = vector.load %arg8[%c0_31, %c0_32] : memref<256x1xf32, #tpu.memory_space<vmem>>, vector<256x1xf32>
      tpu.vector_store %arg8[%c0_31, %c0_32], %40 {strides = array<i32>} : memref<256x1xf32, #tpu.memory_space<vmem>>, vector<256x1xf32>,
      %cst_33 = arith.constant 0.000000e+00 : f32
      %42 = vector.broadcast %cst_33 : f32 to vector<256x1xf32>
      %c0_34 = arith.constant 0 : index
      %c0_35 = arith.constant 0 : index
      %43 = vector.load %arg9[%c0_34, %c0_35] : memref<256x1xf32, #tpu.memory_space<vmem>>, vector<256x1xf32>
      tpu.vector_store %arg9[%c0_34, %c0_35], %42 {strides = array<i32>} : memref<256x1xf32, #tpu.memory_space<vmem>>, vector<256x1xf32>,
      %cst_36 = arith.constant 0.000000e+00 : f32
      %44 = vector.broadcast %cst_36 : f32 to vector<256x128xf32>
      %c0_37 = arith.constant 0 : index
      %c0_38 = arith.constant 0 : index
      %45 = vector.load %arg10[%c0_37, %c0_38] : memref<256x128xf32, #tpu.memory_space<vmem>>, vector<256x128xf32>
      tpu.vector_store %arg10[%c0_37, %c0_38], %44 {strides = array<i32>} : memref<256x128xf32, #tpu.memory_space<vmem>>, vector<256x128xf32>,
    } else {
    }
    %c0 = arith.constant 0 : index
    %c0_1 = arith.constant 0 : index
    %3 = vector.load %arg7[%c0, %c0_1] : memref<256x128xbf16, #tpu.memory_space<vmem>>, vector<256x128xbf16>
    %c0_2 = arith.constant 0 : index
    %c0_3 = arith.constant 0 : index
    %c0_4 = arith.constant 0 : index
    %4 = vector.load %arg4[%c0_2, %c0_3, %c0_4] : memref<1x256x128xbf16, #tpu.memory_space<vmem>>, vector<1x256x128xbf16>
    %5 = vector.shape_cast %4 : vector<1x256x128xbf16> to vector<256x128xbf16>
    %c0_5 = arith.constant 0 : index
    %c0_6 = arith.constant 0 : index
    %c0_7 = arith.constant 0 : index
    %6 = vector.load %arg5[%c0_5, %c0_6, %c0_7] : memref<1x256x128xbf16, #tpu.memory_space<vmem>>, vector<1x256x128xbf16>
    %7 = vector.shape_cast %6 : vector<1x256x128xbf16> to vector<256x128xbf16>
    %cst = arith.constant dense<0.000000e+00> : vector<256x256xf32>
    %8 = tpu.matmul %3, %5, %cst {dimension_numbers = #tpu.dot_dimension_numbers<[1], [1], [0], [0], [0, 0, 1, 0], [], []>} : vector<256x128xbf16>, vector<256x128xbf16>, vector<256x256xf32> -> vector<256x256xf32>
    %c0_8 = arith.constant 0 : index
    %c0_9 = arith.constant 0 : index
    %9 = vector.load %arg8[%c0_8, %c0_9] : memref<256x1xf32, #tpu.memory_space<vmem>>, vector<256x1xf32>
    %cst_10 = arith.constant dense<0xFF800000> : vector<256xf32>
    %10 = vector.multi_reduction <maximumf>, %8, %cst_10 [1] : vector<256x256xf32> to vector<256xf32>
    %11 = vector.shape_cast %10 : vector<256xf32> to vector<256x1xf32>
    %12 = arith.maximumf %9, %11 : vector<256x1xf32>
    %13 = arith.subf %9, %12 : vector<256x1xf32>
    %14 = math.exp %13 : vector<256x1xf32>
    %15 = vector.broadcast %12 : vector<256x1xf32> to vector<256x256xf32>
    %16 = arith.subf %8, %15 : vector<256x256xf32>
    %17 = math.exp %16 : vector<256x256xf32>
    %c0_11 = arith.constant 0 : index
    %c0_12 = arith.constant 0 : index
    %18 = vector.load %arg9[%c0_11, %c0_12] : memref<256x1xf32, #tpu.memory_space<vmem>>, vector<256x1xf32>
    %19 = arith.mulf %14, %18 : vector<256x1xf32>
    %cst_13 = arith.constant dense<0.000000e+00> : vector<256xf32>
    %20 = vector.multi_reduction <add>, %17, %cst_13 [1] : vector<256x256xf32> to vector<256xf32>
    %21 = vector.shape_cast %20 : vector<256xf32> to vector<256x1xf32>
    %22 = arith.addf %19, %21 : vector<256x1xf32>
    %c0_14 = arith.constant 0 : index
    %c0_15 = arith.constant 0 : index
    %23 = vector.load %arg9[%c0_14, %c0_15] : memref<256x1xf32, #tpu.memory_space<vmem>>, vector<256x1xf32>
    tpu.vector_store %arg9[%c0_14, %c0_15], %22 {strides = array<i32>} : memref<256x1xf32, #tpu.memory_space<vmem>>, vector<256x1xf32>,
    %c0_16 = arith.constant 0 : index
    %c0_17 = arith.constant 0 : index
    %24 = vector.load %arg10[%c0_16, %c0_17] : memref<256x128xf32, #tpu.memory_space<vmem>>, vector<256x128xf32>
    %25 = vector.broadcast %14 : vector<256x1xf32> to vector<256x128xf32>
    %26 = arith.mulf %25, %24 : vector<256x128xf32>
    %27 = arith.truncf %17 : vector<256x256xf32> to vector<256x256xbf16>
    %cst_18 = arith.constant dense<0.000000e+00> : vector<256x128xf32>
    %28 = tpu.matmul %27, %7, %cst_18 {dimension_numbers = #tpu.dot_dimension_numbers<[1], [0], [0], [1], [0, 0, 1, 1], [], []>} : vector<256x256xbf16>, vector<256x128xbf16>, vector<256x128xf32> -> vector<256x128xf32>
    %29 = arith.addf %26, %28 : vector<256x128xf32>
    %c0_19 = arith.constant 0 : index
    %c0_20 = arith.constant 0 : index
    %30 = vector.load %arg10[%c0_19, %c0_20] : memref<256x128xf32, #tpu.memory_space<vmem>>, vector<256x128xf32>
    tpu.vector_store %arg10[%c0_19, %c0_20], %29 {strides = array<i32>} : memref<256x128xf32, #tpu.memory_space<vmem>>, vector<256x128xf32>,
    %c0_21 = arith.constant 0 : index
    %c0_22 = arith.constant 0 : index
    %31 = vector.load %arg8[%c0_21, %c0_22] : memref<256x1xf32, #tpu.memory_space<vmem>>, vector<256x1xf32>
    tpu.vector_store %arg8[%c0_21, %c0_22], %12 {strides = array<i32>} : memref<256x1xf32, #tpu.memory_space<vmem>>, vector<256x1xf32>,
    %c1_i32 = arith.constant 1 : i32
    %32 = arith.cmpi eq, %arg2, %c1_i32 : i32
    %33 = arith.extui %32 : i1 to i32
    %c0_i32_23 = arith.constant 0 : i32
    %34 = arith.cmpi ne, %33, %c0_i32_23 : i32
    scf.if %34 {
      %c0_24 = arith.constant 0 : index
      %c0_25 = arith.constant 0 : index
      %35 = vector.load %arg10[%c0_24, %c0_25] : memref<256x128xf32, #tpu.memory_space<vmem>>, vector<256x128xf32>
      %c0_26 = arith.constant 0 : index
      %c0_27 = arith.constant 0 : index
      %36 = vector.load %arg9[%c0_26, %c0_27] : memref<256x1xf32, #tpu.memory_space<vmem>>, vector<256x1xf32>
      %37 = tpu.reciprocal %36 {approx = true} : vector<256x1xf32> -> vector<256x1xf32>
      %38 = vector.broadcast %37 : vector<256x1xf32> to vector<256x128xf32>
      %39 = arith.mulf %35, %38 : vector<256x128xf32>
      %40 = arith.truncf %39 : vector<256x128xf32> to vector<256x128xbf16>
      %c0_28 = arith.constant 0 : index
      %c0_29 = arith.constant 0 : index
      %c0_30 = arith.constant 0 : index
      %41 = vector.load %arg6[%c0_28, %c0_29, %c0_30] : memref<1x256x128xbf16, #tpu.memory_space<vmem>>, vector<1x256x128xbf16>
      %42 = vector.shape_cast %41 : vector<1x256x128xbf16> to vector<256x128xbf16>
      %43 = vector.shape_cast %40 : vector<256x128xbf16> to vector<1x256x128xbf16>
      tpu.vector_store %arg6[%c0_28, %c0_29, %c0_30], %43 {strides = array<i32>} : memref<1x256x128xbf16, #tpu.memory_space<vmem>>, vector<1x256x128xbf16>,
    } else {
    }
    return
  }
  func.func @transform_0(%arg0: i32, %arg1: i32, %arg2: i32) -> (i32, i32, i32) {
    %c0_i32 = arith.constant 0 : i32
    %c0_i32_0 = arith.constant 0 : i32
    return %arg0, %arg1, %c0_i32 : i32, i32, i32
  }
  func.func @transform_1(%arg0: i32, %arg1: i32, %arg2: i32) -> (i32, i32, i32) {
    %c0_i32 = arith.constant 0 : i32
    %c0_i32_0 = arith.constant 0 : i32
    return %arg0, %arg2, %c0_i32 : i32, i32, i32
  }
  func.func @transform_2(%arg0: i32, %arg1: i32, %arg2: i32) -> (i32, i32, i32) {
    %c0_i32 = arith.constant 0 : i32
    %c0_i32_0 = arith.constant 0 : i32
    return %arg0, %arg2, %c0_i32 : i32, i32, i32
  }
  func.func @transform_3(%arg0: i32, %arg1: i32, %arg2: i32) -> (i32, i32, i32) {
    %c0_i32 = arith.constant 0 : i32
    %c0_i32_0 = arith.constant 0 : i32
    return %arg0, %arg1, %c0_i32 : i32, i32, i32
  }
}

</mosaic_0001>

<bundles_post_ra>
// kernel: tpu_custom_call.1
= control target key start
LH: loop header
LB: loop body
LE: loop exit
PB: predicated region body
PF: predicated region fallthrough
CT: control target
= control target key end

     0   :  { %s5821_s0 = inlined_call_operand.hbm [shape: bf16[4,512,128], index: 0, kind: input, shape index: {}]   ;;  %s5822_s1 = inlined_call_operand.hbm [shape: bf16[4,512,128], index: 1, kind: input, shape index: {}]   ;;  %s5823_s2 = inlined_call_operand.hbm [shape: bf16[4,512,128], index: 2, kind: input, shape index: {}]   ;;  %s5824_s3 = inlined_call_operand.hbm [shape: bf16[4,512,128], index: 3, kind: output, shape index: {}]  }
   0x1   :  { %5942 = sst [smem:[#allocation102_spill]] %s5822_s1 }
   0x2   :  { %5943 = sst [smem:[#allocation103_spill]] %s5823_s2 }
   0x3   :  { %5944 = sst [smem:[#allocation104_spill]] %s5824_s3 }
   0x4   :  { %8 = vsyncpa [#allocation7], 0 }
   0x5   :  { %10 = vsyncpa [#allocation7 + $0x1], 0 }
   0x6   :  { %11 = vsyncpa [#allocation10], 0 }
   0x7   :  { %13 = vsyncpa [#allocation10 + $0x1], 0 }
   0x8   :  { %14 = vsyncpa [#allocation8], 0 }
   0x9   :  { %16 = vsyncpa [#allocation8 + $0x1], 0  ;;  %s4247_s12 = smov 0   ;;  %s4249_s13 = smov 0  }
   0xa   :  { %s4251_s14 = smov 0   ;;  %s4253_s15 = smov 0  }
   0xb   :  { %s4255_s16 = smov 0   ;;  %s4257_s17 = smov 0  }
   0xc   :  { %s4259_s18 = smov 0   ;;  %s4261_s19 = smov 0  }
   0xd   :  { %s4263_s20 = smov 0   ;;  %s4265_s21 = smov 0  }
   0xe   :  { %s4267_s22 = smov 0   ;;  %s4269_s23 = smov 0  }
   0xf   :  { %s4271_s24 = smov 0  }
  0x10 LB: > { %5945 = sst [smem:[#allocation16_spill]] %s4169_s13  ;;  %s4311_s25 = sadd.s32 4294967295, %s4213_s24   ;;  %s4213_s24 = sphi %s4271_s24, %s22_s24   ;;  %s4209_s23 = sphi %s4269_s23, %s6227_s23   ;;  %s4205_s22 = sphi %s4267_s22, %s6218_s22   ;;  %s4201_s21 = sphi %s4265_s21, %s6226_s21   ;;  %s4197_s20 = sphi %s4263_s20, %s6225_s20   ;;  %s4193_s19 = sphi %s4261_s19, %s6217_s19   ;;  %s4189_s18 = sphi %s4259_s18, %s6224_s18   ;;  %s4185_s17 = sphi %s4257_s17, %s6223_s17   ;;  %s4181_s16 = sphi %s4255_s16, %s6222_s16   ;;  %s4177_s15 = sphi %s4253_s15, %s6215_s15   ;;  %s4173_s14 = sphi %s4251_s14, %s6221_s14   ;;  %s4169_s13 = sphi %s4249_s13, %s6220_s13   ;;  %s4165_s12 = sphi %s4247_s12, %s6214_s12  }
  0x11   : > { %5946 = sst [smem:[#allocation17_spill]] %s4177_s15  ;;  %s34_s26 = sadd.s32 1, %s4201_s21 }
  0x12   : > { %5947 = sst [smem:[#allocation18_spill]] %s4181_s16  ;;  %p4314_p0 = scmp.ge.s32.totalorder %s34_s26, 2 }
  0x13   : > { %5948 = sst [smem:[#allocation19_spill]] %s4189_s18  ;;  %p58_p1 = scmp.eq.s32.totalorder %s4213_s24, 0 }
  0x14   : > { %5949 = sst [smem:[#allocation20_spill]] %s4193_s19  ;;  %p64_p2 = scmp.eq.s32.totalorder %s4311_s25, 0 }
  0x15   : > { %5950 = sst [smem:[#allocation21_spill]] %s4197_s20  ;;  %s6229_s26 = smov (%p4314_p0, %s34_s26), 0 }
  0x16   : > { %5951 = sst [smem:[#allocation22_spill]] %s4205_s22  ;;  %p85_p3 = scmp.ne.s32.totalorder %s4173_s14, %s4169_s13 }
  0x17   : > { %5952 = sst [smem:[#allocation23_spill]] %s4311_s25  ;;  %p91_p4 = scmp.ne.s32.totalorder %s4169_s13, %s4165_s12 }
  0x18   : > { %p4331_p5 = por %p85_p3, %p58_p1  ;;  %p3567_p7 = scmp.lt.s32.totalorder %s4213_s24, 16 }
  0x19   : > { %p4337_p6 = por %p91_p4, %p64_p2  ;;  %s5828_s5 = sshll.u32 %s4209_s23, 6 }
  0x1a   : > { %s194_s6 = sand.u32 1, %s4213_s24   ;;  %s196_s7 = sand.u32 1, %s4173_s14  }
  0x1b   : > { %s5955_s4 = scalar_select %p4337_p6, 1, 0 }
  0x1c   : > { %s3046_s8 = sshll.u32 %s196_s7, 7  ;;  %s3047_s9 = sshll.u32 %s4201_s21, 5 }
  0x1d   : > { %5956 = sst [smem:[#allocation24_spill]] %s5955_s4  ;;  %s204_s10 = sadd.s32 %s3047_s9, %s5828_s5 }
  0x1e   : > { %s3049_s11 = sshll.u32 %s204_s10, 6  ;;  %s198_s12 = scalar_lea.vmem [#allocation9], %s3046_s8 }
  0x1f   : > { %s207_s29 = sshll.u32 %s198_s12, 4  ;;  %s5957_s1 = sld [smem:[#allocation102_spill]]  ;;  %s208_s29 = int_to_ptr.vmem [resolvable:$true] %s207_s29 }
  0x20   : > { %p4355_p8 = pnand %p3567_p7, %p4331_p5  ;;  %s5959_s2 = sld [smem:[#allocation103_spill]] }
  0x21   : > { %s221_s10 = scalar_lea.vmem [#allocation11], %s3046_s8  ;;  %s4366_s5 = scalar_lea.sflag [#allocation10], %s194_s6 }
  0x22   : > { %s230_s12 = sshll.u32 %s221_s10, 4  ;;  %p5829_p9 = pneg %p4355_p8  ;;  %s4385_s12 = int_to_ptr.vmem [resolvable:$true] %s230_s12 }
  0x23   : > { %s4002_s3 = scalar_lea.vmem %s208_s29, 2048  ;;  %s4215_s28 = smov [#allocation9]  }
  0x24   : > { %p4003_p10 = scmp.ne.s32.totalorder %s208_s29, %s4002_s3  ;;  %s4007_s30 = sshll.u32 %s4215_s28, 4  ;;  %s4008_s30 = int_to_ptr.vmem [resolvable:$false] %s4007_s30 }
  0x25   : > { %s206_s20 = scalar_lea.hbm %s5957_s1, %s3049_s11  ;;  %s4009_s7 = scalar_lea.vmem %s4008_s30, 4096 }
  0x26   : > { %s4364_s9 = scalar_lea.hbm %s5959_s2, %s3049_s11  ;;  %p4005_p11 = pnand %p4003_p10, %p5829_p9 }
  0x27   : > { %p4010_p13 = scmp.lt.s32.totalorder %s208_s29, %s4008_s30  ;;  %p4011_p3 = scmp.lt.s32.totalorder %s4009_s7, %s4002_s3 }
  0x28   : > { %p4006_p12 = pneg %p4005_p11 }
  0x29   : > { %p4012_p4 = por %p4011_p3, %p4010_p13 }
  0x2b   : > { %p4013_p5 = pnand %p4012_p4, %p4006_p12 }
  0x2d   : > { %4016 = shalt.err (!%p4013_p5)
}
  0x2e   : > { %s5830_s18 = smov 64   ;;  %s5832_s4 = smov 4  }
  0x2f   : > { %3559 = dma.hbm_to_vmem [thread:$0]  (!%p4355_p8), %s206_s20, 2048, %s208_s29, %s4366_s5, %s5830_s18, %s5830_s18, %s5832_s4  }
  0x30   : > { %p3054_p10 = scmp.ge.s32.totalorder %s4213_s24, 1  ;;  %p238_p11 = scmp.lt.s32.totalorder %s4213_s24, 17 }
  0x31   : > { %s3039_s8 = sadd.s32 4294967294, %s4213_s24   ;;  %s37_s11 = sadd.s32 1, %s4205_s22 }
  0x32   : > { %p4381_p12 = pnand %p3054_p10, %p238_p11  ;;  %s6231_s11 = smov (!%p4314_p0, %s37_s11), %s4205_s22 }
  0x33   : > { %p57_p13 = scmp.ne.s32.totalorder %s4185_s17, %s4181_s16  ;;  %p63_p3 = scmp.ne.s32.totalorder %s4181_s16, %s4177_s15 }
  0x34   : > { %s5960_s6 = scalar_select %p4381_p12, 1, 0 }
  0x35   : > { %p39_p4 = scmp.ge.s32.totalorder %s6231_s11, 2  ;;  %p145_p5 = scmp.eq.s32.totalorder %s4311_s25, 15 }
  0x36   : > { %5961 = sst [smem:[#allocation25_spill]] %s5960_s6  ;;  %s50_s20 = sadd.s32 1, %s4185_s17 }
  0x37   : > { %p4403_p10 = por %p64_p2, %p63_p3  ;;  %s6233_s11 = smov (%p39_p4, %s6231_s11), 0 }
  0x38   : > { %5964 = sst [smem:[#allocation27_spill]] %s6233_s11  ;;  %s5965_s27 = sadd.s32 1, %s4209_s23 }
  0x39   : > { %s5962_s29 = scalar_select %p4403_p10, 1, 0 }
  0x3a   : > { %s6235_s27 = smov (!%p39_p4, %s5965_s27), %s4209_s23  ;;  %p4414_p0 = por %p58_p1, %p57_p13 }
  0x3b   : > { %5963 = sst [smem:[#allocation26_spill]] %s5962_s29  ;;  %p4418_p11 = por %p145_p5, %p57_p13 }
  0x3c   : > { %p43_p2 = scmp.ge.s32.totalorder %s6235_s27, 4  ;;  %p151_p9 = scmp.eq.s32.totalorder %s3039_s8, 15 }
  0x3d   : > { %s5967_s10 = scalar_select %p4418_p11, 1, 0 }
  0x3e   : > { %s46_s3 = ssub.s32 %s4205_s22, %s6233_s11  ;;  %s5847_s28 = sand.u32 1, %s4185_s17  }
  0x3f   : > { %5968 = sst [smem:[#allocation28_spill]] %s5967_s10  ;;  %s6237_s27 = smov (%p43_p2, %s6235_s27), 0 }
  0x40   : > { %5969 = sst [smem:[#allocation29_spill]] %s6237_s27  ;;  %p4430_p4 = por %p151_p9, %p63_p3 }
  0x41   : > { %s3043_s18 = sshll.u32 %s4205_s22, 5  ;;  %s45_s4 = ssub.s32 %s4209_s23, %s6237_s27 }
  0x42   : > { %s5970_s30 = scalar_select %p4430_p4, 1, 0 }
  0x43   : > { %s3042_s1 = sshll.u32 %s5847_s28, 7  ;;  %s47_s8 = sor.u32 %s46_s3, %s45_s4 }
  0x44   : > { %5971 = sst [smem:[#allocation30_spill]] %s5970_s30  ;;  %s5972_s2 = ssub.s32 %s4201_s21, %s6229_s26 }
  0x45   : > { %s75_s11 = sor.u32 %s5972_s2, %s45_s4  ;;  %p48_p1 = scmp.eq.s32.totalorder %s47_s8, 0 }
  0x46   : > { %p76_p13 = scmp.eq.s32.totalorder %s75_s11, 0  ;;  %s5973_s15 = sshll.u32 %s4209_s23, 6 }
  0x47   : > { %s181_s10 = sadd.s32 %s5973_s15, %s3043_s18  ;;  %s5974_s25 = sadd.s32 1, %s4173_s14 }
  0x48   : > { %s4445_s13 = scalar_select %p48_p1, %s4185_s17, %s50_s20  }
  0x49   : > { %s4450_s30 = scalar_select %p76_p13, %s4173_s14, %s5974_s25  }
  0x4a   : > { %s3045_s22 = sshll.u32 %s181_s10, 6  ;;  %s175_s29 = scalar_lea.vmem [#allocation6], %s3042_s1 }
  0x4b   : > { %s184_s27 = sshll.u32 %s175_s29, 4  ;;  %s4455_s28 = scalar_lea.hbm %s5821_s0, %s3045_s22  ;;  %s4457_s27 = int_to_ptr.vmem [resolvable:$true] %s184_s27 }
  0x4c   : > { %p4463_p9 = pnand %p3567_p7, %p4414_p0  ;;  %s4030_s15 = scalar_lea.vmem %s4385_s12, 2048 }
  0x4d   : > { %p4031_p3 = scmp.ne.s32.totalorder %s4385_s12, %s4030_s15  ;;  %p5976_p5 = pneg %p4355_p8 }
  0x4e   : > { %s4218_s1 = smov [#allocation11]  }
  0x4f   : > { %p4033_p2 = pnand %p4031_p3, %p5976_p5  ;;  %s4035_s25 = sshll.u32 %s4218_s1, 4  ;;  %s4036_s25 = int_to_ptr.vmem [resolvable:$false] %s4035_s25 }
  0x50   : > { %s4037_s16 = scalar_lea.vmem %s4036_s25, 4096  ;;  %p4038_p13 = scmp.lt.s32.totalorder %s4385_s12, %s4036_s25 }
  0x51   : > { %p4034_p1 = pneg %p4033_p2  ;;  %p4039_p4 = scmp.lt.s32.totalorder %s4037_s16, %s4030_s15 }
  0x53   : > { %p4040_p11 = por %p4039_p4, %p4038_p13 }
  0x55   : > { %p4041_p6 = pnand %p4040_p11, %p4034_p1 }
  0x57   : > { %4044 = shalt.err (!%p4041_p6)
}
  0x58   : > { %s5977_s22 = smov 4   ;;  %s5978_s18 = smov 64  }
  0x59   : > { %3562 = dma.hbm_to_vmem [thread:$0]  (!%p4355_p8), %s4364_s9, 2048, %s4385_s12, %s4366_s5, %s5978_s18, %s5978_s18, %s5977_s22  }
  0x5a   : > { %s5979_s4 = sand.u32 1, %s4185_s17   ;;  %p4047_p7 = pneg %p4463_p9 }
  0x5b   : > { %s172_s6 = scalar_lea.sflag [#allocation7], %s5979_s4  ;;  %s4058_s11 = scalar_lea.vmem %s4457_s27, 2048 }
  0x5c   : > { %p4059_p6 = scmp.ne.s32.totalorder %s4457_s27, %s4058_s11  ;;  %s4219_s19 = smov [#allocation6]  }
  0x5d   : > { %s4063_s20 = sshll.u32 %s4219_s19, 4  ;;  %s4064_s20 = int_to_ptr.vmem [resolvable:$false] %s4063_s20 }
  0x5e   : > { %p4061_p0 = pnand %p4059_p6, %p4047_p7  ;;  %s4065_s29 = scalar_lea.vmem %s4064_s20, 4096 }
  0x5f   : > { %p4066_p4 = scmp.lt.s32.totalorder %s4457_s27, %s4064_s20  ;;  %p4067_p3 = scmp.lt.s32.totalorder %s4065_s29, %s4058_s11 }
  0x60   : > { %p4062_p11 = pneg %p4061_p0 }
  0x61   : > { %p4068_p5 = por %p4067_p3, %p4066_p4 }
  0x63   : > { %p4069_p2 = pnand %p4068_p5, %p4062_p11 }
  0x65   : > { %4072 = shalt.err (!%p4069_p2)
}
  0x66   : > { %3556 = dma.hbm_to_vmem [thread:$0]  (!%p4463_p9), %s4455_s28, 2048, %s4457_s27, %s172_s6, %s5978_s18, %s5978_s18, %s5977_s22  }
  0x67   : > { %242 = sbr.rel (%p4381_p12) target bundleno = 1419 (0x58b), region = 32 }
  0x6c   : > { %s5981_s9 = sld [smem:[#allocation18_spill]] }
  0x72   : > { %s4498_s7 = sand.u32 1, %s5981_s9  }
  0x73   : > { %s3055_s10 = sshll.u32 %s4498_s7, 7  ;;  %s245_s3 = scalar_lea.sflag [#allocation7], %s4498_s7 }
  0x74   : > { %s4502_s8 = scalar_lea.vmem [#allocation6], %s3055_s10 }
  0x75   : > { %4152 = dma.done.wait (%p4403_p10), %s245_s3, 2048  }
  0x76   : > { %4154 = vsyncadd (%p4403_p10), %s245_s3, 4294965248  ;;  %s5983_s2 = sld [smem:[#allocation23_spill]] }
  0x77   : > { %s5984_s27 = sld [smem:[#allocation16_spill]] }
  0x78   : > { %s5985_s28 = sld [smem:[#allocation24_spill]] }
  0x7c   : > { %s253_s15 = sand.u32 1, %s5983_s2  }
  0x7d   : > { %s255_s1 = sand.u32 1, %s5984_s27   ;;  %s254_s16 = scalar_lea.sflag [#allocation10], %s253_s15 }
  0x7e   : > { %s3056_s25 = sshll.u32 %s255_s1, 7  ;;  %p5986_p8 = scmp.ne.s32.totalorder %s5985_s28, 0 }
  0x7f   : > { %s4510_s22 = scalar_lea.vmem [#allocation9], %s3056_s25 }
  0x80   : > { %4156 = dma.done.wait (%p5986_p8), %s254_s16, 4096  }
  0x81   : > { %4158 = vsyncadd (%p5986_p8), %s254_s16, 4294963200  ;;  %s4516_s18 = scalar_lea.vmem [#allocation11], %s3056_s25  ;;  %s4518_s4 = scalar_lea.vmem [#allocation12], %s3055_s10 }
  0x82   : > { %s5987_s6 = sld [smem:[#allocation19_spill]] }
  0x88   : > { %p3059_p12 = scmp.ne.s32.totalorder %s5987_s6, 0 }
  0x8a   : > { %308 = sbr.rel (%p3059_p12) target bundleno = 213 (0xd5), region = 48 }
  0x8f   : > { %v309_v0 = vld [vmem:[%s4502_s8] sm:$0xf]  ;;  %v310_v1 = vld [vmem:[%s4502_s8 + $0x4] sm:$0xf]  ;;  %v311_v2 = vld [vmem:[%s4502_s8 + $0x8] sm:$0xf] }
  0x90   : > { %v341_v3 = vmul.bf16 1035287989, %v309_v0  ;;  %v342_v4 = vmul.bf16 1035287989, %v310_v1  ;;  %v312_v5 = vld [vmem:[%s4502_s8 + $0xc] sm:$0xf] }
  0x91   : > { %v343_v6 = vmul.bf16 1035287989, %v311_v2  ;;  %v344_v7 = vmul.bf16 1035287989, %v312_v5  ;;  %v313_v8 = vld [vmem:[%s4502_s8 + $0x10] sm:$0xf] }
  0x92   : > { %v3339_v9 = vcombine.low %v341_v3, %v342_v4  ;;  %v314_v10 = vld [vmem:[%s4502_s8 + $0x14] sm:$0xf]  ;;  %v345_v11 = vmul.bf16 1035287989, %v313_v8  ;;  %v315_v12 = vld [vmem:[%s4502_s8 + $0x18] sm:$0xf] }
  0x93   : > { %v3340_v13 = vcombine.low %v343_v6, %v344_v7  ;;  %v346_v14 = vmul.bf16 1035287989, %v314_v10  ;;  %v316_v15 = vld [vmem:[%s4502_s8 + $0x1c] sm:$0xf]  ;;  %v347_v16 = vmul.bf16 1035287989, %v315_v12 }
  0x94   : > { %3183 = vst [vmem:[#allocation2] sm:$0xff] %v3339_v9   ;;  %v348_v17 = vmul.bf16 1035287989, %v316_v15  ;;  %v317_v18 = vld [vmem:[%s4502_s8 + $0x20] sm:$0xf]  ;;  %vm405_vm0 = vcmask 7168  }
  0x95   : > { %v318_v19 = vld [vmem:[%s4502_s8 + $0x24] sm:$0xf]  ;;  %3341 = vst [vmem:[#allocation2 + $0x8] sm:$0xff] %v3340_v13   ;;  %v3342_v20 = vcombine.low %v345_v11, %v346_v14  ;;  %v349_v21 = vmul.bf16 1035287989, %v317_v18  ;;  %v4220_v15 = vmov -inf  }
  0x96   : > { %v350_v22 = vmul.bf16 1035287989, %v318_v19  ;;  %v319_v23 = vld [vmem:[%s4502_s8 + $0x28] sm:$0xf]  ;;  %v3344_v24 = vcombine.low %v347_v16, %v348_v17  ;;  %v320_v25 = vld [vmem:[%s4502_s8 + $0x2c] sm:$0xf] }
  0x97   : > { %v351_v26 = vmul.bf16 1035287989, %v319_v23  ;;  %v321_v27 = vld [vmem:[%s4502_s8 + $0x30] sm:$0xf]  ;;  %3343 = vst [vmem:[#allocation2 + $0x10] sm:$0xff] %v3342_v20   ;;  %406 = vst.msk [vmem:[#allocation3] sm:$0xff] %vm405_vm0, %v4220_v15 }
  0x98   : > { %v3346_v28 = vcombine.low %v349_v21, %v350_v22  ;;  %v352_v29 = vmul.bf16 1035287989, %v320_v25  ;;  %v322_v30 = vld [vmem:[%s4502_s8 + $0x34] sm:$0xf]  ;;  %v353_v31 = vmul.bf16 1035287989, %v321_v27 }
  0x99   : > { %3345 = vst [vmem:[#allocation2 + $0x18] sm:$0xff] %v3344_v24   ;;  %v354_v32 = vmul.bf16 1035287989, %v322_v30  ;;  %v323_v33 = vld [vmem:[%s4502_s8 + $0x38] sm:$0xf]  ;;  %407 = vst.msk [vmem:[#allocation3 + $0x8] sm:$0xff] %vm405_vm0, %v4220_v15 }
  0x9a   : > { %v324_v34 = vld [vmem:[%s4502_s8 + $0x3c] sm:$0xf]  ;;  %3347 = vst [vmem:[#allocation2 + $0x20] sm:$0xff] %v3346_v28   ;;  %v3348_v35 = vcombine.low %v351_v26, %v352_v29  ;;  %v355_v36 = vmul.bf16 1035287989, %v323_v33  ;;  %408 = vst.msk [vmem:[#allocation3 + $0x10] sm:$0xff] %vm405_vm0, %v4220_v15 }
  0x9b   : > { %v356_v37 = vmul.bf16 1035287989, %v324_v34  ;;  %v325_v38 = vld [vmem:[%s4502_s8 + $0x40] sm:$0xf]  ;;  %v3350_v39 = vcombine.low %v353_v31, %v354_v32  ;;  %v326_v40 = vld [vmem:[%s4502_s8 + $0x44] sm:$0xf] }
  0x9c   : > { %v357_v41 = vmul.bf16 1035287989, %v325_v38  ;;  %v327_v42 = vld [vmem:[%s4502_s8 + $0x48] sm:$0xf]  ;;  %3349 = vst [vmem:[#allocation2 + $0x28] sm:$0xff] %v3348_v35   ;;  %409 = vst.msk [vmem:[#allocation3 + $0x18] sm:$0xff] %vm405_vm0, %v4220_v15 }
  0x9d   : > { %v3352_v43 = vcombine.low %v355_v36, %v356_v37  ;;  %v358_v44 = vmul.bf16 1035287989, %v326_v40  ;;  %v328_v45 = vld [vmem:[%s4502_s8 + $0x4c] sm:$0xf]  ;;  %v359_v46 = vmul.bf16 1035287989, %v327_v42 }
  0x9e   : > { %3351 = vst [vmem:[#allocation2 + $0x30] sm:$0xff] %v3350_v39   ;;  %v360_v47 = vmul.bf16 1035287989, %v328_v45  ;;  %v329_v48 = vld [vmem:[%s4502_s8 + $0x50] sm:$0xf]  ;;  %410 = vst.msk [vmem:[#allocation3 + $0x20] sm:$0xff] %vm405_vm0, %v4220_v15 }
  0x9f   : > { %v330_v49 = vld [vmem:[%s4502_s8 + $0x54] sm:$0xf]  ;;  %3353 = vst [vmem:[#allocation2 + $0x38] sm:$0xff] %v3352_v43   ;;  %v3354_v50 = vcombine.low %v357_v41, %v358_v44  ;;  %v361_v51 = vmul.bf16 1035287989, %v329_v48  ;;  %411 = vst.msk [vmem:[#allocation3 + $0x28] sm:$0xff] %vm405_vm0, %v4220_v15 }
  0xa0   : > { %v362_v52 = vmul.bf16 1035287989, %v330_v49  ;;  %v331_v53 = vld [vmem:[%s4502_s8 + $0x58] sm:$0xf]  ;;  %v3356_v54 = vcombine.low %v359_v46, %v360_v47  ;;  %v332_v55 = vld [vmem:[%s4502_s8 + $0x5c] sm:$0xf] }
  0xa1   : > { %v363_v56 = vmul.bf16 1035287989, %v331_v53  ;;  %v333_v57 = vld [vmem:[%s4502_s8 + $0x60] sm:$0xf]  ;;  %3355 = vst [vmem:[#allocation2 + $0x40] sm:$0xff] %v3354_v50   ;;  %412 = vst.msk [vmem:[#allocation3 + $0x30] sm:$0xff] %vm405_vm0, %v4220_v15 }
  0xa2   : > { %v3358_v58 = vcombine.low %v361_v51, %v362_v52  ;;  %v364_v59 = vmul.bf16 1035287989, %v332_v55  ;;  %v334_v60 = vld [vmem:[%s4502_s8 + $0x64] sm:$0xf]  ;;  %v365_v61 = vmul.bf16 1035287989, %v333_v57 }
  0xa3   : > { %3357 = vst [vmem:[#allocation2 + $0x48] sm:$0xff] %v3356_v54   ;;  %v366_v62 = vmul.bf16 1035287989, %v334_v60  ;;  %v335_v63 = vld [vmem:[%s4502_s8 + $0x68] sm:$0xf]  ;;  %413 = vst.msk [vmem:[#allocation3 + $0x38] sm:$0xff] %vm405_vm0, %v4220_v15 }
  0xa4   : > { %v336_v0 = vld [vmem:[%s4502_s8 + $0x6c] sm:$0xf]  ;;  %3359 = vst [vmem:[#allocation2 + $0x50] sm:$0xff] %v3358_v58   ;;  %v3360_v1 = vcombine.low %v363_v56, %v364_v59  ;;  %v367_v2 = vmul.bf16 1035287989, %v335_v63  ;;  %414 = vst.msk [vmem:[#allocation3 + $0x40] sm:$0xff] %vm405_vm0, %v4220_v15 }
  0xa5   : > { %v368_v3 = vmul.bf16 1035287989, %v336_v0  ;;  %v337_v4 = vld [vmem:[%s4502_s8 + $0x70] sm:$0xf]  ;;  %v3362_v5 = vcombine.low %v365_v61, %v366_v62  ;;  %v338_v6 = vld [vmem:[%s4502_s8 + $0x74] sm:$0xf] }
  0xa6   : > { %v369_v7 = vmul.bf16 1035287989, %v337_v4  ;;  %v4552_v8 = vld [vmem:[%s4502_s8 + $0x78] sm:$0xf]  ;;  %3361 = vst [vmem:[#allocation2 + $0x58] sm:$0xff] %v3360_v1   ;;  %415 = vst.msk [vmem:[#allocation3 + $0x48] sm:$0xff] %vm405_vm0, %v4220_v15 }
  0xa7   : > { %v3364_v9 = vcombine.low %v367_v2, %v368_v3  ;;  %v370_v10 = vmul.bf16 1035287989, %v338_v6  ;;  %v4555_v11 = vld [vmem:[%s4502_s8 + $0x7c] sm:$0xf]  ;;  %v371_v12 = vmul.bf16 1035287989, %v4552_v8 }
  0xa8   : > { %3363 = vst [vmem:[#allocation2 + $0x60] sm:$0xff] %v3362_v5   ;;  %v372_v13 = vmul.bf16 1035287989, %v4555_v11  ;;  %416 = vst.msk [vmem:[#allocation3 + $0x50] sm:$0xff] %vm405_vm0, %v4220_v15  ;;  %v4221_v16 = vmov 0.0  }
  0xa9   : > { %3365 = vst [vmem:[#allocation2 + $0x68] sm:$0xff] %v3364_v9   ;;  %v4559_v14 = vcombine.low %v369_v7, %v370_v10  ;;  %417 = vst.msk [vmem:[#allocation3 + $0x58] sm:$0xff] %vm405_vm0, %v4220_v15 }
  0xaa   : > { %418 = vst.msk [vmem:[#allocation3 + $0x60] sm:$0xff] %vm405_vm0, %v4220_v15  ;;  %419 = vst.msk [vmem:[#allocation3 + $0x68] sm:$0xff] %vm405_vm0, %v4220_v15  ;;  %v3368_v17 = vcombine.low %v371_v12, %v372_v13 }
  0xab   : > { %420 = vst.msk [vmem:[#allocation3 + $0x70] sm:$0xff] %vm405_vm0, %v4220_v15  ;;  %421 = vst.msk [vmem:[#allocation3 + $0x78] sm:$0xff] %vm405_vm0, %v4220_v15 }
  0xac   : > { %422 = vst.msk [vmem:[#allocation3 + $0x80] sm:$0xff] %vm405_vm0, %v4220_v15  ;;  %423 = vst.msk [vmem:[#allocation3 + $0x88] sm:$0xff] %vm405_vm0, %v4220_v15 }
  0xad   : > { %424 = vst.msk [vmem:[#allocation3 + $0x90] sm:$0xff] %vm405_vm0, %v4220_v15  ;;  %425 = vst.msk [vmem:[#allocation3 + $0x98] sm:$0xff] %vm405_vm0, %v4220_v15 }
  0xae   : > { %426 = vst.msk [vmem:[#allocation3 + $0xa0] sm:$0xff] %vm405_vm0, %v4220_v15  ;;  %427 = vst.msk [vmem:[#allocation3 + $0xa8] sm:$0xff] %vm405_vm0, %v4220_v15 }
  0xaf   : > { %428 = vst.msk [vmem:[#allocation3 + $0xb0] sm:$0xff] %vm405_vm0, %v4220_v15  ;;  %429 = vst.msk [vmem:[#allocation3 + $0xb8] sm:$0xff] %vm405_vm0, %v4220_v15 }
  0xb0   : > { %430 = vst.msk [vmem:[#allocation3 + $0xc0] sm:$0xff] %vm405_vm0, %v4220_v15  ;;  %431 = vst.msk [vmem:[#allocation3 + $0xc8] sm:$0xff] %vm405_vm0, %v4220_v15 }
  0xb1   : > { %432 = vst.msk [vmem:[#allocation3 + $0xd0] sm:$0xff] %vm405_vm0, %v4220_v15  ;;  %433 = vst.msk [vmem:[#allocation3 + $0xd8] sm:$0xff] %vm405_vm0, %v4220_v15 }
  0xb2   : > { %434 = vst.msk [vmem:[#allocation3 + $0xe0] sm:$0xff] %vm405_vm0, %v4220_v15  ;;  %435 = vst.msk [vmem:[#allocation3 + $0xe8] sm:$0xff] %vm405_vm0, %v4220_v15 }
  0xb3   : > { %436 = vst.msk [vmem:[#allocation3 + $0xf0] sm:$0xff] %vm405_vm0, %v4220_v15  ;;  %437 = vst.msk [vmem:[#allocation3 + $0xf8] sm:$0xff] %vm405_vm0, %v4220_v15 }
  0xb4   : > { %438 = vst.msk [vmem:[#allocation4] sm:$0xff] %vm405_vm0, %v4221_v16  ;;  %439 = vst.msk [vmem:[#allocation4 + $0x8] sm:$0xff] %vm405_vm0, %v4221_v16 }
  0xb5   : > { %440 = vst.msk [vmem:[#allocation4 + $0x10] sm:$0xff] %vm405_vm0, %v4221_v16  ;;  %441 = vst.msk [vmem:[#allocation4 + $0x18] sm:$0xff] %vm405_vm0, %v4221_v16 }
  0xb6   : > { %442 = vst.msk [vmem:[#allocation4 + $0x20] sm:$0xff] %vm405_vm0, %v4221_v16  ;;  %443 = vst.msk [vmem:[#allocation4 + $0x28] sm:$0xff] %vm405_vm0, %v4221_v16 }
  0xb7   : > { %444 = vst.msk [vmem:[#allocation4 + $0x30] sm:$0xff] %vm405_vm0, %v4221_v16  ;;  %445 = vst.msk [vmem:[#allocation4 + $0x38] sm:$0xff] %vm405_vm0, %v4221_v16 }
  0xb8   : > { %446 = vst.msk [vmem:[#allocation4 + $0x40] sm:$0xff] %vm405_vm0, %v4221_v16  ;;  %447 = vst.msk [vmem:[#allocation4 + $0x48] sm:$0xff] %vm405_vm0, %v4221_v16 }
  0xb9   : > { %448 = vst.msk [vmem:[#allocation4 + $0x50] sm:$0xff] %vm405_vm0, %v4221_v16  ;;  %449 = vst.msk [vmem:[#allocation4 + $0x58] sm:$0xff] %vm405_vm0, %v4221_v16 }
  0xba   : > { %450 = vst.msk [vmem:[#allocation4 + $0x60] sm:$0xff] %vm405_vm0, %v4221_v16  ;;  %451 = vst.msk [vmem:[#allocation4 + $0x68] sm:$0xff] %vm405_vm0, %v4221_v16 }
  0xbb   : > { %452 = vst.msk [vmem:[#allocation4 + $0x70] sm:$0xff] %vm405_vm0, %v4221_v16  ;;  %453 = vst.msk [vmem:[#allocation4 + $0x78] sm:$0xff] %vm405_vm0, %v4221_v16 }
  0xbc   : > { %454 = vst.msk [vmem:[#allocation4 + $0x80] sm:$0xff] %vm405_vm0, %v4221_v16  ;;  %455 = vst.msk [vmem:[#allocation4 + $0x88] sm:$0xff] %vm405_vm0, %v4221_v16 }
  0xbd   : > { %456 = vst.msk [vmem:[#allocation4 + $0x90] sm:$0xff] %vm405_vm0, %v4221_v16  ;;  %457 = vst.msk [vmem:[#allocation4 + $0x98] sm:$0xff] %vm405_vm0, %v4221_v16 }
  0xbe   : > { %458 = vst.msk [vmem:[#allocation4 + $0xa0] sm:$0xff] %vm405_vm0, %v4221_v16  ;;  %459 = vst.msk [vmem:[#allocation4 + $0xa8] sm:$0xff] %vm405_vm0, %v4221_v16 }
  0xbf   : > { %460 = vst.msk [vmem:[#allocation4 + $0xb0] sm:$0xff] %vm405_vm0, %v4221_v16  ;;  %461 = vst.msk [vmem:[#allocation4 + $0xb8] sm:$0xff] %vm405_vm0, %v4221_v16 }
  0xc0   : > { %462 = vst.msk [vmem:[#allocation4 + $0xc0] sm:$0xff] %vm405_vm0, %v4221_v16  ;;  %463 = vst.msk [vmem:[#allocation4 + $0xc8] sm:$0xff] %vm405_vm0, %v4221_v16 }
  0xc1   : > { %464 = vst.msk [vmem:[#allocation4 + $0xd0] sm:$0xff] %vm405_vm0, %v4221_v16  ;;  %465 = vst.msk [vmem:[#allocation4 + $0xd8] sm:$0xff] %vm405_vm0, %v4221_v16 }
  0xc2   : > { %466 = vst.msk [vmem:[#allocation4 + $0xe0] sm:$0xff] %vm405_vm0, %v4221_v16  ;;  %467 = vst.msk [vmem:[#allocation4 + $0xe8] sm:$0xff] %vm405_vm0, %v4221_v16 }
  0xc3   : > { %468 = vst.msk [vmem:[#allocation4 + $0xf0] sm:$0xff] %vm405_vm0, %v4221_v16  ;;  %469 = vst.msk [vmem:[#allocation4 + $0xf8] sm:$0xff] %vm405_vm0, %v4221_v16 }
  0xc4   : > { %470 = vst [vmem:[#allocation5 + $0xb0] sm:$0xff] %v4221_v16  ;;  %471 = vst [vmem:[#allocation5] sm:$0xff] %v4221_v16 }
  0xc5   : > { %472 = vst [vmem:[#allocation5 + $0xd8] sm:$0xff] %v4221_v16  ;;  %473 = vst [vmem:[#allocation5 + $0x18] sm:$0xff] %v4221_v16 }
  0xc6   : > { %474 = vst [vmem:[#allocation5 + $0x50] sm:$0xff] %v4221_v16  ;;  %475 = vst [vmem:[#allocation5 + $0x68] sm:$0xff] %v4221_v16 }
  0xc7   : > { %476 = vst [vmem:[#allocation5 + $0x30] sm:$0xff] %v4221_v16  ;;  %477 = vst [vmem:[#allocation5 + $0x48] sm:$0xff] %v4221_v16 }
  0xc8   : > { %478 = vst [vmem:[#allocation5 + $0x80] sm:$0xff] %v4221_v16  ;;  %479 = vst [vmem:[#allocation5 + $0x88] sm:$0xff] %v4221_v16 }
  0xc9   : > { %480 = vst [vmem:[#allocation5 + $0xe8] sm:$0xff] %v4221_v16  ;;  %481 = vst [vmem:[#allocation5 + $0xb8] sm:$0xff] %v4221_v16 }
  0xca   : > { %482 = vst [vmem:[#allocation5 + $0x60] sm:$0xff] %v4221_v16  ;;  %483 = vst [vmem:[#allocation5 + $0xf0] sm:$0xff] %v4221_v16 }
  0xcb   : > { %484 = vst [vmem:[#allocation5 + $0x8] sm:$0xff] %v4221_v16  ;;  %485 = vst [vmem:[#allocation5 + $0x78] sm:$0xff] %v4221_v16 }
  0xcc   : > { %486 = vst [vmem:[#allocation5 + $0x38] sm:$0xff] %v4221_v16  ;;  %487 = vst [vmem:[#allocation5 + $0x58] sm:$0xff] %v4221_v16 }
  0xcd   : > { %488 = vst [vmem:[#allocation5 + $0x40] sm:$0xff] %v4221_v16  ;;  %489 = vst [vmem:[#allocation5 + $0xc8] sm:$0xff] %v4221_v16 }
  0xce   : > { %490 = vst [vmem:[#allocation5 + $0xe0] sm:$0xff] %v4221_v16  ;;  %491 = vst [vmem:[#allocation5 + $0x90] sm:$0xff] %v4221_v16 }
  0xcf   : > { %492 = vst [vmem:[#allocation5 + $0x70] sm:$0xff] %v4221_v16  ;;  %493 = vst [vmem:[#allocation5 + $0xc0] sm:$0xff] %v4221_v16 }
  0xd0   : > { %494 = vst [vmem:[#allocation5 + $0xa8] sm:$0xff] %v4221_v16  ;;  %495 = vst [vmem:[#allocation5 + $0xd0] sm:$0xff] %v4221_v16 }
  0xd1   : > { %496 = vst [vmem:[#allocation5 + $0x10] sm:$0xff] %v4221_v16  ;;  %497 = vst [vmem:[#allocation5 + $0x28] sm:$0xff] %v4221_v16 }
  0xd2   : > { %498 = vst [vmem:[#allocation5 + $0xa0] sm:$0xff] %v4221_v16  ;;  %499 = vst [vmem:[#allocation5 + $0xf8] sm:$0xff] %v4221_v16 }
  0xd3   : > { %500 = vst [vmem:[#allocation5 + $0x20] sm:$0xff] %v4221_v16  ;;  %501 = vst [vmem:[#allocation5 + $0x98] sm:$0xff] %v4221_v16 }
  0xd4   : > { %3367 = vst [vmem:[#allocation2 + $0x70] sm:$0xff] %v4559_v14   ;;  %3369 = vst [vmem:[#allocation2 + $0x78] sm:$0xff] %v3368_v17  }
  0xd5 PF: > { %v3683_v18 = vld [vmem:[%s4510_s22 + $0x78] sm:$0xff]   ;;  %v3685_v20 = vld [vmem:[%s4510_s22 + $0x70] sm:$0xff]   ;;  %v3687_v22 = vld [vmem:[%s4510_s22 + $0x68] sm:$0xff]   ;;  %v4222_v63 = vmov 0   ;;  %vm1783_vm1 = vcmask 7168   ;;  %s6204_s11 = sld [smem:[#allocation19_spill]] }
  0xd6   : > { %v3684_v19 = vld [vmem:[%s4510_s22 + $0x38] sm:$0xff]   ;;  %3385 = vmatprep.subr.bf16.mxu0 %v3683_v18  ;;  %v3686_v21 = vld [vmem:[%s4510_s22 + $0x30] sm:$0xff]   ;;  %v3688_v23 = vld [vmem:[%s4510_s22 + $0x28] sm:$0xff]   ;;  %3681 = vset.pattern.permute.xlu0 %v4222_v63 }
  0xd7   : > { %3386 = vmatpush3.bf16.xpose.msra.mxu0 %v3684_v19  ;;  %v3689_v24 = vld [vmem:[%s4510_s22 + $0x60] sm:$0xff]   ;;  %v3691_v27 = vld [vmem:[%s4510_s22 + $0x58] sm:$0xff]   ;;  %v3693_v29 = vld [vmem:[%s4510_s22 + $0x50] sm:$0xff]   ;;  %3682 = vset.pattern.permute.xlu1 %v4222_v63 }
  0xd8   : > { %3387 = vmatprep.subr.bf16.mxu0 %v3685_v20  ;;  %v3699_v25 = vld [vmem:[#allocation2] sm:$0xff]   ;;  %v3692_v28 = vld [vmem:[%s4510_s22 + $0x18] sm:$0xff]   ;;  %v3694_v30 = vld [vmem:[%s4510_s22 + $0x10] sm:$0xff]  }
  0xd9   : > { %3401 = vmatprep.mubr.bf16.mxu0 %v3699_v25  ;;  %v3690_v26 = vld [vmem:[%s4510_s22 + $0x20] sm:$0xff]   ;;  %v3695_v31 = vld [vmem:[%s4510_s22 + $0x48] sm:$0xff]   ;;  %v3701_v36 = vld [vmem:[#allocation2 + $0x10] sm:$0xff]  }
  0xda   : > { %v3696_v32 = vld [vmem:[%s4510_s22 + $0x8] sm:$0xff]   ;;  %v3697_v33 = vld [vmem:[%s4510_s22 + $0x40] sm:$0xff]   ;;  %v3702_v37 = vld [vmem:[#allocation2 + $0x18] sm:$0xff]  }
  0xdb   : > { %v3698_v34 = vld [vmem:[%s4510_s22] sm:$0xff]   ;;  %v3700_v35 = vld [vmem:[#allocation2 + $0x8] sm:$0xff]   ;;  %v3705_v40 = vld [vmem:[#allocation2 + $0x30] sm:$0xff]   ;;  %p3108_p10 = scmp.ne.s32.totalorder %s6204_s11, 1 }
  0xdc   : > { %v3703_v38 = vld [vmem:[#allocation2 + $0x20] sm:$0xff]   ;;  %v3704_v39 = vld [vmem:[#allocation2 + $0x28] sm:$0xff]   ;;  %v3706_v41 = vld [vmem:[#allocation2 + $0x38] sm:$0xff]  }
  0xdd   : > { %v3707_v42 = vld [vmem:[#allocation2 + $0x40] sm:$0xff]   ;;  %v3708_v43 = vld [vmem:[#allocation2 + $0x48] sm:$0xff]   ;;  %v3709_v44 = vld [vmem:[#allocation2 + $0x50] sm:$0xff]  }
  0xde   : > { %v3710_v45 = vld [vmem:[#allocation2 + $0x58] sm:$0xff]   ;;  %v3711_v46 = vld [vmem:[#allocation2 + $0x60] sm:$0xff]   ;;  %v3712_v47 = vld [vmem:[#allocation2 + $0x68] sm:$0xff]  }
  0xdf   : > { %3388 = vmatpush3.bf16.xpose.msra.mxu0 %v3686_v21  ;;  %v3713_v48 = vld [vmem:[#allocation2 + $0x70] sm:$0xff]   ;;  %v3714_v49 = vld [vmem:[#allocation2 + $0x78] sm:$0xff]  }
  0xe0   : > { %3389 = vmatprep.subr.bf16.mxu0 %v3687_v22 }
  0xe7   : > { %3390 = vmatpush3.bf16.xpose.msra.mxu0 %v3688_v23 }
  0xe8   : > { %3391 = vmatprep.subr.bf16.mxu0 %v3689_v24 }
  0xef   : > { %3392 = vmatpush3.bf16.xpose.msra.mxu0 %v3690_v26 }
  0xf0   : > { %3393 = vmatprep.subr.bf16.mxu0 %v3691_v27 }
  0xf7   : > { %3394 = vmatpush3.bf16.xpose.msra.mxu0 %v3692_v28 }
  0xf8   : > { %3395 = vmatprep.subr.bf16.mxu0 %v3693_v29 }
  0xff   : > { %3396 = vmatpush3.bf16.xpose.msra.mxu0 %v3694_v30 }
 0x100   : > { %3397 = vmatprep.subr.bf16.mxu0 %v3695_v31 }
 0x107   : > { %3398 = vmatpush3.bf16.xpose.msra.mxu0 %v3696_v32 }
 0x108   : > { %3399 = vmatprep.subr.bf16.mxu0 %v3697_v33 }
 0x10f   : > { %3400 = vmatpush3.bf16.xpose.msra.mxu0 %v3698_v34 }
 0x116   : > { %3402 = vmatmul.mubr.bf16.vlgmr.msra.gmra.mxu0 %v3699_v25 }
 0x117   : > { %3403 = vmatprep.mubr.bf16.mxu0 %v3700_v35 }
 0x11e   : > { %3404 = vmatmul.mubr.bf16.gmra.mxu0 %v3700_v35 }
 0x11f   : > { %3405 = vmatprep.mubr.bf16.mxu0 %v3701_v36 }
 0x126   : > { %3406 = vmatmul.mubr.bf16.gmra.mxu0 %v3701_v36 }
 0x127   : > { %3407 = vmatprep.mubr.bf16.mxu0 %v3702_v37 }
 0x12e   : > { %3408 = vmatmul.mubr.bf16.gmra.mxu0 %v3702_v37 }
 0x12f   : > { %3409 = vmatprep.mubr.bf16.mxu0 %v3703_v38 }
 0x136   : > { %3410 = vmatmul.mubr.bf16.gmra.mxu0 %v3703_v38 }
 0x137   : > { %3411 = vmatprep.mubr.bf16.mxu0 %v3704_v39 }
 0x13e   : > { %3412 = vmatmul.mubr.bf16.gmra.mxu0 %v3704_v39 }
 0x13f   : > { %3413 = vmatprep.mubr.bf16.mxu0 %v3705_v40 }
 0x146   : > { %3414 = vmatmul.mubr.bf16.gmra.mxu0 %v3705_v40 }
 0x147   : > { %3415 = vmatprep.mubr.bf16.mxu0 %v3706_v41 }
 0x14e   : > { %3416 = vmatmul.mubr.bf16.gmra.mxu0 %v3706_v41 }
 0x14f   : > { %3417 = vmatprep.mubr.bf16.mxu0 %v3707_v42 }
 0x156   : > { %3418 = vmatmul.mubr.bf16.gmra.mxu0 %v3707_v42 }
 0x157   : > { %3419 = vmatprep.mubr.bf16.mxu0 %v3708_v43 }
 0x15e   : > { %3420 = vmatmul.mubr.bf16.gmra.mxu0 %v3708_v43 }
 0x15f   : > { %3421 = vmatprep.mubr.bf16.mxu0 %v3709_v44 }
 0x166   : > { %3422 = vmatmul.mubr.bf16.gmra.mxu0 %v3709_v44 }
 0x167   : > { %3423 = vmatprep.mubr.bf16.mxu0 %v3710_v45 }
 0x16e   : > { %3424 = vmatmul.mubr.bf16.gmra.mxu0 %v3710_v45 }
 0x16f   : > { %3425 = vmatprep.mubr.bf16.mxu0 %v3711_v46 }
 0x176   : > { %3426 = vmatmul.mubr.bf16.gmra.mxu0 %v3711_v46 }
 0x177   : > { %3427 = vmatprep.mubr.bf16.mxu0 %v3712_v47 }
 0x17e   : > { %3428 = vmatmul.mubr.bf16.gmra.mxu0 %v3712_v47 }
 0x17f   : > { %3429 = vmatprep.mubr.bf16.mxu0 %v3713_v48 }
 0x186   : > { %3430 = vmatmul.mubr.bf16.gmra.mxu0 %v3713_v48 }
 0x187   : > { %3431 = vmatprep.mubr.bf16.mxu0 %v3714_v49 }
 0x18e   : > { %3432 = vmatmul.mubr.bf16.gmra.mxu0 %v3714_v49 }
 0x1d6   : > { %v4710_v50 = vpop.f32.mrf.mxu0 }
 0x1d8   : > { %v4712_v51 = vpop.f32.mrf.mxu0 }
 0x1d9   : > { %v1015_v52 = vmax.f32 %v4710_v50, %v4712_v51 }
 0x1da   : > { %v4716_v53 = vpop.f32.mrf.mxu0 }
 0x1db   : > { %1016 = vmax.xlane.f32.xlu0 %v1015_v52 }
 0x1dc   : > { %v4718_v54 = vpop.f32.mrf.mxu0 }
 0x1dd   : > { %v1018_v55 = vmax.f32 %v4716_v53, %v4718_v54 }
 0x1de   : > { %v4722_v56 = vpop.f32.mrf.mxu0 }
 0x1df   : > { %1019 = vmax.xlane.f32.xlu0 %v1018_v55 }
 0x1e0   : > { %v4724_v57 = vpop.f32.mrf.mxu0 }
 0x1e1   : > { %v1021_v58 = vmax.f32 %v4722_v56, %v4724_v57 }
 0x1e2   : > { %v4728_v59 = vpop.f32.mrf.mxu0 }
 0x1e3   : > { %1022 = vmax.xlane.f32.xlu1 %v1021_v58 }
 0x1e4   : > { %v4730_v60 = vpop.f32.mrf.mxu0 }
 0x1e5   : > { %v1024_v61 = vmax.f32 %v4728_v59, %v4730_v60 }
 0x1e6   : > { %v4734_v62 = vpop.f32.mrf.mxu0 }
 0x1e7   : > { %1025 = vmax.xlane.f32.xlu1 %v1024_v61 }
 0x1e8   : > { %v4736_v0 = vpop.f32.mrf.mxu0 }
 0x1e9   : > { %v1027_v1 = vmax.f32 %v4734_v62, %v4736_v0 }
 0x1ea   : > { %v4740_v2 = vpop.f32.mrf.mxu0 }
 0x1eb   : > { %1028 = vmax.xlane.f32.xlu0 %v1027_v1 }
 0x1ec   : > { %v4742_v3 = vpop.f32.mrf.mxu0 }
 0x1ed   : > { %v1030_v4 = vmax.f32 %v4740_v2, %v4742_v3 }
 0x1ee   : > { %v4746_v5 = vpop.f32.mrf.mxu0 }
 0x1ef   : > { %1031 = vmax.xlane.f32.xlu1 %v1030_v4 }
 0x1f0   : > { %v4748_v6 = vpop.f32.mrf.mxu0 }
 0x1f1   : > { %v1033_v7 = vmax.f32 %v4746_v5, %v4748_v6 }
 0x1f2   : > { %v4752_v8 = vpop.f32.mrf.mxu0 }
 0x1f3   : > { %1034 = vmax.xlane.f32.xlu0 %v1033_v7 }
 0x1f4   : > { %v4754_v9 = vpop.f32.mrf.mxu0 }
 0x1f5   : > { %v1036_v10 = vmax.f32 %v4752_v8, %v4754_v9 }
 0x1f6   : > { %v4758_v11 = vpop.f32.mrf.mxu0 }
 0x1f7   : > { %1037 = vmax.xlane.f32.xlu1 %v1036_v10 }
 0x1f8   : > { %v4760_v12 = vpop.f32.mrf.mxu0 }
 0x1f9   : > { %v1039_v13 = vmax.f32 %v4758_v11, %v4760_v12 }
 0x1fa   : > { %v4764_v14 = vpop.f32.mrf.mxu0 }
 0x1fb   : > { %1040 = vmax.xlane.f32.xlu0 %v1039_v13 }
 0x1fc   : > { %v4766_v15 = vpop.f32.mrf.mxu0 }
 0x1fd   : > { %v1042_v16 = vmax.f32 %v4764_v14, %v4766_v15 }
 0x1fe   : > { %v4770_v17 = vpop.f32.mrf.mxu0 }
 0x1ff   : > { %1043 = vmax.xlane.f32.xlu1 %v1042_v16 }
 0x200   : > { %v4772_v18 = vpop.f32.mrf.mxu0 }
 0x201   : > { %v1045_v19 = vmax.f32 %v4770_v17, %v4772_v18 }
 0x202   : > { %v4776_v20 = vpop.f32.mrf.mxu0 }
 0x203   : > { %1046 = vmax.xlane.f32.xlu0 %v1045_v19 }
 0x204   : > { %v4778_v21 = vpop.f32.mrf.mxu0 }
 0x205   : > { %v1048_v22 = vmax.f32 %v4776_v20, %v4778_v21 }
 0x206   : > { %v4782_v23 = vpop.f32.mrf.mxu0 }
 0x207   : > { %5988 = vst [vmem:[#allocation31_spill] sm:$0xff] %v4782_v23  ;;  %1049 = vmax.xlane.f32.xlu1 %v1048_v22 }
 0x208   : > { %v4784_v24 = vpop.f32.mrf.mxu0 }
 0x209   : > { %5989 = vst [vmem:[#allocation32_spill] sm:$0xff] %v4784_v24  ;;  %v1051_v25 = vmax.f32 %v4782_v23, %v4784_v24  ;;  %v5064_v24 = vld [vmem:[#allocation3 + $0x80] sm:$0xff] }
 0x20a   : > { %v4788_v26 = vpop.f32.mrf.mxu0  ;;  %6035 = vst [vmem:[#allocation78_spill] sm:$0xff] %v5064_v24 }
 0x20b   : > { %5990 = vst [vmem:[#allocation33_spill] sm:$0xff] %v4788_v26  ;;  %1052 = vmax.xlane.f32.xlu0 %v1051_v25 }
 0x20c   : > { %v4790_v27 = vpop.f32.mrf.mxu0 }
 0x20d   : > { %5991 = vst [vmem:[#allocation34_spill] sm:$0xff] %v4790_v27  ;;  %v1054_v28 = vmax.f32 %v4788_v26, %v4790_v27 }
 0x20e   : > { %v4794_v29 = vpop.f32.mrf.mxu0 }
 0x20f   : > { %5992 = vst [vmem:[#allocation35_spill] sm:$0xff] %v4794_v29  ;;  %1055 = vmax.xlane.f32.xlu1 %v1054_v28 }
 0x210   : > { %v4796_v30 = vpop.f32.mrf.mxu0 }
 0x211   : > { %5993 = vst [vmem:[#allocation36_spill] sm:$0xff] %v4796_v30  ;;  %v1057_v31 = vmax.f32 %v4794_v29, %v4796_v30  ;;  %v5053_v29 = vld [vmem:[#allocation3 + $0x78] sm:$0xff] }
 0x212   : > { %v4800_v32 = vpop.f32.mrf.mxu0  ;;  %6033 = vst [vmem:[#allocation76_spill] sm:$0xff] %v5053_v29 }
 0x213   : > { %5994 = vst [vmem:[#allocation37_spill] sm:$0xff] %v4800_v32  ;;  %1058 = vmax.xlane.f32.xlu0 %v1057_v31 }
 0x214   : > { %v4802_v33 = vpop.f32.mrf.mxu0 }
 0x215   : > { %5995 = vst [vmem:[#allocation38_spill] sm:$0xff] %v4802_v33  ;;  %v1060_v34 = vmax.f32 %v4800_v32, %v4802_v33 }
 0x216   : > { %v4806_v35 = vpop.f32.mrf.mxu0 }
 0x217   : > { %5996 = vst [vmem:[#allocation39_spill] sm:$0xff] %v4806_v35  ;;  %1061 = vmax.xlane.f32.xlu1 %v1060_v34 }
 0x218   : > { %v4808_v36 = vpop.f32.mrf.mxu0 }
 0x219   : > { %5997 = vst [vmem:[#allocation40_spill] sm:$0xff] %v4808_v36  ;;  %v1063_v37 = vmax.f32 %v4806_v35, %v4808_v36  ;;  %v5042_v36 = vld [vmem:[#allocation3 + $0x70] sm:$0xff] }
 0x21a   : > { %v4812_v38 = vpop.f32.mrf.mxu0  ;;  %6031 = vst [vmem:[#allocation74_spill] sm:$0xff] %v5042_v36 }
 0x21b   : > { %5998 = vst [vmem:[#allocation41_spill] sm:$0xff] %v4812_v38  ;;  %1064 = vmax.xlane.f32.xlu0 %v1063_v37 }
 0x21c   : > { %v4814_v39 = vpop.f32.mrf.mxu0 }
 0x21d   : > { %5999 = vst [vmem:[#allocation42_spill] sm:$0xff] %v4814_v39  ;;  %v1066_v40 = vmax.f32 %v4812_v38, %v4814_v39  ;;  %v5021_v38 = vld [vmem:[#allocation3 + $0x60] sm:$0xff] }
 0x21e   : > { %v4818_v41 = vpop.f32.mrf.mxu0  ;;  %6027 = vst [vmem:[#allocation70_spill] sm:$0xff] %v5021_v38 }
 0x21f   : > { %6000 = vst [vmem:[#allocation43_spill] sm:$0xff] %v4818_v41  ;;  %1067 = vmax.xlane.f32.xlu1 %v1066_v40 }
 0x220   : > { %v4820_v42 = vpop.f32.mrf.mxu0 }
 0x221   : > { %6001 = vst [vmem:[#allocation44_spill] sm:$0xff] %v4820_v42  ;;  %v1069_v43 = vmax.f32 %v4818_v41, %v4820_v42  ;;  %v5001_v41 = vld [vmem:[#allocation3 + $0x50] sm:$0xff] }
 0x222   : > { %v4824_v44 = vpop.f32.mrf.mxu0 }
 0x223   : > { %6002 = vst [vmem:[#allocation45_spill] sm:$0xff] %v4824_v44  ;;  %1070 = vmax.xlane.f32.xlu0 %v1069_v43 }
 0x224   : > { %v4826_v45 = vpop.f32.mrf.mxu0 }
 0x225   : > { %6003 = vst [vmem:[#allocation46_spill] sm:$0xff] %v4826_v45  ;;  %v1072_v46 = vmax.f32 %v4824_v44, %v4826_v45  ;;  %v4971_v44 = vld [vmem:[#allocation3 + $0x38] sm:$0xff] }
 0x226   : > { %v4830_v47 = vpop.f32.mrf.mxu0 }
 0x227   : > { %6004 = vst [vmem:[#allocation47_spill] sm:$0xff] %v4830_v47  ;;  %1073 = vmax.xlane.f32.xlu1 %v1072_v46 }
 0x228   : > { %v4832_v48 = vpop.f32.mrf.mxu0 }
 0x229   : > { %6005 = vst [vmem:[#allocation48_spill] sm:$0xff] %v4832_v48  ;;  %v1075_v49 = vmax.f32 %v4830_v47, %v4832_v48  ;;  %v3728_v47 = vld [vmem:[%s4516_s18 + $0x8] sm:$0xff]  }
 0x22a   : > { %v4836_v52 = vpop.f32.mrf.mxu0 }
 0x22b   : > { %6006 = vst [vmem:[#allocation49_spill] sm:$0xff] %v4836_v52  ;;  %1076 = vmax.xlane.f32.xlu1 %v1075_v49 }
 0x22c   : > { %v4838_v55 = vpop.f32.mrf.mxu0 }
 0x22d   : > { %6007 = vst [vmem:[#allocation50_spill] sm:$0xff] %v4838_v55  ;;  %v1078_v58 = vmax.f32 %v4836_v52, %v4838_v55  ;;  %v5031_v52 = vld [vmem:[#allocation3 + $0x68] sm:$0xff] }
 0x22e   : > { %v4842_v61 = vpop.f32.mrf.mxu0  ;;  %6028 = vst [vmem:[#allocation71_spill] sm:$0xff] %v5031_v52 }
 0x22f   : > { %6008 = vst [vmem:[#allocation51_spill] sm:$0xff] %v4842_v61  ;;  %1079 = vmax.xlane.f32.xlu0 %v1078_v58 }
 0x230   : > { %v4844_v63 = vpop.f32.mrf.mxu0 }
 0x231   : > { %6009 = vst [vmem:[#allocation52_spill] sm:$0xff] %v4844_v63  ;;  %v1081_v1 = vmax.f32 %v4842_v61, %v4844_v63  ;;  %v3724_v61 = vld [vmem:[%s4516_s18 + $0x18] sm:$0xff]  }
 0x232   : > { %v4848_v4 = vpop.f32.mrf.mxu0 }
 0x233   : > { %6010 = vst [vmem:[#allocation53_spill] sm:$0xff] %v4848_v4  ;;  %1082 = vmax.xlane.f32.xlu1 %v1081_v1 }
 0x234   : > { %v4850_v7 = vpop.f32.mrf.mxu0 }
 0x235   : > { %6011 = vst [vmem:[#allocation54_spill] sm:$0xff] %v4850_v7  ;;  %v1084_v10 = vmax.f32 %v4848_v4, %v4850_v7  ;;  %v5011_v4 = vld [vmem:[#allocation3 + $0x58] sm:$0xff] }
 0x236   : > { %v4854_v13 = vpop.f32.mrf.mxu0  ;;  %6025 = vst [vmem:[#allocation68_spill] sm:$0xff] %v5011_v4 }
 0x237   : > { %6012 = vst [vmem:[#allocation55_spill] sm:$0xff] %v4854_v13  ;;  %1085 = vmax.xlane.f32.xlu0 %v1084_v10 }
 0x238   : > { %v4856_v16 = vpop.f32.mrf.mxu0 }
 0x239   : > { %6013 = vst [vmem:[#allocation56_spill] sm:$0xff] %v4856_v16  ;;  %v1087_v19 = vmax.f32 %v4854_v13, %v4856_v16  ;;  %v3720_v16 = vld [vmem:[%s4516_s18 + $0x28] sm:$0xff]  }
 0x23a   : > { %v4860_v22 = vpop.f32.mrf.mxu0 }
 0x23b   : > { %6014 = vst [vmem:[#allocation57_spill] sm:$0xff] %v4860_v22  ;;  %1088 = vmax.xlane.f32.xlu0 %v1087_v19 }
 0x23c   : > { %v4862_v25 = vpop.f32.mrf.mxu0 }
 0x23d   : > { %6015 = vst [vmem:[#allocation58_spill] sm:$0xff] %v4862_v25  ;;  %v1090_v28 = vmax.f32 %v4860_v22, %v4862_v25  ;;  %v4991_v22 = vld [vmem:[#allocation3 + $0x48] sm:$0xff] }
 0x23e   : > { %v4866_v31 = vpop.f32.mrf.mxu0 }
 0x23f   : > { %6016 = vst [vmem:[#allocation59_spill] sm:$0xff] %v4866_v31  ;;  %1091 = vmax.xlane.f32.xlu1 %v1090_v28 }
 0x240   : > { %v4868_v34 = vpop.f32.mrf.mxu0 }
 0x241   : > { %6017 = vst [vmem:[#allocation60_spill] sm:$0xff] %v4868_v34  ;;  %v1093_v37 = vmax.f32 %v4866_v31, %v4868_v34  ;;  %v3716_v34 = vld [vmem:[%s4516_s18 + $0x38] sm:$0xff]   ;;  %v3718_v31 = vld [vmem:[%s4516_s18 + $0x30] sm:$0xff]  }
 0x242   : > { %v4872_v40 = vpop.f32.mrf.mxu0 }
 0x243   : > { %6018 = vst [vmem:[#allocation61_spill] sm:$0xff] %v4872_v40  ;;  %1094 = vmax.xlane.f32.xlu1 %v1093_v37  ;;  %v3715_v37 = vld [vmem:[%s4516_s18 + $0x78] sm:$0xff]  }
 0x244   : > { %v4874_v43 = vpop.f32.mrf.mxu0  ;;  %3433 = vmatprep.subr.bf16.mxu1 %v3715_v37 }
 0x245   : > { %6019 = vst [vmem:[#allocation62_spill] sm:$0xff] %v4874_v43  ;;  %v1096_v46 = vmax.f32 %v4872_v40, %v4874_v43  ;;  %3434 = vmatpush3.bf16.msra.mxu1 %v3716_v34  ;;  %v3723_v34 = vld [vmem:[%s4516_s18 + $0x58] sm:$0xff]   ;;  %v3730_v40 = vld [vmem:[%s4516_s18] sm:$0xff]  }
 0x246   : > { %v4878_v49 = vpop.f32.mrf.mxu0 }
 0x247   : > { %6020 = vst [vmem:[#allocation63_spill] sm:$0xff] %v4878_v49  ;;  %1097 = vmax.xlane.f32.xlu0 %v1096_v46  ;;  %v3717_v46 = vld [vmem:[%s4516_s18 + $0x70] sm:$0xff]  }
 0x248   : > { %v4880_v58 = vpop.f32.mrf.mxu0  ;;  %3435 = vmatprep.subr.bf16.mxu1 %v3717_v46  ;;  %v3722_v46 = vld [vmem:[%s4516_s18 + $0x20] sm:$0xff]  }
 0x249   : > { %6021 = vst [vmem:[#allocation64_spill] sm:$0xff] %v4880_v58  ;;  %v1099_v1 = vmax.f32 %v4878_v49, %v4880_v58  ;;  %3436 = vmatpush3.bf16.msra.mxu1 %v3718_v31  ;;  %v4894_v58 = vld [vmem:[#allocation3] sm:$0xff] }
 0x24a   : > { %v4884_v10 = vpop.f32.mrf.mxu0  ;;  %v3721_v31 = vld [vmem:[%s4516_s18 + $0x60] sm:$0xff]  }
 0x24b   : > { %6022 = vst [vmem:[#allocation65_spill] sm:$0xff] %v4884_v10  ;;  %1100 = vmax.xlane.f32.xlu0 %v1099_v1  ;;  %v3719_v1 = vld [vmem:[%s4516_s18 + $0x68] sm:$0xff]  }
 0x24c   : > { %v4886_v19 = vpop.f32.mrf.mxu0  ;;  %3437 = vmatprep.subr.bf16.mxu1 %v3719_v1  ;;  %v4913_v1 = vld [vmem:[#allocation3 + $0x10] sm:$0xff] }
 0x24d   : > { %6023 = vst [vmem:[#allocation66_spill] sm:$0xff] %v4886_v19  ;;  %v1102_v28 = vmax.f32 %v4884_v10, %v4886_v19  ;;  %3438 = vmatpush3.bf16.msra.mxu1 %v3720_v16  ;;  %v3725_v16 = vld [vmem:[%s4516_s18 + $0x50] sm:$0xff]  }
 0x24e   : > { %3439 = vmatprep.subr.bf16.mxu1 %v3721_v31  ;;  %v4925_v31 = vld [vmem:[#allocation3 + $0x18] sm:$0xff]  ;;  %v3726_v10 = vld [vmem:[%s4516_s18 + $0x10] sm:$0xff]   ;;  %v5033_v33 = vpop.f32.mrf.mxu0 }
 0x24f   : > { %1103 = vmax.xlane.f32.xlu1 %v1102_v28  ;;  %v4901_v28 = vld [vmem:[#allocation3 + $0x8] sm:$0xff]  ;;  %6029 = vst [vmem:[#allocation72_spill] sm:$0xff] %v5033_v33 }
 0x250   : > { %v5044_v35 = vpop.f32.mrf.mxu0 }
 0x251   : > { %3440 = vmatpush3.bf16.msra.mxu1 %v3722_v46  ;;  %v3727_v46 = vld [vmem:[%s4516_s18 + $0x48] sm:$0xff]   ;;  %6032 = vst [vmem:[#allocation75_spill] sm:$0xff] %v5044_v35 }
 0x252   : > { %3441 = vmatprep.subr.bf16.mxu1 %v3723_v34  ;;  %v4937_v34 = vld [vmem:[#allocation3 + $0x20] sm:$0xff]  ;;  %v5055_v27 = vpop.f32.mrf.mxu0 }
 0x253   : > { %6034 = vst [vmem:[#allocation77_spill] sm:$0xff] %v5055_v27 }
 0x254   : > { %v5066_v23 = vpop.f32.mrf.mxu0 }
 0x255   : > { %3442 = vmatpush3.bf16.msra.mxu1 %v3724_v61  ;;  %v3729_v61 = vld [vmem:[%s4516_s18 + $0x40] sm:$0xff]   ;;  %6036 = vst [vmem:[#allocation79_spill] sm:$0xff] %v5066_v23 }
 0x256   : > { %3443 = vmatprep.subr.bf16.mxu1 %v3725_v16  ;;  %v4949_v16 = vld [vmem:[#allocation3 + $0x28] sm:$0xff] }
 0x259   : > { %3444 = vmatpush3.bf16.msra.mxu1 %v3726_v10 }
 0x25a   : > { %3445 = vmatprep.subr.bf16.mxu1 %v3727_v46 }
 0x25d   : > { %3446 = vmatpush3.bf16.msra.mxu1 %v3728_v47  ;;  %v4981_v47 = vld [vmem:[#allocation3 + $0x40] sm:$0xff] }
 0x25e   : > { %3447 = vmatprep.subr.bf16.mxu1 %v3729_v61 }
 0x261   : > { %3448 = vmatpush3.bf16.msra.mxu1 %v3730_v40 }
 0x264   : > { %v1017_v49 = vpop.xlane.xlu0 %1016 }
 0x265   : > { %v4899_v13 = vmax.f32 %v4894_v58, %v1017_v49 }
 0x267   : > { %2393 = vst.msk [vmem:[#allocation3] sm:$0xff] %vm1783_vm1, %v4899_v13  ;;  %1241 = vperm.xlu0 %3681, %v4899_v13  }
 0x268   : > { %v1020_v37 = vpop.xlane.xlu0 %1019 }
 0x269   : > { %v4911_v49 = vmax.f32 %v4901_v28, %v1020_v37 }
 0x26b   : > { %2394 = vst.msk [vmem:[#allocation3 + $0x8] sm:$0xff] %vm1783_vm1, %v4911_v49  ;;  %1246 = vperm.xlu1 %3682, %v4911_v49  }
 0x26c   : > { %v1023_v63 = vpop.xlane.xlu1 %1022 }
 0x26d   : > { %v4923_v37 = vmax.f32 %v4913_v1, %v1023_v63 }
 0x26f   : > { %2395 = vst.msk [vmem:[#allocation3 + $0x10] sm:$0xff] %vm1783_vm1, %v4923_v37  ;;  %1251 = vperm.xlu1 %3682, %v4923_v37  }
 0x270   : > { %v1026_v19 = vpop.xlane.xlu1 %1025 }
 0x271   : > { %v4935_v63 = vmax.f32 %v4925_v31, %v1026_v19 }
 0x273   : > { %2396 = vst.msk [vmem:[#allocation3 + $0x18] sm:$0xff] %vm1783_vm1, %v4935_v63  ;;  %1256 = vperm.xlu1 %3682, %v4935_v63  }
 0x274   : > { %v1029_v48 = vpop.xlane.xlu0 %1028 }
 0x275   : > { %v4947_v19 = vmax.f32 %v4937_v34, %v1029_v48  ;;  %v4961_v48 = vld [vmem:[#allocation3 + $0x30] sm:$0xff] }
 0x277   : > { %2397 = vst.msk [vmem:[#allocation3 + $0x20] sm:$0xff] %vm1783_vm1, %v4947_v19  ;;  %1261 = vperm.xlu0 %3681, %v4947_v19  }
 0x278   : > { %v1032_v43 = vpop.xlane.xlu1 %1031 }
 0x279   : > { %v4959_v45 = vmax.f32 %v4949_v16, %v1032_v43 }
 0x27b   : > { %2398 = vst.msk [vmem:[#allocation3 + $0x28] sm:$0xff] %vm1783_vm1, %v4959_v45  ;;  %1266 = vperm.xlu0 %3681, %v4959_v45  }
 0x27c   : > { %v1035_v46 = vpop.xlane.xlu0 %1034 }
 0x27d   : > { %v4969_v10 = vmax.f32 %v4961_v48, %v1035_v46 }
 0x27f   : > { %2399 = vst.msk [vmem:[#allocation3 + $0x30] sm:$0xff] %vm1783_vm1, %v4969_v10  ;;  %1271 = vperm.xlu1 %3682, %v4969_v10  }
 0x280   : > { %v1038_v40 = vpop.xlane.xlu1 %1037 }
 0x281   : > { %v4979_v61 = vmax.f32 %v4971_v44, %v1038_v40 }
 0x283   : > { %2400 = vst.msk [vmem:[#allocation3 + $0x38] sm:$0xff] %vm1783_vm1, %v4979_v61  ;;  %1276 = vperm.xlu1 %3682, %v4979_v61  }
 0x284   : > { %v1041_v43 = vpop.xlane.xlu0 %1040 }
 0x285   : > { %v4989_v25 = vmax.f32 %v4981_v47, %v1041_v43 }
 0x287   : > { %2401 = vst.msk [vmem:[#allocation3 + $0x40] sm:$0xff] %vm1783_vm1, %v4989_v25  ;;  %1281 = vperm.xlu0 %3681, %v4989_v25  }
 0x288   : > { %v1044_v46 = vpop.xlane.xlu1 %1043 }
 0x289   : > { %v4999_v42 = vmax.f32 %v4991_v22, %v1044_v46 }
 0x28b   : > { %2402 = vst.msk [vmem:[#allocation3 + $0x48] sm:$0xff] %vm1783_vm1, %v4999_v42  ;;  %1286 = vperm.xlu0 %3681, %v4999_v42  }
 0x28c   : > { %v1047_v40 = vpop.xlane.xlu0 %1046 }
 0x28d   : > { %v5009_v7 = vmax.f32 %v5001_v41, %v1047_v40 }
 0x28f   : > { %6024 = vst [vmem:[#allocation67_spill] sm:$0xff] %v5009_v7  ;;  %2403 = vst.msk [vmem:[#allocation3 + $0x50] sm:$0xff] %vm1783_vm1, %v5009_v7  ;;  %1291 = vperm.xlu1 %3682, %v5009_v7   ;;  %v5124_v7 = vld [vmem:[#allocation3 + $0xb0] sm:$0xff] }
 0x290   : > { %v1050_v43 = vpop.xlane.xlu1 %1049  ;;  %6046 = vst [vmem:[#allocation89_spill] sm:$0xff] %v5124_v7 }
 0x291   : > { %v5019_v39 = vmax.f32 %v5011_v4, %v1050_v43  ;;  %v1105_v4 = vmax.f32 %v5033_v33, %v5044_v35 }
 0x293   : > { %6026 = vst [vmem:[#allocation69_spill] sm:$0xff] %v5019_v39  ;;  %2404 = vst.msk [vmem:[#allocation3 + $0x58] sm:$0xff] %vm1783_vm1, %v5019_v39  ;;  %1296 = vperm.xlu1 %3682, %v5019_v39  }
 0x294   : > { %v1053_v46 = vpop.xlane.xlu0 %1052 }
 0x295   : > { %v5029_v55 = vmax.f32 %v5021_v38, %v1053_v46  ;;  %v5077_v38 = vld [vmem:[#allocation3 + $0x88] sm:$0xff] }
 0x296   : > { %6038 = vst [vmem:[#allocation81_spill] sm:$0xff] %v5077_v38 }
 0x297   : > { %2405 = vst.msk [vmem:[#allocation3 + $0x60] sm:$0xff] %vm1783_vm1, %v5029_v55 }
 0x298   : > { %v1056_v40 = vpop.xlane.xlu1 %1055 }
 0x299   : > { %v5040_v32 = vmax.f32 %v5031_v52, %v1056_v40 }
 0x29b   : > { %6030 = vst [vmem:[#allocation73_spill] sm:$0xff] %v5040_v32  ;;  %2406 = vst.msk [vmem:[#allocation3 + $0x68] sm:$0xff] %vm1783_vm1, %v5040_v32 }
 0x29c   : > { %v1059_v30 = vpop.xlane.xlu0 %1058 }
 0x29d   : > { %v5051_v43 = vmax.f32 %v5042_v36, %v1059_v30  ;;  %v1108_v36 = vmax.f32 %v5055_v27, %v5066_v23 }
 0x29f   : > { %2407 = vst.msk [vmem:[#allocation3 + $0x70] sm:$0xff] %vm1783_vm1, %v5051_v43 }
 0x2a0   : > { %v1062_v26 = vpop.xlane.xlu1 %1061 }
 0x2a1   : > { %v5062_v46 = vmax.f32 %v5053_v29, %v1062_v26  ;;  %v5086_v29 = vld [vmem:[#allocation3 + $0x90] sm:$0xff]  ;;  %v5095_v26 = vld [vmem:[#allocation3 + $0x98] sm:$0xff] }
 0x2a2   : > { %6039 = vst [vmem:[#allocation82_spill] sm:$0xff] %v5086_v29  ;;  %6040 = vst [vmem:[#allocation83_spill] sm:$0xff] %v5095_v26 }
 0x2a3   : > { %2408 = vst.msk [vmem:[#allocation3 + $0x78] sm:$0xff] %vm1783_vm1, %v5062_v46 }
 0x2a4   : > { %v1065_v52 = vpop.xlane.xlu0 %1064 }
 0x2a5   : > { %v5073_v40 = vmax.f32 %v5064_v24, %v1065_v52  ;;  %v5104_v52 = vld [vmem:[#allocation3 + $0xa0] sm:$0xff] }
 0x2a6   : > { %6042 = vst [vmem:[#allocation85_spill] sm:$0xff] %v5104_v52 }
 0x2a7   : > { %6037 = vst [vmem:[#allocation80_spill] sm:$0xff] %v5073_v40  ;;  %2409 = vst.msk [vmem:[#allocation3 + $0x80] sm:$0xff] %vm1783_vm1, %v5073_v40 }
 0x2a8   : > { %v1068_v39 = vpop.xlane.xlu1 %1067 }
 0x2a9   : > { %v5084_v30 = vmax.f32 %v5077_v38, %v1068_v39 }
 0x2aa   : > { %1109 = vmax.xlane.f32.xlu0 %v1108_v36 }
 0x2ab   : > { %2410 = vst.msk [vmem:[#allocation3 + $0x88] sm:$0xff] %vm1783_vm1, %v5084_v30 }
 0x2ac   : > { %v1071_v23 = vpop.xlane.xlu0 %1070 }
 0x2ad   : > { %v5093_v27 = vmax.f32 %v5086_v29, %v1071_v23  ;;  %v5115_v29 = vld [vmem:[#allocation3 + $0xa8] sm:$0xff] }
 0x2ae   : > { %6044 = vst [vmem:[#allocation87_spill] sm:$0xff] %v5115_v29 }
 0x2af   : > { %2411 = vst.msk [vmem:[#allocation3 + $0x90] sm:$0xff] %vm1783_vm1, %v5093_v27 }
 0x2b0   : > { %v1074_v36 = vpop.xlane.xlu1 %1073 }
 0x2b1   : > { %v5102_v39 = vmax.f32 %v5095_v26, %v1074_v36  ;;  %v5133_v36 = vld [vmem:[#allocation3 + $0xb8] sm:$0xff] }
 0x2b2   : > { %6048 = vst [vmem:[#allocation91_spill] sm:$0xff] %v5133_v36 }
 0x2b3   : > { %6041 = vst [vmem:[#allocation84_spill] sm:$0xff] %v5102_v39  ;;  %2412 = vst.msk [vmem:[#allocation3 + $0x98] sm:$0xff] %vm1783_vm1, %v5102_v39 }
 0x2b4   : > { %v1077_v23 = vpop.xlane.xlu1 %1076 }
 0x2b5   : > { %v5113_v24 = vmax.f32 %v5104_v52, %v1077_v23  ;;  %v5153_v52 = vld [vmem:[#allocation3 + $0xc8] sm:$0xff] }
 0x2b6   : > { %6051 = vst [vmem:[#allocation94_spill] sm:$0xff] %v5153_v52 }
 0x2b7   : > { %6043 = vst [vmem:[#allocation86_spill] sm:$0xff] %v5113_v24  ;;  %1106 = vmax.xlane.f32.xlu1 %v1105_v4  ;;  %2413 = vst.msk [vmem:[#allocation3 + $0xa0] sm:$0xff] %vm1783_vm1, %v5113_v24 }
 0x2b8   : > { %v1080_v38 = vpop.xlane.xlu0 %1079 }
 0x2b9   : > { %v5122_v26 = vmax.f32 %v5115_v29, %v1080_v38  ;;  %v5143_v29 = vld [vmem:[#allocation3 + $0xc0] sm:$0xff] }
 0x2ba   : > { %6050 = vst [vmem:[#allocation93_spill] sm:$0xff] %v5143_v29 }
 0x2bb   : > { %6045 = vst [vmem:[#allocation88_spill] sm:$0xff] %v5122_v26  ;;  %2414 = vst.msk [vmem:[#allocation3 + $0xa8] sm:$0xff] %vm1783_vm1, %v5122_v26 }
 0x2bc   : > { %v1083_v23 = vpop.xlane.xlu1 %1082 }
 0x2bd   : > { %v5131_v4 = vmax.f32 %v5124_v7, %v1083_v23 }
 0x2bf   : > { %6047 = vst [vmem:[#allocation90_spill] sm:$0xff] %v5131_v4  ;;  %2415 = vst.msk [vmem:[#allocation3 + $0xb0] sm:$0xff] %vm1783_vm1, %v5131_v4 }
 0x2c0   : > { %1301 = vperm.xlu0 %3681, %v5029_v55   ;;  %v1086_v38 = vpop.xlane.xlu0 %1085 }
 0x2c1   : > { %v5141_v35 = vmax.f32 %v5133_v36, %v1086_v38 }
 0x2c3   : > { %6049 = vst [vmem:[#allocation92_spill] sm:$0xff] %v5141_v35  ;;  %2416 = vst.msk [vmem:[#allocation3 + $0xb8] sm:$0xff] %vm1783_vm1, %v5141_v35 }
 0x2c4   : > { %1306 = vperm.xlu0 %3681, %v5040_v32   ;;  %v1089_v33 = vpop.xlane.xlu0 %1088  ;;  %v5164_v32 = vld [vmem:[#allocation3 + $0xd0] sm:$0xff] }
 0x2c5   : > { %v5151_v7 = vmax.f32 %v5143_v29, %v1089_v33  ;;  %6053 = vst [vmem:[#allocation96_spill] sm:$0xff] %v5164_v32 }
 0x2c7   : > { %2417 = vst.msk [vmem:[#allocation3 + $0xc0] sm:$0xff] %vm1783_vm1, %v5151_v7 }
 0x2c8   : > { %1321 = vperm.xlu1 %3682, %v5073_v40   ;;  %1311 = vperm.xlu0 %3681, %v5051_v43   ;;  %v1092_v23 = vpop.xlane.xlu1 %1091  ;;  %v5175_v40 = vld [vmem:[#allocation3 + $0xd8] sm:$0xff] }
 0x2c9   : > { %v5162_v36 = vmax.f32 %v5153_v52, %v1092_v23  ;;  %6054 = vst [vmem:[#allocation97_spill] sm:$0xff] %v5175_v40 }
 0x2cb   : > { %6052 = vst [vmem:[#allocation95_spill] sm:$0xff] %v5162_v36  ;;  %2418 = vst.msk [vmem:[#allocation3 + $0xc8] sm:$0xff] %vm1783_vm1, %v5162_v36 }
 0x2cc   : > { %1346 = vperm.xlu1 %3682, %v5122_v26   ;;  %1316 = vperm.xlu0 %3681, %v5062_v46   ;;  %v1095_v38 = vpop.xlane.xlu1 %1094  ;;  %v5186_v26 = vld [vmem:[#allocation3 + $0xe0] sm:$0xff] }
 0x2cd   : > { %v5173_v29 = vmax.f32 %v5164_v32, %v1095_v38  ;;  %6056 = vst [vmem:[#allocation99_spill] sm:$0xff] %v5186_v26 }
 0x2cf   : > { %2419 = vst.msk [vmem:[#allocation3 + $0xd0] sm:$0xff] %vm1783_vm1, %v5173_v29 }
 0x2d0   : > { %1356 = vperm.xlu1 %3682, %v5141_v35   ;;  %1326 = vperm.xlu0 %3681, %v5084_v30   ;;  %v1098_v33 = vpop.xlane.xlu0 %1097  ;;  %v5197_v35 = vld [vmem:[#allocation3 + $0xe8] sm:$0xff] }
 0x2d1   : > { %v5184_v52 = vmax.f32 %v5175_v40, %v1098_v33  ;;  %6057 = vst [vmem:[#allocation100_spill] sm:$0xff] %v5197_v35 }
 0x2d3   : > { %6055 = vst [vmem:[#allocation98_spill] sm:$0xff] %v5184_v52  ;;  %2420 = vst.msk [vmem:[#allocation3 + $0xd8] sm:$0xff] %vm1783_vm1, %v5184_v52 }
 0x2d4   : > { %1366 = vperm.xlu1 %3682, %v5162_v36   ;;  %1331 = vperm.xlu0 %3681, %v5093_v27   ;;  %v1101_v23 = vpop.xlane.xlu0 %1100 }
 0x2d5   : > { %v5195_v32 = vmax.f32 %v5186_v26, %v1101_v23 }
 0x2d7   : > { %2421 = vst.msk [vmem:[#allocation3 + $0xe0] sm:$0xff] %vm1783_vm1, %v5195_v32 }
 0x2d8   : > { %1376 = vperm.xlu1 %3682, %v5184_v52   ;;  %1336 = vperm.xlu0 %3681, %v5102_v39   ;;  %v1104_v38 = vpop.xlane.xlu1 %1103 }
 0x2d9   : > { %v5206_v40 = vmax.f32 %v5197_v35, %v1104_v38 }
 0x2db   : > { %6058 = vst [vmem:[#allocation101_spill] sm:$0xff] %v5206_v40  ;;  %2422 = vst.msk [vmem:[#allocation3 + $0xe8] sm:$0xff] %vm1783_vm1, %v5206_v40 }
 0x2dc   : > { %1386 = vperm.xlu1 %3682, %v5206_v40   ;;  %1341 = vperm.xlu0 %3681, %v5113_v24  }
 0x2e0   : > { %1351 = vperm.xlu0 %3681, %v5131_v4  }
 0x2e2   : > { %v1242_v33 = vpop.permute.xlu0 %1241 }
 0x2e3   : > { %v1399_v26 = vsub.f32 %v4710_v50, %v1242_v33  ;;  %v1400_v52 = vsub.f32 %v4712_v51, %v1242_v33 }
 0x2e4   : > { %1361 = vperm.xlu0 %3681, %v5151_v7  }
 0x2e5   : > { %v1463_v38 = vmul.f32 1.442695, %v1399_v26  ;;  %v1465_v36 = vmul.f32 1.442695, %v1400_v52 }
 0x2e6   : > { %v1247_v39 = vpop.permute.xlu1 %1246 }
 0x2e7   : > { %3731 = vpow2.f32 %v1463_v38  ;;  %v1401_v23 = vsub.f32 %v4716_v53, %v1247_v39  ;;  %v1402_v35 = vsub.f32 %v4718_v54, %v1247_v39 }
 0x2e8   : > { %3733 = vpow2.f32 %v1465_v36  ;;  %1371 = vperm.xlu0 %3681, %v5173_v29  }
 0x2e9   : > { %v1467_v40 = vmul.f32 1.442695, %v1401_v23  ;;  %v1469_v4 = vmul.f32 1.442695, %v1402_v35 }
 0x2ea   : > { %v1252_v24 = vpop.permute.xlu1 %1251 }
 0x2eb   : > { %3735 = vpow2.f32 %v1467_v40  ;;  %v1403_v50 = vsub.f32 %v4722_v56, %v1252_v24  ;;  %v1404_v51 = vsub.f32 %v4724_v57, %v1252_v24 }
 0x2ec   : > { %3737 = vpow2.f32 %v1469_v4  ;;  %1381 = vperm.xlu0 %3681, %v5195_v32  }
 0x2ed   : > { %v1471_v26 = vmul.f32 1.442695, %v1403_v50  ;;  %v1473_v52 = vmul.f32 1.442695, %v1404_v51 }
 0x2ee   : > { %v1257_v33 = vpop.permute.xlu1 %1256 }
 0x2ef   : > { %3739 = vpow2.f32 %v1471_v26  ;;  %v1405_v53 = vsub.f32 %v4728_v59, %v1257_v33  ;;  %v1406_v54 = vsub.f32 %v4730_v60, %v1257_v33 }
 0x2f0   : > { %3741 = vpow2.f32 %v1473_v52 }
 0x2f1   : > { %v1475_v39 = vmul.f32 1.442695, %v1405_v53  ;;  %v1477_v35 = vmul.f32 1.442695, %v1406_v54 }
 0x2f2   : > { %v1262_v36 = vpop.permute.xlu0 %1261 }
 0x2f3   : > { %3743 = vpow2.f32 %v1475_v39  ;;  %v1407_v56 = vsub.f32 %v4734_v62, %v1262_v36  ;;  %v1408_v57 = vsub.f32 %v4736_v0, %v1262_v36 }
 0x2f4   : > { %v3732_v24 = vpop.eup %3731  ;;  %3745 = vpow2.f32 %v1477_v35 }
 0x2f5   : > { %v3734_v40 = vpop.eup %3733  ;;  %v1479_v4 = vmul.f32 1.442695, %v1407_v56  ;;  %v1481_v23 = vmul.f32 1.442695, %v1408_v57 }
 0x2f6   : > { %v1267_v38 = vpop.permute.xlu0 %1266  ;;  %v5228_v50 = vadd.f32 %v3734_v40, %v3732_v24 }
 0x2f7   : > { %3747 = vpow2.f32 %v1479_v4  ;;  %v1409_v59 = vsub.f32 %v4740_v2, %v1267_v38  ;;  %v1410_v60 = vsub.f32 %v4742_v3, %v1267_v38 }
 0x2f8   : > { %v3736_v51 = vpop.eup %3735  ;;  %3749 = vpow2.f32 %v1481_v23 }
 0x2f9   : > { %v3738_v26 = vpop.eup %3737  ;;  %v1483_v52 = vmul.f32 1.442695, %v1409_v59  ;;  %v1485_v62 = vmul.f32 1.442695, %v1410_v60  ;;  %v2040_v33 = vpack.c.bf16 %v3736_v51, %v3732_v24 }
 0x2fa   : > { %v1272_v0 = vpop.permute.xlu1 %1271  ;;  %v2041_v53 = vpack.c.bf16 %v3738_v26, %v3734_v40  ;;  %v5232_v54 = vadd.f32 %v3738_v26, %v3736_v51 }
 0x2fb   : > { %3751 = vpow2.f32 %v1483_v52  ;;  %v1411_v39 = vsub.f32 %v4746_v5, %v1272_v0  ;;  %v1412_v35 = vsub.f32 %v4748_v6, %v1272_v0 }
 0x2fc   : > { %v3740_v36 = vpop.eup %3739  ;;  %3753 = vpow2.f32 %v1485_v62  ;;  %2200 = vmatprep.mubr.bf16.mxu1 %v2041_v53 }
 0x2fd   : > { %v3742_v2 = vpop.eup %3741  ;;  %v1487_v3 = vmul.f32 1.442695, %v1411_v39  ;;  %v1489_v56 = vmul.f32 1.442695, %v1412_v35  ;;  %2201 = vmatmul.mubr.bf16.vlgmr.msra.gmra.mxu1 %v2040_v33 }
 0x2fe   : > { %v1277_v57 = vpop.permute.xlu1 %1276  ;;  %v5236_v4 = vadd.f32 %v3742_v2, %v3740_v36 }
 0x2ff   : > { %3755 = vpow2.f32 %v1487_v3  ;;  %v1413_v24 = vsub.f32 %v4752_v8, %v1277_v57  ;;  %v1414_v40 = vsub.f32 %v4754_v9, %v1277_v57 }
 0x300   : > { %v3744_v23 = vpop.eup %3743  ;;  %3757 = vpow2.f32 %v1489_v56 }
 0x301   : > { %v3746_v5 = vpop.eup %3745  ;;  %v1491_v38 = vmul.f32 1.442695, %v1413_v24  ;;  %v1493_v6 = vmul.f32 1.442695, %v1414_v40  ;;  %v2042_v59 = vpack.c.bf16 %v3744_v23, %v3740_v36 }
 0x302   : > { %v1282_v60 = vpop.permute.xlu0 %1281  ;;  %v2043_v51 = vpack.c.bf16 %v3746_v5, %v3742_v2  ;;  %v5240_v26 = vadd.f32 %v3746_v5, %v3744_v23 }
 0x303   : > { %3759 = vpow2.f32 %v1491_v38  ;;  %v1415_v52 = vsub.f32 %v4758_v11, %v1282_v60  ;;  %v1416_v62 = vsub.f32 %v4760_v12, %v1282_v60 }
 0x304   : > { %v3748_v33 = vpop.eup %3747  ;;  %3761 = vpow2.f32 %v1493_v6  ;;  %2208 = vmatprep.mubr.bf16.mxu1 %v2043_v51 }
 0x305   : > { %v3750_v8 = vpop.eup %3749  ;;  %v1495_v9 = vmul.f32 1.442695, %v1415_v52  ;;  %v1497_v0 = vmul.f32 1.442695, %v1416_v62  ;;  %2209 = vmatmul.mubr.bf16.gmra.mxu1 %v2042_v59 }
 0x306   : > { %v1287_v53 = vpop.permute.xlu0 %1286  ;;  %v5244_v39 = vadd.f32 %v3750_v8, %v3748_v33 }
 0x307   : > { %3763 = vpow2.f32 %v1495_v9  ;;  %v1417_v35 = vsub.f32 %v4764_v14, %v1287_v53  ;;  %v1418_v36 = vsub.f32 %v4766_v15, %v1287_v53 }
 0x308   : > { %v3752_v2 = vpop.eup %3751  ;;  %3765 = vpow2.f32 %v1497_v0 }
 0x309   : > { %v3754_v11 = vpop.eup %3753  ;;  %v1499_v3 = vmul.f32 1.442695, %v1417_v35  ;;  %v1501_v12 = vmul.f32 1.442695, %v1418_v36  ;;  %v2044_v56 = vpack.c.bf16 %v3752_v2, %v3748_v33 }
 0x30a   : > { %v1292_v57 = vpop.permute.xlu1 %1291  ;;  %v2045_v24 = vpack.c.bf16 %v3754_v11, %v3750_v8  ;;  %v5248_v40 = vadd.f32 %v3754_v11, %v3752_v2 }
 0x30b   : > { %3767 = vpow2.f32 %v1499_v3  ;;  %v1419_v23 = vsub.f32 %v4770_v17, %v1292_v57  ;;  %v1420_v5 = vsub.f32 %v4772_v18, %v1292_v57 }
 0x30c   : > { %v3756_v38 = vpop.eup %3755  ;;  %3769 = vpow2.f32 %v1501_v12  ;;  %2216 = vmatprep.mubr.bf16.mxu1 %v2045_v24 }
 0x30d   : > { %v3758_v14 = vpop.eup %3757  ;;  %v1503_v15 = vmul.f32 1.442695, %v1419_v23  ;;  %v1505_v6 = vmul.f32 1.442695, %v1420_v5  ;;  %2217 = vmatmul.mubr.bf16.gmra.mxu1 %v2044_v56 }
 0x30e   : > { %v1297_v59 = vpop.permute.xlu1 %1296  ;;  %v5252_v60 = vadd.f32 %v3758_v14, %v3756_v38 }
 0x30f   : > { %3771 = vpow2.f32 %v1503_v15  ;;  %v1421_v51 = vsub.f32 %v4776_v20, %v1297_v59  ;;  %v1422_v52 = vsub.f32 %v4778_v21, %v1297_v59  ;;  %v6059_v15 = vsub.f32 %v4894_v58, %v4899_v13 }
 0x310   : > { %v3760_v62 = vpop.eup %3759  ;;  %3773 = vpow2.f32 %v1505_v6  ;;  %v6060_v59 = vsub.f32 %v4901_v28, %v4911_v49  ;;  %v6064_v13 = vsub.f32 %v4949_v16, %v4959_v45  ;;  %v6065_v28 = vsub.f32 %v4961_v48, %v4969_v10  ;;  %v5299_v48 = vld [vmem:[#allocation3 + $0xf8] sm:$0xff] }
 0x311   : > { %v3762_v17 = vpop.eup %3761  ;;  %v1507_v33 = vmul.f32 1.442695, %v1421_v51  ;;  %v1509_v18 = vmul.f32 1.442695, %v1422_v52  ;;  %v2046_v8 = vpack.c.bf16 %v3760_v62, %v3756_v38  ;;  %v1175_v6 = vmul.f32 1.442695, %v6059_v15 }
 0x312   : > { %v2047_v9 = vpack.c.bf16 %v3762_v17, %v3758_v14  ;;  %v5256_v0 = vadd.f32 %v3762_v17, %v3760_v62  ;;  %v1177_v51 = vmul.f32 1.442695, %v6060_v59  ;;  %v6061_v52 = vsub.f32 %v4913_v1, %v4923_v37  ;;  %v6084_v15 = vld [vmem:[#allocation80_spill] sm:$0xff] }
 0x313   : > { %3775 = vpow2.f32 %v1507_v33  ;;  %v6062_v17 = vsub.f32 %v4925_v31, %v4935_v63  ;;  %v1185_v58 = vmul.f32 1.442695, %v6064_v13  ;;  %v1187_v49 = vmul.f32 1.442695, %v6065_v28  ;;  %v6090_v13 = vld [vmem:[#allocation83_spill] sm:$0xff] }
 0x314   : > { %v3764_v53 = vpop.eup %3763  ;;  %3777 = vpow2.f32 %v1509_v18  ;;  %2224 = vmatprep.mubr.bf16.mxu1 %v2047_v9  ;;  %v1179_v62 = vmul.f32 1.442695, %v6061_v52  ;;  %v6063_v18 = vsub.f32 %v4937_v34, %v4947_v19  ;;  %v6066_v1 = vsub.f32 %v4971_v44, %v4979_v61  ;;  %v6069_v19 = vld [vmem:[#allocation67_spill] sm:$0xff]  ;;  %v6071_v44 = vld [vmem:[#allocation68_spill] sm:$0xff]  ;;  %v6072_v61 = vld [vmem:[#allocation69_spill] sm:$0xff] }
 0x315   : > { %v3766_v35 = vpop.eup %3765  ;;  %2225 = vmatmul.mubr.bf16.gmra.mxu1 %v2046_v8  ;;  %v1181_v33 = vmul.f32 1.442695, %v6062_v17  ;;  %3779 = vpow2.f32 %v1175_v6  ;;  %v6067_v31 = vsub.f32 %v4981_v47, %v4989_v25  ;;  %v6068_v45 = vsub.f32 %v4991_v22, %v4999_v42  ;;  %v6074_v25 = vld [vmem:[#allocation70_spill] sm:$0xff]  ;;  %v6076_v42 = vld [vmem:[#allocation71_spill] sm:$0xff]  ;;  %v6077_v22 = vld [vmem:[#allocation73_spill] sm:$0xff] }
 0x316   : > { %v5258_v36 = vadd.f32 %v3766_v35, %v3764_v53  ;;  %v1183_v8 = vmul.f32 1.442695, %v6063_v18  ;;  %3781 = vpow2.f32 %v1177_v51  ;;  %v1189_v37 = vmul.f32 1.442695, %v6066_v1  ;;  %v6086_v51 = vld [vmem:[#allocation81_spill] sm:$0xff]  ;;  %v6088_v17 = vld [vmem:[#allocation82_spill] sm:$0xff] }
 0x317   : > { %3783 = vpow2.f32 %v1179_v62  ;;  %v1191_v63 = vmul.f32 1.442695, %v6067_v31  ;;  %v1193_v34 = vmul.f32 1.442695, %v6068_v45  ;;  %v6070_v16 = vsub.f32 %v5001_v41, %v6069_v19 }
 0x318   : > { %v3768_v20 = vpop.eup %3767  ;;  %3785 = vpow2.f32 %v1181_v33  ;;  %v6073_v9 = vsub.f32 %v6071_v44, %v6072_v61  ;;  %v6075_v47 = vsub.f32 %v6074_v25, %v5029_v55  ;;  %v6089_v33 = vsub.f32 %v6088_v17, %v5093_v27  ;;  %v6097_v27 = vld [vmem:[#allocation31_spill] sm:$0xff]  ;;  %v6113_v17 = vld [vmem:[#allocation92_spill] sm:$0xff] }
 0x319   : > { %v3770_v2 = vpop.eup %3769  ;;  %v2048_v21 = vpack.c.bf16 %v3768_v20, %v3764_v53  ;;  %3787 = vpow2.f32 %v1183_v8  ;;  %v1195_v10 = vmul.f32 1.442695, %v6070_v16  ;;  %v6098_v16 = vld [vmem:[#allocation32_spill] sm:$0xff]  ;;  %v6100_v61 = vld [vmem:[#allocation87_spill] sm:$0xff] }
 0x31a   : > { %v2049_v11 = vpack.c.bf16 %v3770_v2, %v3766_v35  ;;  %v5260_v3 = vadd.f32 %v3770_v2, %v3768_v20  ;;  %3789 = vpow2.f32 %v1185_v58  ;;  %v1197_v53 = vmul.f32 1.442695, %v6073_v9  ;;  %v6091_v58 = vld [vmem:[#allocation84_spill] sm:$0xff] }
 0x31b   : > { %3791 = vpow2.f32 %v1187_v49  ;;  %v1199_v35 = vmul.f32 1.442695, %v6075_v47  ;;  %v6078_v2 = vsub.f32 %v6076_v42, %v6077_v22  ;;  %v1211_v18 = vmul.f32 1.442695, %v6089_v33  ;;  %v6101_v9 = vld [vmem:[#allocation88_spill] sm:$0xff]  ;;  %v5360_v42 = vld [vmem:[#allocation3 + $0xf0] sm:$0xff] }
 0x31c   : > { %v3772_v12 = vpop.eup %3771  ;;  %2232 = vmatprep.mubr.bf16.mxu1 %v2049_v11  ;;  %3793 = vpow2.f32 %v1189_v37  ;;  %v6079_v11 = vld [vmem:[#allocation74_spill] sm:$0xff]  ;;  %v6092_v28 = vsub.f32 %v6090_v13, %v6091_v58 }
 0x31d   : > { %v3774_v56 = vpop.eup %3773  ;;  %2233 = vmatmul.mubr.bf16.gmra.mxu1 %v2048_v21  ;;  %3795 = vpow2.f32 %v1191_v63  ;;  %v1201_v21 = vmul.f32 1.442695, %v6078_v2  ;;  %v6095_v37 = vld [vmem:[#allocation86_spill] sm:$0xff]  ;;  %v6104_v2 = vld [vmem:[#allocation89_spill] sm:$0xff] }
 0x31e   : > { %v5262_v57 = vadd.f32 %v3774_v56, %v3772_v12  ;;  %3797 = vpow2.f32 %v1193_v34  ;;  %v1213_v49 = vmul.f32 1.442695, %v6092_v28 }
 0x31f   : > { %3799 = vpow2.f32 %v1195_v10 }
 0x320   : > { %v3776_v24 = vpop.eup %3775  ;;  %3801 = vpow2.f32 %v1197_v53  ;;  %v6102_v53 = vsub.f32 %v6100_v61, %v6101_v9 }
 0x321   : > { %v3778_v23 = vpop.eup %3777  ;;  %v2050_v5 = vpack.c.bf16 %v3776_v24, %v3772_v12  ;;  %v6080_v12 = vsub.f32 %v6079_v11, %v5051_v43  ;;  %3803 = vpow2.f32 %v1199_v35 }
 0x322   : > { %v2051_v38 = vpack.c.bf16 %v3778_v23, %v3774_v56  ;;  %v5264_v14 = vadd.f32 %v3778_v23, %v3776_v24  ;;  %v6081_v24 = vld [vmem:[#allocation76_spill] sm:$0xff]  ;;  %v5327_v43 = vpop.eup %3779  ;;  %3805 = vpow2.f32 %v1201_v21  ;;  %v1217_v25 = vmul.f32 1.442695, %v6102_v53  ;;  %v6105_v21 = vld [vmem:[#allocation90_spill] sm:$0xff] }
 0x323   : > { %v1203_v56 = vmul.f32 1.442695, %v6080_v12  ;;  %v6082_v23 = vsub.f32 %v6081_v24, %v5062_v46  ;;  %v6087_v46 = vsub.f32 %v6086_v51, %v5084_v30  ;;  %v5332_v62 = vpop.eup %3781  ;;  %v6094_v30 = vld [vmem:[#allocation85_spill] sm:$0xff]  ;;  %v6106_v11 = vsub.f32 %v6104_v2, %v6105_v21 }
 0x324   : > { %2240 = vmatprep.mubr.bf16.mxu1 %v2051_v38  ;;  %v6083_v38 = vld [vmem:[#allocation78_spill] sm:$0xff]  ;;  %v5337_v8 = vpop.eup %3783  ;;  %v6096_v31 = vsub.f32 %v6094_v30, %v6095_v37  ;;  %v6117_v30 = vld [vmem:[#allocation95_spill] sm:$0xff] }
 0x325   : > { %2241 = vmatmul.mubr.bf16.gmra.mxu1 %v2050_v5  ;;  %v1205_v55 = vmul.f32 1.442695, %v6082_v23  ;;  %v6085_v6 = vsub.f32 %v6083_v38, %v6084_v15  ;;  %v1209_v52 = vmul.f32 1.442695, %v6087_v46  ;;  %3807 = vpow2.f32 %v1203_v56  ;;  %v5343_v1 = vpop.eup %3785  ;;  %v6108_v23 = vld [vmem:[#allocation33_spill] sm:$0xff]  ;;  %v6109_v38 = vld [vmem:[#allocation34_spill] sm:$0xff] }
 0x326   : > { %6093 = vst [vmem:[#allocation67_spill] sm:$0xff] %v5343_v1  ;;  %v1215_v63 = vmul.f32 1.442695, %v6096_v31  ;;  %v5348_v34 = vpop.eup %3787  ;;  %v1219_v12 = vmul.f32 1.442695, %v6106_v11 }
 0x327   : > { %v1207_v59 = vmul.f32 1.442695, %v6085_v6  ;;  %3809 = vpow2.f32 %v1205_v55  ;;  %v5352_v44 = vpop.eup %3789 }
 0x328   : > { %6099 = vst [vmem:[#allocation68_spill] sm:$0xff] %v5352_v44  ;;  %v5357_v47 = vpop.eup %3791 }
 0x329   : > { %3811 = vpow2.f32 %v1207_v59  ;;  %v5362_v22 = vpop.eup %3793 }
 0x32a   : > { %3813 = vpow2.f32 %v1209_v52  ;;  %6103 = vst [vmem:[#allocation69_spill] sm:$0xff] %v5362_v22  ;;  %v5367_v24 = vpop.eup %3795  ;;  %v6112_v52 = vld [vmem:[#allocation91_spill] sm:$0xff] }
 0x32b   : > { %3815 = vpow2.f32 %v1211_v18  ;;  %6107 = vst [vmem:[#allocation70_spill] sm:$0xff] %v5367_v24  ;;  %v5371_v59 = vpop.eup %3797  ;;  %v6114_v33 = vsub.f32 %v6112_v52, %v6113_v17  ;;  %v6128_v17 = vld [vmem:[#allocation38_spill] sm:$0xff] }
 0x32c   : > { %3817 = vpow2.f32 %v1213_v49  ;;  %6110 = vst [vmem:[#allocation71_spill] sm:$0xff] %v5371_v59  ;;  %v5376_v46 = vpop.eup %3799  ;;  %v6116_v49 = vld [vmem:[#allocation94_spill] sm:$0xff] }
 0x32d   : > { %3819 = vpow2.f32 %v1215_v63  ;;  %6111 = vst [vmem:[#allocation73_spill] sm:$0xff] %v5376_v46  ;;  %v1221_v18 = vmul.f32 1.442695, %v6114_v33  ;;  %v5382_v28 = vpop.eup %3801  ;;  %v6118_v37 = vsub.f32 %v6116_v49, %v6117_v30  ;;  %v6131_v30 = vld [vmem:[#allocation50_spill] sm:$0xff] }
 0x32e   : > { %6115 = vst [vmem:[#allocation74_spill] sm:$0xff] %v5382_v28 }
 0x32f   : > { %v1225_v31 = vmul.f32 1.442695, %v6118_v37 }
 0x333   : > { %v1110_v20 = vpop.xlane.xlu0 %1109 }
 0x334   : > { %v5311_v41 = vmax.f32 %v5299_v48, %v1110_v20 }
 0x336   : > { %2424 = vst.msk [vmem:[#allocation3 + $0xf8] sm:$0xff] %vm1783_vm1, %v5311_v41  ;;  %1396 = vperm.xlu1 %3682, %v5311_v41  }
 0x33a   : > { %1850 = vperm.xlu1 %3682, %v5327_v43  }
 0x33b   : > { %v1302_v45 = vpop.permute.xlu0 %1301 }
 0x33c   : > { %v1423_v19 = vsub.f32 %v6097_v27, %v1302_v45  ;;  %v1424_v10 = vsub.f32 %v6098_v16, %v1302_v45  ;;  %v5392_v27 = vpop.eup %3803 }
 0x33d   : > { %6119 = vst [vmem:[#allocation76_spill] sm:$0xff] %v5392_v27  ;;  %v5396_v53 = vpop.eup %3805 }
 0x33e   : > { %v1511_v35 = vmul.f32 1.442695, %v1423_v19  ;;  %v1513_v20 = vmul.f32 1.442695, %v1424_v10  ;;  %1860 = vperm.xlu1 %3682, %v5337_v8   ;;  %v6120_v19 = vld [vmem:[#allocation35_spill] sm:$0xff]  ;;  %v6121_v10 = vld [vmem:[#allocation36_spill] sm:$0xff]  ;;  %v5400_v21 = vpop.eup %3807 }
 0x33f   : > { %v1307_v56 = vpop.permute.xlu0 %1306  ;;  %6122 = vst [vmem:[#allocation78_spill] sm:$0xff] %v5396_v53 }
 0x340   : > { %3821 = vpow2.f32 %v1511_v35  ;;  %v1425_v55 = vsub.f32 %v6108_v23, %v1307_v56  ;;  %v1426_v15 = vsub.f32 %v6109_v38, %v1307_v56  ;;  %v1107_v6 = vpop.xlane.xlu1 %1106  ;;  %v5403_v56 = vpop.eup %3809 }
 0x341   : > { %3823 = vpow2.f32 %v1513_v20  ;;  %v5374_v51 = vmax.f32 %v5360_v42, %v1107_v6  ;;  %v6124_v20 = vld [vmem:[#allocation40_spill] sm:$0xff]  ;;  %6125 = vst [vmem:[#allocation80_spill] sm:$0xff] %v5403_v56  ;;  %v6127_v6 = vld [vmem:[#allocation37_spill] sm:$0xff] }
 0x342   : > { %3825 = vpow2.f32 %v1217_v25  ;;  %v1515_v13 = vmul.f32 1.442695, %v1425_v55  ;;  %v1517_v58 = vmul.f32 1.442695, %v1426_v15  ;;  %1865 = vperm.xlu1 %3682, %v5343_v1   ;;  %v6123_v25 = vld [vmem:[#allocation39_spill] sm:$0xff]  ;;  %v5406_v15 = vpop.eup %3811 }
 0x343   : > { %3827 = vpow2.f32 %v1219_v12  ;;  %2423 = vst.msk [vmem:[#allocation3 + $0xf0] sm:$0xff] %vm1783_vm1, %v5374_v51  ;;  %1391 = vperm.xlu0 %3681, %v5374_v51   ;;  %v1312_v45 = vpop.permute.xlu0 %1311  ;;  %6126 = vst [vmem:[#allocation81_spill] sm:$0xff] %v5406_v15 }
 0x344   : > { %3829 = vpow2.f32 %v1515_v13  ;;  %v1427_v16 = vsub.f32 %v6120_v19, %v1312_v45  ;;  %v1428_v61 = vsub.f32 %v6121_v10, %v1312_v45  ;;  %v1322_v9 = vpop.permute.xlu1 %1321  ;;  %v5410_v13 = vpop.eup %3813 }
 0x345   : > { %3831 = vpow2.f32 %v1517_v58  ;;  %v1431_v35 = vsub.f32 %v6123_v25, %v1322_v9  ;;  %v1432_v2 = vsub.f32 %v6124_v20, %v1322_v9  ;;  %6129 = vst [vmem:[#allocation82_spill] sm:$0xff] %v5410_v13  ;;  %v6130_v58 = vld [vmem:[#allocation49_spill] sm:$0xff] }
 0x346   : > { %3833 = vpow2.f32 %v1221_v18  ;;  %v1519_v11 = vmul.f32 1.442695, %v1427_v16  ;;  %v1521_v12 = vmul.f32 1.442695, %v1428_v61  ;;  %1875 = vperm.xlu1 %3682, %v5352_v44  }
 0x347   : > { %3835 = vpow2.f32 %v1225_v31  ;;  %v1527_v23 = vmul.f32 1.442695, %v1431_v35  ;;  %v1529_v55 = vmul.f32 1.442695, %v1432_v2  ;;  %1855 = vperm.xlu0 %3681, %v5332_v62   ;;  %v1317_v38 = vpop.permute.xlu0 %1316  ;;  %v5414_v31 = vpop.eup %3815  ;;  %v6134_v35 = vld [vmem:[#allocation41_spill] sm:$0xff]  ;;  %v6135_v2 = vld [vmem:[#allocation42_spill] sm:$0xff] }
 0x348   : > { %3837 = vpow2.f32 %v1519_v11  ;;  %v1429_v52 = vsub.f32 %v6127_v6, %v1317_v38  ;;  %v1430_v33 = vsub.f32 %v6128_v17, %v1317_v38  ;;  %v1347_v18 = vpop.permute.xlu1 %1346  ;;  %v5417_v16 = vpop.eup %3817  ;;  %v6136_v38 = vld [vmem:[#allocation53_spill] sm:$0xff] }
 0x349   : > { %3839 = vpow2.f32 %v1521_v12  ;;  %v1441_v49 = vsub.f32 %v6130_v58, %v1347_v18  ;;  %v1442_v37 = vsub.f32 %v6131_v30, %v1347_v18  ;;  %6132 = vst [vmem:[#allocation83_spill] sm:$0xff] %v5417_v16  ;;  %v5420_v25 = vpop.eup %3819 }
 0x34a   : > { %3841 = vpow2.f32 %v1527_v23  ;;  %v1523_v45 = vmul.f32 1.442695, %v1429_v52  ;;  %v1525_v19 = vmul.f32 1.442695, %v1430_v33  ;;  %1885 = vperm.xlu1 %3682, %v5362_v22   ;;  %6133 = vst [vmem:[#allocation84_spill] sm:$0xff] %v5420_v25  ;;  %v6137_v52 = vld [vmem:[#allocation54_spill] sm:$0xff] }
 0x34b   : > { %3843 = vpow2.f32 %v1529_v55  ;;  %v1547_v10 = vmul.f32 1.442695, %v1441_v49  ;;  %v1549_v61 = vmul.f32 1.442695, %v1442_v37  ;;  %1870 = vperm.xlu0 %3681, %v5348_v34   ;;  %v1327_v9 = vpop.permute.xlu0 %1326 }
 0x34c   : > { %3845 = vpow2.f32 %v1523_v45  ;;  %v1433_v20 = vsub.f32 %v6134_v35, %v1327_v9  ;;  %v1434_v11 = vsub.f32 %v6135_v2, %v1327_v9  ;;  %v1357_v12 = vpop.permute.xlu1 %1356  ;;  %v6140_v9 = vld [vmem:[#allocation43_spill] sm:$0xff] }
 0x34d   : > { %v3822_v23 = vpop.eup %3821  ;;  %3847 = vpow2.f32 %v1525_v19  ;;  %v1445_v6 = vsub.f32 %v6136_v38, %v1357_v12  ;;  %v1446_v17 = vsub.f32 %v6137_v52, %v1357_v12  ;;  %v6142_v12 = vld [vmem:[#allocation57_spill] sm:$0xff] }
 0x34e   : > { %v3824_v55 = vpop.eup %3823  ;;  %3849 = vpow2.f32 %v1547_v10  ;;  %v1531_v33 = vmul.f32 1.442695, %v1433_v20  ;;  %v1533_v18 = vmul.f32 1.442695, %v1434_v11  ;;  %1895 = vperm.xlu1 %3682, %v5371_v59   ;;  %v6141_v10 = vld [vmem:[#allocation44_spill] sm:$0xff] }
 0x34f   : > { %v5427_v58 = vpop.eup %3825  ;;  %3851 = vpow2.f32 %v1549_v61  ;;  %v1555_v49 = vmul.f32 1.442695, %v1445_v6  ;;  %v1557_v30 = vmul.f32 1.442695, %v1446_v17  ;;  %1880 = vperm.xlu0 %3681, %v5357_v47   ;;  %v1332_v37 = vpop.permute.xlu0 %1331  ;;  %v5430_v45 = vadd.f32 %v3824_v55, %v3822_v23  ;;  %v6143_v61 = vld [vmem:[#allocation58_spill] sm:$0xff] }
 0x350   : > { %6138 = vst [vmem:[#allocation85_spill] sm:$0xff] %v5427_v58  ;;  %v5432_v19 = vpop.eup %3827  ;;  %3853 = vpow2.f32 %v1531_v33  ;;  %v1435_v35 = vsub.f32 %v6140_v9, %v1332_v37  ;;  %v1436_v20 = vsub.f32 %v6141_v10, %v1332_v37  ;;  %v1367_v2 = vpop.permute.xlu1 %1366 }
 0x351   : > { %6139 = vst [vmem:[#allocation86_spill] sm:$0xff] %v5432_v19  ;;  %v3830_v11 = vpop.eup %3829  ;;  %3855 = vpow2.f32 %v1533_v18  ;;  %v1449_v38 = vsub.f32 %v6142_v12, %v1367_v2  ;;  %v1450_v6 = vsub.f32 %v6143_v61, %v1367_v2  ;;  %v6146_v2 = vld [vmem:[#allocation45_spill] sm:$0xff] }
 0x352   : > { %v3832_v52 = vpop.eup %3831  ;;  %3857 = vpow2.f32 %v1555_v49  ;;  %v1535_v17 = vmul.f32 1.442695, %v1435_v35  ;;  %v1537_v63 = vmul.f32 1.442695, %v1436_v20  ;;  %1905 = vperm.xlu1 %3682, %v5382_v28   ;;  %v2052_v5 = vpack.c.bf16 %v3830_v11, %v3822_v23  ;;  %v6147_v49 = vld [vmem:[#allocation46_spill] sm:$0xff]  ;;  %v6148_v28 = vld [vmem:[#allocation61_spill] sm:$0xff] }
 0x353   : > { %v5439_v59 = vpop.eup %3833  ;;  %3859 = vpow2.f32 %v1557_v30  ;;  %v1563_v33 = vmul.f32 1.442695, %v1449_v38  ;;  %v1565_v9 = vmul.f32 1.442695, %v1450_v6  ;;  %1890 = vperm.xlu0 %3681, %v5367_v24   ;;  %v1337_v37 = vpop.permute.xlu0 %1336  ;;  %v2053_v18 = vpack.c.bf16 %v3832_v52, %v3824_v55  ;;  %v6149_v38 = vld [vmem:[#allocation62_spill] sm:$0xff] }
 0x354   : > { %6144 = vst [vmem:[#allocation31_spill] sm:$0xff] %v5439_v59  ;;  %v5442_v10 = vpop.eup %3835  ;;  %3861 = vpow2.f32 %v1535_v17  ;;  %v1437_v12 = vsub.f32 %v6146_v2, %v1337_v37  ;;  %v1438_v35 = vsub.f32 %v6147_v49, %v1337_v37  ;;  %v1377_v20 = vpop.permute.xlu1 %1376  ;;  %v5446_v61 = vadd.f32 %v3832_v52, %v3830_v11 }
 0x355   : > { %6145 = vst [vmem:[#allocation32_spill] sm:$0xff] %v5442_v10  ;;  %v3838_v23 = vpop.eup %3837  ;;  %3863 = vpow2.f32 %v1537_v63  ;;  %v1453_v30 = vsub.f32 %v6148_v28, %v1377_v20  ;;  %v1454_v6 = vsub.f32 %v6149_v38, %v1377_v20  ;;  %2248 = vmatprep.mubr.bf16.mxu1 %v2053_v18  ;;  %v6150_v18 = vld [vmem:[#allocation47_spill] sm:$0xff]  ;;  %v6153_v38 = vld [vmem:[#allocation66_spill] sm:$0xff] }
 0x356   : > { %v3840_v22 = vpop.eup %3839  ;;  %3865 = vpow2.f32 %v1563_v33  ;;  %v1539_v55 = vmul.f32 1.442695, %v1437_v12  ;;  %v1541_v44 = vmul.f32 1.442695, %v1438_v35  ;;  %2249 = vmatmul.mubr.bf16.gmra.mxu1 %v2052_v5  ;;  %1915 = vperm.xlu1 %3682, %v5396_v53   ;;  %v6151_v33 = vld [vmem:[#allocation48_spill] sm:$0xff]  ;;  %v6152_v35 = vld [vmem:[#allocation65_spill] sm:$0xff] }
 0x357   : > { %v5451_v17 = vpop.eup %3841  ;;  %3867 = vpow2.f32 %v1565_v9  ;;  %v1571_v37 = vmul.f32 1.442695, %v1453_v30  ;;  %v1573_v11 = vmul.f32 1.442695, %v1454_v6  ;;  %1900 = vperm.xlu0 %3681, %v5376_v46   ;;  %v1342_v63 = vpop.permute.xlu0 %1341  ;;  %v5454_v52 = vadd.f32 %v3840_v22, %v3838_v23 }
 0x358   : > { %v3844_v28 = vpop.eup %3843  ;;  %3869 = vpow2.f32 %v1539_v55  ;;  %v1439_v2 = vsub.f32 %v6150_v18, %v1342_v63  ;;  %v1440_v12 = vsub.f32 %v6151_v33, %v1342_v63  ;;  %v1387_v49 = vpop.permute.xlu1 %1386 }
 0x359   : > { %v3846_v5 = vpop.eup %3845  ;;  %3871 = vpow2.f32 %v1541_v44  ;;  %v1457_v20 = vsub.f32 %v6152_v35, %v1387_v49  ;;  %v1458_v9 = vsub.f32 %v6153_v38, %v1387_v49  ;;  %v5461_v30 = vadd.f32 %v3844_v28, %v5451_v17  ;;  %v6154_v38 = vld [vmem:[#allocation51_spill] sm:$0xff] }
 0x35a   : > { %v3848_v6 = vpop.eup %3847  ;;  %3873 = vpow2.f32 %v1571_v37  ;;  %v1543_v53 = vmul.f32 1.442695, %v1439_v2  ;;  %v1545_v46 = vmul.f32 1.442695, %v1440_v12  ;;  %1925 = vperm.xlu1 %3682, %v5403_v56   ;;  %v2054_v55 = vpack.c.bf16 %v3846_v5, %v3838_v23  ;;  %v6155_v37 = vld [vmem:[#allocation52_spill] sm:$0xff] }
 0x35b   : > { %v5464_v18 = vpop.eup %3849  ;;  %3875 = vpow2.f32 %v1573_v11  ;;  %v1579_v63 = vmul.f32 1.442695, %v1457_v20  ;;  %v1581_v33 = vmul.f32 1.442695, %v1458_v9  ;;  %1910 = vperm.xlu0 %3681, %v5392_v27   ;;  %v1352_v44 = vpop.permute.xlu0 %1351  ;;  %v2055_v35 = vpack.c.bf16 %v3848_v6, %v3840_v22  ;;  %v6156_v20 = vld [vmem:[#allocation93_spill] sm:$0xff] }
 0x35c   : > { %v5467_v49 = vpop.eup %3851  ;;  %3877 = vpow2.f32 %v1543_v53  ;;  %v1443_v24 = vsub.f32 %v6154_v38, %v1352_v44  ;;  %v1444_v2 = vsub.f32 %v6155_v37, %v1352_v44  ;;  %v5471_v12 = vadd.f32 %v3848_v6, %v3846_v5  ;;  %v6158_v6 = vld [vmem:[#allocation97_spill] sm:$0xff] }
 0x35d   : > { %v3854_v56 = vpop.eup %3853  ;;  %3879 = vpow2.f32 %v1545_v46  ;;  %2256 = vmatprep.mubr.bf16.mxu1 %v2055_v35  ;;  %v5475_v23 = vadd.f32 %v5467_v49, %v5464_v18  ;;  %v6157_v22 = vsub.f32 %v6156_v20, %v5151_v7  ;;  %v6159_v46 = vld [vmem:[#allocation98_spill] sm:$0xff] }
 0x35e   : > { %v3856_v11 = vpop.eup %3855  ;;  %3881 = vpow2.f32 %v1579_v63  ;;  %v1551_v53 = vmul.f32 1.442695, %v1443_v24  ;;  %v1553_v27 = vmul.f32 1.442695, %v1444_v2  ;;  %2257 = vmatmul.mubr.bf16.gmra.mxu1 %v2054_v55  ;;  %1935 = vperm.xlu1 %3682, %v5410_v13   ;;  %v6160_v44 = vsub.f32 %v6158_v6, %v6159_v46  ;;  %v6161_v24 = vld [vmem:[#allocation55_spill] sm:$0xff]  ;;  %v6162_v63 = vld [vmem:[#allocation56_spill] sm:$0xff] }
 0x35f   : > { %v1223_v9 = vmul.f32 1.442695, %v6157_v22  ;;  %v5481_v5 = vpop.eup %3857  ;;  %3883 = vpow2.f32 %v1581_v33  ;;  %1920 = vperm.xlu0 %3681, %v5400_v21   ;;  %v1362_v38 = vpop.permute.xlu0 %1361  ;;  %v2057_v37 = vpack.c.bf16 %v3856_v11, %v3844_v28  ;;  %v5487_v1 = vadd.f32 %v3856_v11, %v3854_v56  ;;  %v6163_v6 = vld [vmem:[#allocation96_spill] sm:$0xff] }
 0x360   : > { %v1229_v35 = vmul.f32 1.442695, %v6160_v44  ;;  %v5489_v7 = vpop.eup %3859  ;;  %3885 = vpow2.f32 %v1551_v53  ;;  %v1447_v55 = vsub.f32 %v6161_v24, %v1362_v38  ;;  %v1448_v2 = vsub.f32 %v6162_v63, %v1362_v38  ;;  %v6165_v38 = vld [vmem:[#allocation100_spill] sm:$0xff] }
 0x361   : > { %v3862_v20 = vpop.eup %3861  ;;  %3887 = vpow2.f32 %v1553_v27  ;;  %2264 = vmatprep.mubr.bf16.mxu1 %v2057_v37  ;;  %v5495_v22 = vadd.f32 %v5489_v7, %v5481_v5  ;;  %v6164_v28 = vsub.f32 %v6163_v6, %v5173_v29  ;;  %v6166_v27 = vld [vmem:[#allocation101_spill] sm:$0xff]  ;;  %v6168_v29 = vld [vmem:[#allocation59_spill] sm:$0xff] }
 0x362   : > { %v3864_v33 = vpop.eup %3863  ;;  %3889 = vpow2.f32 %v1223_v9  ;;  %v1559_v46 = vmul.f32 1.442695, %v1447_v55  ;;  %v1561_v44 = vmul.f32 1.442695, %v1448_v2  ;;  %1945 = vperm.xlu1 %3682, %v5417_v16   ;;  %v6167_v37 = vsub.f32 %v6165_v38, %v6166_v27  ;;  %v6169_v2 = vld [vmem:[#allocation60_spill] sm:$0xff] }
 0x363   : > { %v1227_v11 = vmul.f32 1.442695, %v6164_v28  ;;  %v5501_v53 = vpop.eup %3865  ;;  %3891 = vpow2.f32 %v1229_v35  ;;  %1930 = vperm.xlu0 %3681, %v5406_v15   ;;  %v1372_v63 = vpop.permute.xlu0 %1371  ;;  %v5507_v13 = vadd.f32 %v3864_v33, %v3862_v20  ;;  %v2056_v28 = vpack.c.bf16 %v3854_v56, %v5451_v17 }
 0x364   : > { %v1233_v24 = vmul.f32 1.442695, %v6167_v37  ;;  %v5509_v9 = vpop.eup %3867  ;;  %3893 = vpow2.f32 %v1559_v46  ;;  %v1451_v55 = vsub.f32 %v6168_v29, %v1372_v63  ;;  %v1452_v6 = vsub.f32 %v6169_v2, %v1372_v63  ;;  %v6170_v29 = vld [vmem:[#allocation99_spill] sm:$0xff] }
 0x365   : > { %v3870_v16 = vpop.eup %3869  ;;  %3895 = vpow2.f32 %v1561_v44  ;;  %v5516_v35 = vadd.f32 %v5509_v9, %v5501_v53  ;;  %v6171_v63 = vsub.f32 %v6170_v29, %v5195_v32 }
 0x366   : > { %v3872_v38 = vpop.eup %3871  ;;  %3897 = vpow2.f32 %v1227_v11  ;;  %v1567_v27 = vmul.f32 1.442695, %v1451_v55  ;;  %v1569_v37 = vmul.f32 1.442695, %v1452_v6  ;;  %2265 = vmatmul.mubr.bf16.gmra.mxu1 %v2056_v28  ;;  %1955 = vperm.xlu1 %3682, %v5427_v58   ;;  %v6172_v11 = vld [vmem:[#allocation63_spill] sm:$0xff]  ;;  %v6173_v6 = vld [vmem:[#allocation64_spill] sm:$0xff] }
 0x367   : > { %v5519_v46 = vpop.eup %3873  ;;  %3899 = vpow2.f32 %v1233_v24  ;;  %v1231_v56 = vmul.f32 1.442695, %v6171_v63  ;;  %1940 = vperm.xlu0 %3681, %v5414_v31   ;;  %v1382_v17 = vpop.permute.xlu0 %1381  ;;  %v2059_v44 = vpack.c.bf16 %v3872_v38, %v3864_v33  ;;  %v5525_v2 = vadd.f32 %v3872_v38, %v3870_v16 }
 0x368   : > { %v3876_v15 = vpop.eup %3875  ;;  %3901 = vpow2.f32 %v1567_v27  ;;  %v1455_v55 = vsub.f32 %v6172_v11, %v1382_v17  ;;  %v1456_v28 = vsub.f32 %v6173_v6, %v1382_v17  ;;  %v2058_v17 = vpack.c.bf16 %v3870_v16, %v3862_v20 }
 0x369   : > { %v3878_v58 = vpop.eup %3877  ;;  %3903 = vpow2.f32 %v1569_v37  ;;  %2272 = vmatprep.mubr.bf16.mxu1 %v2059_v44  ;;  %v5530_v24 = vadd.f32 %v3876_v15, %v5519_v46 }
 0x36a   : > { %v3880_v32 = vpop.eup %3879  ;;  %v1575_v29 = vmul.f32 1.442695, %v1455_v55  ;;  %v1577_v63 = vmul.f32 1.442695, %v1456_v28  ;;  %1965 = vperm.xlu1 %3682, %v5439_v59   ;;  %3905 = vpow2.f32 %v1231_v56 }
 0x36b   : > { %v3882_v33 = vpop.eup %3881  ;;  %1950 = vperm.xlu0 %3681, %v5420_v25   ;;  %v5534_v38 = vadd.f32 %v3880_v32, %v3878_v58  ;;  %v2061_v37 = vpack.c.bf16 %v5467_v49, %v3880_v32 }
 0x36c   : > { %v3884_v27 = vpop.eup %3883  ;;  %3907 = vpow2.f32 %v1575_v29 }
 0x36d   : > { %v3886_v11 = vpop.eup %3885  ;;  %3909 = vpow2.f32 %v1577_v63  ;;  %v5537_v44 = vadd.f32 %v3884_v27, %v3882_v33  ;;  %v2060_v63 = vpack.c.bf16 %v5464_v18, %v3878_v58 }
 0x36e   : > { %v3888_v6 = vpop.eup %3887  ;;  %2273 = vmatmul.mubr.bf16.gmra.mxu1 %v2058_v17  ;;  %1975 = vperm.xlu1 %3682, %v5442_v10   ;;  %v2062_v58 = vpack.c.bf16 %v5481_v5, %v3886_v11 }
 0x36f   : > { %v5540_v55 = vpop.eup %3889  ;;  %2280 = vmatprep.mubr.bf16.mxu1 %v2061_v37  ;;  %1960 = vperm.xlu0 %3681, %v5432_v19   ;;  %v5543_v56 = vadd.f32 %v3888_v6, %v3886_v11  ;;  %v2063_v37 = vpack.c.bf16 %v5489_v7, %v3888_v6 }
 0x370   : > { %6174 = vst [vmem:[#allocation87_spill] sm:$0xff] %v5540_v55  ;;  %v5545_v28 = vpop.eup %3891 }
 0x371   : > { %6175 = vst [vmem:[#allocation88_spill] sm:$0xff] %v5545_v28  ;;  %v3894_v16 = vpop.eup %3893 }
 0x372   : > { %v3896_v20 = vpop.eup %3895  ;;  %1985 = vperm.xlu1 %3682, %v5545_v28   ;;  %v2064_v7 = vpack.c.bf16 %v5501_v53, %v3894_v16 }
 0x373   : > { %v5548_v49 = vpop.eup %3897  ;;  %1970 = vperm.xlu0 %3681, %v5540_v55   ;;  %v5551_v32 = vadd.f32 %v3896_v20, %v3894_v16  ;;  %v2065_v18 = vpack.c.bf16 %v5509_v9, %v3896_v20 }
 0x374   : > { %v5553_v29 = vpop.eup %3899 }
 0x375   : > { %6176 = vst [vmem:[#allocation89_spill] sm:$0xff] %v5553_v29  ;;  %v3902_v17 = vpop.eup %3901 }
 0x376   : > { %v3904_v10 = vpop.eup %3903  ;;  %2281 = vmatmul.mubr.bf16.gmra.mxu1 %v2060_v63  ;;  %1995 = vperm.xlu1 %3682, %v5553_v29   ;;  %v2066_v63 = vpack.c.bf16 %v5519_v46, %v3902_v17 }
 0x377   : > { %2288 = vmatprep.mubr.bf16.mxu1 %v2063_v37  ;;  %1980 = vperm.xlu0 %3681, %v5548_v49   ;;  %v5559_v28 = vadd.f32 %v3904_v10, %v3902_v17  ;;  %v5561_v59 = vpop.eup %3905  ;;  %v2067_v6 = vpack.c.bf16 %v3876_v15, %v3904_v10  ;;  %v6179_v15 = vld [vmem:[#allocation72_spill] sm:$0xff] }
 0x379   : > { %v3908_v55 = vpop.eup %3907 }
 0x37a   : > { %v3910_v19 = vpop.eup %3909  ;;  %v2068_v29 = vpack.c.bf16 %v3882_v33, %v3908_v55 }
 0x37b   : > { %1990 = vperm.xlu0 %3681, %v5561_v59   ;;  %v5564_v25 = vadd.f32 %v3910_v19, %v3908_v55  ;;  %v2069_v37 = vpack.c.bf16 %v3884_v27, %v3910_v19  ;;  %v6180_v19 = vld [vmem:[#allocation75_spill] sm:$0xff]  ;;  %v1818_v27 = vld [vmem:[#allocation5 + $0xd8] sm:$0xff] }
 0x37e   : > { %2289 = vmatmul.mubr.bf16.gmra.mxu1 %v2062_v58 }
 0x37f   : > { %2296 = vmatprep.mubr.bf16.mxu1 %v2065_v18 }
 0x386   : > { %2297 = vmatmul.mubr.bf16.gmra.mxu1 %v2064_v7 }
 0x387   : > { %2304 = vmatprep.mubr.bf16.mxu1 %v2067_v6 }
 0x38e   : > { %2305 = vmatmul.mubr.bf16.gmra.mxu1 %v2066_v63  ;;  %v1820_v63 = vld [vmem:[#allocation5 + $0x50] sm:$0xff] }
 0x38f   : > { %2312 = vmatprep.mubr.bf16.mxu1 %v2069_v37 }
 0x396   : > { %2313 = vmatmul.mubr.bf16.gmra.mxu1 %v2068_v29 }
 0x39a   : > { %1656 = vadd.xlane.f32.xlu0 %v5228_v50  ;;  %1659 = vadd.xlane.f32.xlu1 %v5232_v54  ;;  %v6177_v54 = vld [vmem:[#allocation77_spill] sm:$0xff] }
 0x39e   : > { %1662 = vadd.xlane.f32.xlu0 %v5236_v4  ;;  %1668 = vadd.xlane.f32.xlu1 %v5244_v39 }
 0x3a2   : > { %1665 = vadd.xlane.f32.xlu0 %v5240_v26  ;;  %1674 = vadd.xlane.f32.xlu1 %v5252_v60  ;;  %v6178_v26 = vld [vmem:[#allocation79_spill] sm:$0xff]  ;;  %v1816_v60 = vld [vmem:[#allocation5 + $0xb0] sm:$0xff] }
 0x3a6   : > { %1671 = vadd.xlane.f32.xlu0 %v5248_v40  ;;  %1680 = vadd.xlane.f32.xlu1 %v5258_v36 }
 0x3aa   : > { %1677 = vadd.xlane.f32.xlu0 %v5256_v0  ;;  %1686 = vadd.xlane.f32.xlu1 %v5262_v57 }
 0x3ae   : > { %1683 = vadd.xlane.f32.xlu0 %v5260_v3  ;;  %1692 = vadd.xlane.f32.xlu1 %v5430_v45 }
 0x3b1   : > { %v1397_v50 = vpop.permute.xlu1 %1396 }
 0x3b2   : > { %1689 = vadd.xlane.f32.xlu0 %v5264_v14  ;;  %1698 = vadd.xlane.f32.xlu1 %v5454_v52  ;;  %v1461_v4 = vsub.f32 %v6177_v54, %v1397_v50  ;;  %v1462_v39 = vsub.f32 %v6178_v26, %v1397_v50 }
 0x3b4   : > { %v1587_v40 = vmul.f32 1.442695, %v1461_v4  ;;  %v1589_v3 = vmul.f32 1.442695, %v1462_v39 }
 0x3b5   : > { %v1851_v0 = vpop.permute.xlu1 %1850 }
 0x3b6   : > { %1695 = vadd.xlane.f32.xlu0 %v5446_v61  ;;  %1704 = vadd.xlane.f32.xlu1 %v5461_v30  ;;  %v2008_v61 = vmul.f32 %v1851_v0, %v1816_v60  ;;  %v1817_v30 = vld [vmem:[#allocation5] sm:$0xff]  ;;  %3911 = vpow2.f32 %v1587_v40  ;;  %v1821_v40 = vld [vmem:[#allocation5 + $0x68] sm:$0xff] }
 0x3b7   : > { %3913 = vpow2.f32 %v1589_v3 }
 0x3b9   : > { %v1861_v9 = vpop.permute.xlu1 %1860 }
 0x3ba   : > { %1701 = vadd.xlane.f32.xlu0 %v5471_v12  ;;  %1710 = vadd.xlane.f32.xlu1 %v5507_v13  ;;  %v2010_v20 = vmul.f32 %v1861_v9, %v1818_v27 }
 0x3bd   : > { %v3449_v36 = vpop.f32.mrf.mxu1  ;;  %v1866_v29 = vpop.permute.xlu1 %1865 }
 0x3be   : > { %1707 = vadd.xlane.f32.xlu0 %v5487_v1  ;;  %1716 = vadd.xlane.f32.xlu1 %v5534_v38  ;;  %v1392_v57 = vpop.permute.xlu0 %1391 }
 0x3bf   : > { %v3450_v14 = vpop.f32.mrf.mxu1  ;;  %v1459_v45 = vsub.f32 %v6179_v15, %v1392_v57  ;;  %v1460_v10 = vsub.f32 %v6180_v19, %v1392_v57 }
 0x3c0   : > { %v3451_v52 = vadd.f32 %v3450_v14, %v3449_v36 }
 0x3c1   : > { %v1583_v13 = vmul.f32 1.442695, %v1459_v45  ;;  %v1585_v12 = vmul.f32 1.442695, %v1460_v10  ;;  %v3452_v5 = vpop.f32.mrf.mxu1  ;;  %v1876_v60 = vpop.permute.xlu1 %1875  ;;  %v1822_v10 = vld [vmem:[#allocation5 + $0x30] sm:$0xff] }
 0x3c2   : > { %v2329_v53 = vadd.f32 %v3451_v52, %v2008_v61  ;;  %1713 = vadd.xlane.f32.xlu0 %v5525_v2  ;;  %1722 = vadd.xlane.f32.xlu1 %v5543_v56  ;;  %v1856_v1 = vpop.permute.xlu0 %1855  ;;  %v1819_v56 = vld [vmem:[#allocation5 + $0x18] sm:$0xff]  ;;  %v2013_v45 = vmul.f32 %v1876_v60, %v1821_v40 }
 0x3c3   : > { %3915 = vpow2.f32 %v1583_v13  ;;  %v3453_v46 = vpop.f32.mrf.mxu1  ;;  %v2009_v33 = vmul.f32 %v1856_v1, %v1817_v30  ;;  %v2011_v7 = vmul.f32 %v1866_v29, %v1819_v56  ;;  %v1825_v29 = vld [vmem:[#allocation5 + $0x88] sm:$0xff] }
 0x3c4   : > { %2361 = vst [vmem:[#allocation5 + $0xb0] sm:$0xff] %v2329_v53  ;;  %3917 = vpow2.f32 %v1585_v12  ;;  %v3454_v38 = vadd.f32 %v3453_v46, %v3452_v5 }
 0x3c5   : > { %v3455_v11 = vpop.f32.mrf.mxu1  ;;  %v1886_v5 = vpop.permute.xlu1 %1885 }
 0x3c6   : > { %v2330_v55 = vadd.f32 %v3454_v38, %v2009_v33  ;;  %1719 = vadd.xlane.f32.xlu0 %v5475_v23  ;;  %1728 = vadd.xlane.f32.xlu1 %v5551_v32  ;;  %v1871_v23 = vpop.permute.xlu0 %1870  ;;  %v3912_v32 = vpop.eup %3911  ;;  %v1824_v38 = vld [vmem:[#allocation5 + $0x80] sm:$0xff] }
 0x3c7   : > { %v3456_v16 = vpop.f32.mrf.mxu1  ;;  %v3914_v54 = vpop.eup %3913  ;;  %v2012_v39 = vmul.f32 %v1871_v23, %v1820_v63 }
 0x3c8   : > { %2362 = vst [vmem:[#allocation5] sm:$0xff] %v2330_v55  ;;  %v3457_v2 = vadd.f32 %v3456_v16, %v3455_v11 }
 0x3c9   : > { %v3458_v17 = vpop.f32.mrf.mxu1 }
 0x3ca   : > { %v2331_v58 = vadd.f32 %v3457_v2, %v2010_v20  ;;  %1725 = vadd.xlane.f32.xlu0 %v5495_v22  ;;  %1734 = vadd.xlane.f32.xlu1 %v5559_v28  ;;  %v1881_v61 = vpop.permute.xlu0 %1880 }
 0x3cb   : > { %v3459_v18 = vpop.f32.mrf.mxu1  ;;  %v2014_v13 = vmul.f32 %v1881_v61, %v1822_v10 }
 0x3cc   : > { %2363 = vst [vmem:[#allocation5 + $0xd8] sm:$0xff] %v2331_v58  ;;  %v3460_v6 = vadd.f32 %v3459_v18, %v3458_v17  ;;  %v1896_v17 = vpop.permute.xlu1 %1895 }
 0x3cd   : > { %v3461_v37 = vpop.f32.mrf.mxu1  ;;  %v2017_v63 = vmul.f32 %v1896_v17, %v1825_v29  ;;  %v1592_v17 = vld [vmem:[#allocation4 + $0x8] sm:$0xff] }
 0x3ce   : > { %v2332_v50 = vadd.f32 %v3460_v6, %v2011_v7  ;;  %1731 = vadd.xlane.f32.xlu0 %v5516_v35  ;;  %1740 = vadd.xlane.f32.xlu1 %v5564_v25  ;;  %v6181_v35 = vsub.f32 %v5299_v48, %v5311_v41  ;;  %v1748_v48 = vadd.f32 %v3914_v54, %v3912_v32  ;;  %v1823_v41 = vld [vmem:[#allocation5 + $0x48] sm:$0xff]  ;;  %v1891_v27 = vpop.permute.xlu0 %1890 }
 0x3cf   : > { %v3462_v4 = vpop.f32.mrf.mxu1  ;;  %v2015_v46 = vmul.f32 %v1886_v5, %v1823_v41  ;;  %v2016_v2 = vmul.f32 %v1891_v27, %v1824_v38 }
 0x3d0   : > { %v3916_v26 = vpop.eup %3915  ;;  %2364 = vst [vmem:[#allocation5 + $0x18] sm:$0xff] %v2332_v50  ;;  %v3463_v22 = vadd.f32 %v3462_v4, %v3461_v37  ;;  %v1237_v25 = vmul.f32 1.442695, %v6181_v35  ;;  %v1826_v37 = vld [vmem:[#allocation5 + $0xe8] sm:$0xff] }
 0x3d1   : > { %v3918_v28 = vpop.eup %3917  ;;  %v3464_v0 = vpop.f32.mrf.mxu1  ;;  %v2070_v36 = vpack.c.bf16 %v3912_v32, %v3916_v26 }
 0x3d2   : > { %v2333_v3 = vadd.f32 %v3463_v22, %v2012_v39  ;;  %1737 = vadd.xlane.f32.xlu0 %v5530_v24  ;;  %v2071_v57 = vpack.c.bf16 %v3914_v54, %v3918_v28  ;;  %v1745_v14 = vadd.f32 %v3918_v28, %v3916_v26  ;;  %3919 = vpow2.f32 %v1237_v25  ;;  %v1901_v32 = vpop.permute.xlu0 %1900  ;;  %v1827_v26 = vld [vmem:[#allocation5 + $0xb8] sm:$0xff]  ;;  %v1906_v39 = vpop.permute.xlu1 %1905 }
 0x3d3   : > { %v3465_v15 = vpop.f32.mrf.mxu1  ;;  %v2018_v54 = vmul.f32 %v1901_v32, %v1826_v37  ;;  %v2019_v60 = vmul.f32 %v1906_v39, %v1827_v26  ;;  %v1624_v32 = vmul.f32 %v5332_v62, %v1592_v17  ;;  %v1593_v26 = vld [vmem:[#allocation4 + $0x10] sm:$0xff] }
 0x3d4   : > { %2365 = vst [vmem:[#allocation5 + $0x50] sm:$0xff] %v2333_v3  ;;  %v3466_v19 = vadd.f32 %v3465_v15, %v3464_v0  ;;  %2320 = vmatprep.mubr.bf16.mxu1 %v2071_v57  ;;  %1746 = vadd.xlane.f32.xlu1 %v1745_v14 }
 0x3d5   : > { %v3467_v52 = vpop.f32.mrf.mxu1  ;;  %2321 = vmatmul.mubr.bf16.gmra.mxu1 %v2070_v36 }
 0x3d6   : > { %v2334_v30 = vadd.f32 %v3466_v19, %v2013_v45  ;;  %1743 = vadd.xlane.f32.xlu0 %v5537_v44  ;;  %v6182_v44 = vsub.f32 %v5360_v42, %v5374_v51  ;;  %v1916_v57 = vpop.permute.xlu1 %1915  ;;  %v1911_v14 = vpop.permute.xlu0 %1910 }
 0x3d7   : > { %v3468_v24 = vpop.f32.mrf.mxu1 }
 0x3d8   : > { %2366 = vst [vmem:[#allocation5 + $0x68] sm:$0xff] %v2334_v30  ;;  %v3469_v12 = vadd.f32 %v3468_v24, %v3467_v52  ;;  %v1235_v55 = vmul.f32 1.442695, %v6182_v44 }
 0x3d9   : > { %v3470_v53 = vpop.f32.mrf.mxu1 }
 0x3da   : > { %v2335_v1 = vadd.f32 %v3469_v12, %v2014_v13  ;;  %1749 = vadd.xlane.f32.xlu0 %v1748_v48  ;;  %3921 = vpow2.f32 %v1235_v55  ;;  %v1926_v35 = vpop.permute.xlu1 %1925  ;;  %v1921_v25 = vpop.permute.xlu0 %1920  ;;  %v1828_v48 = vld [vmem:[#allocation5 + $0x60] sm:$0xff] }
 0x3db   : > { %v3471_v9 = vpop.f32.mrf.mxu1 }
 0x3dc   : > { %2367 = vst [vmem:[#allocation5 + $0x30] sm:$0xff] %v2335_v1  ;;  %v3472_v33 = vadd.f32 %v3471_v9, %v3470_v53  ;;  %v2020_v53 = vmul.f32 %v1911_v14, %v1828_v48  ;;  %v1597_v48 = vld [vmem:[#allocation4 + $0x30] sm:$0xff] }
 0x3dd   : > { %v3473_v11 = vpop.f32.mrf.mxu1 }
 0x3de   : > { %v2336_v16 = vadd.f32 %v3472_v33, %v2015_v46  ;;  %v5616_v15 = vpop.permute.xlu1 %1935  ;;  %v5618_v45 = vpop.permute.xlu0 %1930  ;;  %v1829_v33 = vld [vmem:[#allocation5 + $0xf0] sm:$0xff] }
 0x3df   : > { %v3474_v20 = vpop.f32.mrf.mxu1  ;;  %v5610_v6 = vpop.eup %3919  ;;  %v2021_v44 = vmul.f32 %v1916_v57, %v1829_v33 }
 0x3e0   : > { %2368 = vst [vmem:[#allocation5 + $0x48] sm:$0xff] %v2336_v16  ;;  %v3475_v56 = vadd.f32 %v3474_v20, %v3473_v11  ;;  %v1830_v16 = vld [vmem:[#allocation5 + $0x8] sm:$0xff] }
 0x3e1   : > { %v3476_v58 = vpop.f32.mrf.mxu1 }
 0x3e2   : > { %v2337_v18 = vadd.f32 %v3475_v56, %v2016_v2  ;;  %v5620_v19 = vpop.permute.xlu1 %1945  ;;  %v5622_v10 = vpop.permute.xlu0 %1940 }
 0x3e3   : > { %v3477_v7 = vpop.f32.mrf.mxu1 }
 0x3e4   : > { %2369 = vst [vmem:[#allocation5 + $0x80] sm:$0xff] %v2337_v18  ;;  %v3478_v23 = vadd.f32 %v3477_v7, %v3476_v58  ;;  %v1591_v58 = vld [vmem:[#allocation4] sm:$0xff]  ;;  %v2022_v7 = vmul.f32 %v1921_v25, %v1830_v16 }
 0x3e5   : > { %v3479_v42 = vpop.f32.mrf.mxu1  ;;  %2005 = vperm.xlu1 %3682, %v5610_v6  }
 0x3e6   : > { %v2338_v51 = vadd.f32 %v3478_v23, %v2017_v63  ;;  %v5624_v61 = vpop.permute.xlu1 %1955  ;;  %v5626_v52 = vpop.permute.xlu0 %1950  ;;  %v1831_v23 = vld [vmem:[#allocation5 + $0x78] sm:$0xff] }
 0x3e7   : > { %v3480_v50 = vpop.f32.mrf.mxu1  ;;  %v5613_v3 = vpop.eup %3921 }
 0x3e8   : > { %2370 = vst [vmem:[#allocation5 + $0x88] sm:$0xff] %v2338_v51  ;;  %v3481_v4 = vadd.f32 %v3480_v50, %v3479_v42  ;;  %v1623_v42 = vmul.f32 %v5327_v43, %v1591_v58  ;;  %v1625_v43 = vmul.f32 %v5337_v8, %v1593_v26  ;;  %v1629_v8 = vmul.f32 %v5357_v47, %v1597_v48  ;;  %v1598_v26 = vld [vmem:[#allocation4 + $0x38] sm:$0xff] }
 0x3e9   : > { %v3482_v22 = vpop.f32.mrf.mxu1 }
 0x3ea   : > { %v2339_v28 = vadd.f32 %v3481_v4, %v2018_v54  ;;  %v5628_v30 = vpop.permute.xlu1 %1965  ;;  %v5630_v24 = vpop.permute.xlu0 %1960  ;;  %v1595_v4 = vld [vmem:[#allocation4 + $0x20] sm:$0xff] }
 0x3eb   : > { %v3483_v40 = vpop.f32.mrf.mxu1  ;;  %v1627_v62 = vmul.f32 %v5348_v34, %v1595_v4  ;;  %v1601_v4 = vld [vmem:[#allocation4 + $0x50] sm:$0xff] }
 0x3ec   : > { %2371 = vst [vmem:[#allocation5 + $0xe8] sm:$0xff] %v2339_v28  ;;  %v3484_v0 = vadd.f32 %v3483_v40, %v3482_v22  ;;  %v2023_v40 = vmul.f32 %v1926_v35, %v1831_v23  ;;  %v6184_v23 = vld [vmem:[#allocation70_spill] sm:$0xff] }
 0x3ee   : > { %v2340_v36 = vadd.f32 %v3484_v0, %v2019_v60  ;;  %v5632_v13 = vpop.permute.xlu1 %1975  ;;  %v5634_v12 = vpop.permute.xlu0 %1970  ;;  %v1832_v0 = vld [vmem:[#allocation5 + $0x38] sm:$0xff] }
 0x3f0   : > { %2372 = vst [vmem:[#allocation5 + $0xb8] sm:$0xff] %v2340_v36  ;;  %2000 = vperm.xlu0 %3681, %v5613_v3  }
 0x3f2   : > { %v5636_v1 = vpop.permute.xlu1 %1985  ;;  %v5638_v9 = vpop.permute.xlu0 %1980 }
 0x3f6   : > { %v5640_v2 = vpop.permute.xlu1 %1995  ;;  %v5642_v56 = vpop.permute.xlu0 %1990 }
 0x416   : > { %v3485_v41 = vpop.f32.mrf.mxu1 }
 0x418   : > { %v3486_v5 = vpop.f32.mrf.mxu1 }
 0x419   : > { %v3487_v46 = vadd.f32 %v3486_v5, %v3485_v41  ;;  %v1594_v41 = vld [vmem:[#allocation4 + $0x18] sm:$0xff] }
 0x41a   : > { %v3488_v38 = vpop.f32.mrf.mxu1 }
 0x41b   : > { %v2341_v27 = vadd.f32 %v3487_v46, %v2020_v53  ;;  %v2024_v46 = vmul.f32 %v5618_v45, %v1832_v0 }
 0x41c   : > { %v3489_v11 = vpop.f32.mrf.mxu1 }
 0x41d   : > { %2373 = vst [vmem:[#allocation5 + $0x60] sm:$0xff] %v2341_v27  ;;  %v3490_v55 = vadd.f32 %v3489_v11, %v3488_v38  ;;  %v1833_v38 = vld [vmem:[#allocation5 + $0x58] sm:$0xff]  ;;  %v6183_v27 = vld [vmem:[#allocation67_spill] sm:$0xff] }
 0x41e   : > { %v3491_v20 = vpop.f32.mrf.mxu1  ;;  %v1626_v11 = vmul.f32 %v6183_v27, %v1594_v41  ;;  %v1603_v41 = vld [vmem:[#allocation4 + $0x60] sm:$0xff] }
 0x41f   : > { %v2342_v29 = vadd.f32 %v3490_v55, %v2021_v44 }
 0x420   : > { %v3492_v18 = vpop.f32.mrf.mxu1 }
 0x421   : > { %2374 = vst [vmem:[#allocation5 + $0xf0] sm:$0xff] %v2342_v29  ;;  %v3493_v63 = vadd.f32 %v3492_v18, %v3491_v20  ;;  %v1599_v20 = vld [vmem:[#allocation4 + $0x40] sm:$0xff]  ;;  %v1596_v29 = vld [vmem:[#allocation4 + $0x28] sm:$0xff]  ;;  %v2025_v18 = vmul.f32 %v5616_v15, %v1833_v38 }
 0x422   : > { %v3494_v37 = vpop.f32.mrf.mxu1  ;;  %v1836_v38 = vld [vmem:[#allocation5 + $0xe0] sm:$0xff] }
 0x423   : > { %v2343_v51 = vadd.f32 %v3493_v63, %v2022_v7  ;;  %v1660_v50 = vpop.xlane.xlu1 %1659  ;;  %v1657_v54 = vpop.xlane.xlu0 %1656  ;;  %v1834_v63 = vld [vmem:[#allocation5 + $0x40] sm:$0xff] }
 0x424   : > { %v1752_v39 = vadd.f32 %v1660_v50, %v1624_v32  ;;  %v3495_v22 = vpop.f32.mrf.mxu1  ;;  %v1751_v28 = vadd.f32 %v1657_v54, %v1623_v42  ;;  %v6185_v32 = vld [vmem:[#allocation68_spill] sm:$0xff] }
 0x425   : > { %2375 = vst [vmem:[#allocation5 + $0x8] sm:$0xff] %v2343_v51  ;;  %v3496_v60 = vadd.f32 %v3495_v22, %v3494_v37  ;;  %v1631_v37 = vmul.f32 %v6184_v23, %v1599_v20  ;;  %v1628_v42 = vmul.f32 %v6185_v32, %v1596_v29  ;;  %v1605_v29 = vld [vmem:[#allocation4 + $0x70] sm:$0xff] }
 0x426   : > { %1785 = vst.msk [vmem:[#allocation4 + $0x8] sm:$0xff] %vm1783_vm1, %v1752_v39  ;;  %1784 = vst.msk [vmem:[#allocation4] sm:$0xff] %vm1783_vm1, %v1751_v28  ;;  %v3497_v36 = vpop.f32.mrf.mxu1  ;;  %v2026_v28 = vmul.f32 %v5622_v10, %v1834_v63  ;;  %v1837_v63 = vld [vmem:[#allocation5 + $0x90] sm:$0xff]  ;;  %v1637_v23 = vmul.f32 %v5400_v21, %v1605_v29 }
 0x427   : > { %v2344_v57 = vadd.f32 %v3496_v60, %v2023_v40  ;;  %v1669_v14 = vpop.xlane.xlu1 %1668  ;;  %v1663_v25 = vpop.xlane.xlu0 %1662  ;;  %v1835_v60 = vld [vmem:[#allocation5 + $0xc8] sm:$0xff] }
 0x428   : > { %v1755_v5 = vadd.f32 %v1669_v14, %v1627_v62  ;;  %v3498_v53 = vpop.f32.mrf.mxu1  ;;  %v1753_v35 = vadd.f32 %v1663_v25, %v1625_v43  ;;  %v6187_v43 = vld [vmem:[#allocation69_spill] sm:$0xff] }
 0x429   : > { %2376 = vst [vmem:[#allocation5 + $0x78] sm:$0xff] %v2344_v57  ;;  %v3499_v33 = vadd.f32 %v3498_v53, %v3497_v36  ;;  %v6186_v36 = vld [vmem:[#allocation73_spill] sm:$0xff]  ;;  %v1630_v57 = vmul.f32 %v6187_v43, %v1598_v26 }
 0x42a   : > { %1788 = vst.msk [vmem:[#allocation4 + $0x20] sm:$0xff] %vm1783_vm1, %v1755_v5  ;;  %1786 = vst.msk [vmem:[#allocation4 + $0x10] sm:$0xff] %vm1783_vm1, %v1753_v35  ;;  %v3500_v34 = vpop.f32.mrf.mxu1  ;;  %v1633_v62 = vmul.f32 %v6186_v36, %v1601_v4  ;;  %v1600_v5 = vld [vmem:[#allocation4 + $0x48] sm:$0xff] }
 0x42b   : > { %v2345_v44 = vadd.f32 %v3499_v33, %v2024_v46  ;;  %v1675_v55 = vpop.xlane.xlu1 %1674  ;;  %v1666_v16 = vpop.xlane.xlu0 %1665  ;;  %v2027_v46 = vmul.f32 %v5620_v19, %v1835_v60  ;;  %v1604_v4 = vld [vmem:[#allocation4 + $0x68] sm:$0xff] }
 0x42c   : > { %v1757_v17 = vadd.f32 %v1675_v55, %v1629_v8  ;;  %v3501_v58 = vpop.f32.mrf.mxu1  ;;  %v1754_v45 = vadd.f32 %v1666_v16, %v1626_v11  ;;  %v6188_v8 = vld [vmem:[#allocation76_spill] sm:$0xff]  ;;  %v6189_v11 = vld [vmem:[#allocation71_spill] sm:$0xff] }
 0x42d   : > { %2377 = vst [vmem:[#allocation5 + $0x38] sm:$0xff] %v2345_v44  ;;  %v3502_v7 = vadd.f32 %v3501_v58, %v3500_v34  ;;  %v1635_v27 = vmul.f32 %v6188_v8, %v1603_v41  ;;  %v1632_v44 = vmul.f32 %v6189_v11, %v1600_v5  ;;  %v1611_v11 = vld [vmem:[#allocation4 + $0xa0] sm:$0xff] }
 0x42e   : > { %1790 = vst.msk [vmem:[#allocation4 + $0x30] sm:$0xff] %vm1783_vm1, %v1757_v17  ;;  %1787 = vst.msk [vmem:[#allocation4 + $0x18] sm:$0xff] %vm1783_vm1, %v1754_v45  ;;  %v3503_v47 = vpop.f32.mrf.mxu1  ;;  %v1602_v17 = vld [vmem:[#allocation4 + $0x58] sm:$0xff] }
 0x42f   : > { %v2346_v51 = vadd.f32 %v3502_v7, %v2025_v18  ;;  %v1681_v50 = vpop.xlane.xlu1 %1680  ;;  %v1672_v54 = vpop.xlane.xlu0 %1671  ;;  %v2028_v18 = vmul.f32 %v5626_v52, %v1836_v38 }
 0x430   : > { %v1759_v39 = vadd.f32 %v1681_v50, %v1631_v37  ;;  %v3504_v22 = vpop.f32.mrf.mxu1  ;;  %v1756_v15 = vadd.f32 %v1672_v54, %v1628_v42  ;;  %v6190_v37 = vld [vmem:[#allocation74_spill] sm:$0xff]  ;;  %v1607_v54 = vld [vmem:[#allocation4 + $0x80] sm:$0xff] }
 0x431   : > { %2378 = vst [vmem:[#allocation5 + $0x58] sm:$0xff] %v2346_v51  ;;  %v3505_v40 = vadd.f32 %v3504_v22, %v3503_v47  ;;  %v1634_v32 = vmul.f32 %v6190_v37, %v1602_v17  ;;  %v2029_v22 = vmul.f32 %v5624_v61, %v1837_v63  ;;  %v1840_v17 = vld [vmem:[#allocation5 + $0xa8] sm:$0xff]  ;;  %v1610_v37 = vld [vmem:[#allocation4 + $0x98] sm:$0xff] }
 0x432   : > { %1792 = vst.msk [vmem:[#allocation4 + $0x40] sm:$0xff] %vm1783_vm1, %v1759_v39  ;;  %1789 = vst.msk [vmem:[#allocation4 + $0x28] sm:$0xff] %vm1783_vm1, %v1756_v15  ;;  %v3506_v0 = vpop.f32.mrf.mxu1 }
 0x433   : > { %v2347_v14 = vadd.f32 %v3505_v40, %v2026_v28  ;;  %v1687_v25 = vpop.xlane.xlu1 %1686  ;;  %v1678_v48 = vpop.xlane.xlu0 %1677  ;;  %v1838_v28 = vld [vmem:[#allocation5 + $0x70] sm:$0xff] }
 0x434   : > { %v1761_v53 = vadd.f32 %v1687_v25, %v1633_v62  ;;  %v3507_v35 = vpop.f32.mrf.mxu1  ;;  %v1758_v10 = vadd.f32 %v1678_v48, %v1630_v57  ;;  %v6191_v40 = vld [vmem:[#allocation81_spill] sm:$0xff]  ;;  %v1606_v25 = vld [vmem:[#allocation4 + $0x78] sm:$0xff]  ;;  %v2030_v5 = vmul.f32 %v5630_v24, %v1838_v28 }
 0x435   : > { %2379 = vst [vmem:[#allocation5 + $0x40] sm:$0xff] %v2347_v14  ;;  %v3508_v33 = vadd.f32 %v3507_v35, %v3506_v0  ;;  %v1639_v60 = vmul.f32 %v6191_v40, %v1607_v54  ;;  %v6192_v0 = vld [vmem:[#allocation78_spill] sm:$0xff]  ;;  %v1609_v14 = vld [vmem:[#allocation4 + $0x90] sm:$0xff]  ;;  %v1839_v35 = vld [vmem:[#allocation5 + $0xc0] sm:$0xff] }
 0x436   : > { %1794 = vst.msk [vmem:[#allocation4 + $0x50] sm:$0xff] %vm1783_vm1, %v1761_v53  ;;  %1791 = vst.msk [vmem:[#allocation4 + $0x38] sm:$0xff] %vm1783_vm1, %v1758_v10  ;;  %v3509_v34 = vpop.f32.mrf.mxu1  ;;  %v1636_v36 = vmul.f32 %v6192_v0, %v1604_v4  ;;  %v1841_v54 = vld [vmem:[#allocation5 + $0xd0] sm:$0xff]  ;;  %v1615_v40 = vld [vmem:[#allocation4 + $0xc0] sm:$0xff] }
 0x437   : > { %v2348_v55 = vadd.f32 %v3508_v33, %v2027_v46  ;;  %v1693_v16 = vpop.xlane.xlu1 %1692  ;;  %v1684_v20 = vpop.xlane.xlu0 %1683  ;;  %v1641_v46 = vmul.f32 %v5414_v31, %v1609_v14  ;;  %v6193_v33 = vld [vmem:[#allocation80_spill] sm:$0xff] }
 0x438   : > { %v1763_v58 = vadd.f32 %v1693_v16, %v1635_v27  ;;  %v3510_v45 = vpop.f32.mrf.mxu1  ;;  %v1760_v19 = vadd.f32 %v1684_v20, %v1632_v44  ;;  %v1638_v38 = vmul.f32 %v6193_v33, %v1606_v25  ;;  %v1608_v44 = vld [vmem:[#allocation4 + $0x88] sm:$0xff]  ;;  %v2031_v20 = vmul.f32 %v5628_v30, %v1839_v35  ;;  %v6198_v25 = vld [vmem:[#allocation87_spill] sm:$0xff] }
 0x439   : > { %2380 = vst [vmem:[#allocation5 + $0xc8] sm:$0xff] %v2348_v55  ;;  %v3511_v7 = vadd.f32 %v3510_v45, %v3509_v34 }
 0x43a   : > { %1796 = vst.msk [vmem:[#allocation4 + $0x60] sm:$0xff] %vm1783_vm1, %v1763_v58  ;;  %1793 = vst.msk [vmem:[#allocation4 + $0x48] sm:$0xff] %vm1783_vm1, %v1760_v19  ;;  %v3512_v47 = vpop.f32.mrf.mxu1  ;;  %v6194_v58 = vld [vmem:[#allocation84_spill] sm:$0xff]  ;;  %v6195_v19 = vld [vmem:[#allocation82_spill] sm:$0xff] }
 0x43b   : > { %v2349_v42 = vadd.f32 %v3511_v7, %v2028_v18  ;;  %v1699_v51 = vpop.xlane.xlu1 %1698  ;;  %v1690_v50 = vpop.xlane.xlu0 %1689  ;;  %v1643_v45 = vmul.f32 %v6194_v58, %v1611_v11  ;;  %v1640_v18 = vmul.f32 %v6195_v19, %v1608_v44 }
 0x43c   : > { %v1765_v26 = vadd.f32 %v1699_v51, %v1637_v23  ;;  %v3513_v39 = vpop.f32.mrf.mxu1  ;;  %v1762_v52 = vadd.f32 %v1690_v50, %v1634_v32  ;;  %v1613_v23 = vld [vmem:[#allocation4 + $0xb0] sm:$0xff]  ;;  %v2032_v51 = vmul.f32 %v5634_v12, %v1840_v17  ;;  %v1619_v17 = vld [vmem:[#allocation4 + $0xe0] sm:$0xff] }
 0x43d   : > { %2381 = vst [vmem:[#allocation5 + $0xe0] sm:$0xff] %v2349_v42  ;;  %v3514_v15 = vadd.f32 %v3513_v39, %v3512_v47 }
 0x43e   : > { %1798 = vst.msk [vmem:[#allocation4 + $0x70] sm:$0xff] %vm1783_vm1, %v1765_v26  ;;  %1795 = vst.msk [vmem:[#allocation4 + $0x58] sm:$0xff] %vm1783_vm1, %v1762_v52  ;;  %v3515_v21 = vpop.f32.mrf.mxu1  ;;  %v6196_v26 = vld [vmem:[#allocation86_spill] sm:$0xff]  ;;  %v6197_v52 = vld [vmem:[#allocation83_spill] sm:$0xff] }
 0x43f   : > { %v2350_v62 = vadd.f32 %v3514_v15, %v2029_v22  ;;  %v1705_v43 = vpop.xlane.xlu1 %1704  ;;  %v1696_v57 = vpop.xlane.xlu0 %1695  ;;  %v1645_v39 = vmul.f32 %v6196_v26, %v1613_v23  ;;  %v1642_v22 = vmul.f32 %v6197_v52, %v1610_v37  ;;  %v1621_v26 = vld [vmem:[#allocation4 + $0xf0] sm:$0xff]  ;;  %v6202_v52 = vld [vmem:[#allocation88_spill] sm:$0xff] }
 0x440   : > { %v1767_v48 = vadd.f32 %v1705_v43, %v1639_v60  ;;  %v3516_v41 = vpop.f32.mrf.mxu1  ;;  %v1764_v61 = vadd.f32 %v1696_v57, %v1636_v36  ;;  %v1612_v60 = vld [vmem:[#allocation4 + $0xa8] sm:$0xff]  ;;  %v1842_v57 = vld [vmem:[#allocation5 + $0x10] sm:$0xff] }
 0x441   : > { %2382 = vst [vmem:[#allocation5 + $0x90] sm:$0xff] %v2350_v62  ;;  %v3517_v53 = vadd.f32 %v3516_v41, %v3515_v21  ;;  %v2033_v62 = vmul.f32 %v5632_v13, %v1841_v54  ;;  %v6199_v41 = vld [vmem:[#allocation85_spill] sm:$0xff] }
 0x442   : > { %1800 = vst.msk [vmem:[#allocation4 + $0x80] sm:$0xff] %vm1783_vm1, %v1767_v48  ;;  %1797 = vst.msk [vmem:[#allocation4 + $0x68] sm:$0xff] %vm1783_vm1, %v1764_v61  ;;  %v3518_v10 = vpop.f32.mrf.mxu1  ;;  %v1647_v48 = vmul.f32 %v6198_v25, %v1615_v40  ;;  %v1644_v61 = vmul.f32 %v6199_v41, %v1612_v60 }
 0x443   : > { %v2351_v34 = vadd.f32 %v3517_v53, %v2030_v5  ;;  %v1711_v8 = vpop.xlane.xlu1 %1710  ;;  %v1702_v27 = vpop.xlane.xlu0 %1701 }
 0x444   : > { %v1769_v55 = vadd.f32 %v1711_v8, %v1641_v46  ;;  %v3519_v16 = vpop.f32.mrf.mxu1  ;;  %v1766_v24 = vadd.f32 %v1702_v27, %v1638_v38  ;;  %v1614_v46 = vld [vmem:[#allocation4 + $0xb8] sm:$0xff]  ;;  %v1843_v27 = vld [vmem:[#allocation5 + $0x28] sm:$0xff] }
 0x445   : > { %2383 = vst [vmem:[#allocation5 + $0x70] sm:$0xff] %v2351_v34  ;;  %v3520_v29 = vadd.f32 %v3519_v16, %v3518_v10  ;;  %v1617_v10 = vld [vmem:[#allocation4 + $0xd0] sm:$0xff]  ;;  %v2034_v34 = vmul.f32 %v5638_v9, %v1842_v57  ;;  %v2035_v19 = vmul.f32 %v5636_v1, %v1843_v27 }
 0x446   : > { %1802 = vst.msk [vmem:[#allocation4 + $0x90] sm:$0xff] %vm1783_vm1, %v1769_v55  ;;  %1799 = vst.msk [vmem:[#allocation4 + $0x78] sm:$0xff] %vm1783_vm1, %v1766_v24  ;;  %v3521_v31 = vpop.f32.mrf.mxu1  ;;  %v1649_v44 = vmul.f32 %v5548_v49, %v1617_v10  ;;  %v6200_v55 = vld [vmem:[#allocation31_spill] sm:$0xff] }
 0x447   : > { %v2352_v7 = vadd.f32 %v3520_v29, %v2031_v20  ;;  %v1717_v63 = vpop.xlane.xlu1 %1716  ;;  %v1708_v47 = vpop.xlane.xlu0 %1707  ;;  %v1646_v16 = vmul.f32 %v6200_v55, %v1614_v46 }
 0x448   : > { %v1771_v32 = vadd.f32 %v1717_v63, %v1643_v45  ;;  %v3522_v42 = vpop.f32.mrf.mxu1  ;;  %v1768_v30 = vadd.f32 %v1708_v47, %v1640_v18  ;;  %v1651_v63 = vmul.f32 %v5561_v59, %v1619_v17  ;;  %v6201_v47 = vld [vmem:[#allocation32_spill] sm:$0xff] }
 0x449   : > { %2384 = vst [vmem:[#allocation5 + $0xc0] sm:$0xff] %v2352_v7  ;;  %v3523_v50 = vadd.f32 %v3522_v42, %v3521_v31  ;;  %v1616_v31 = vld [vmem:[#allocation4 + $0xc8] sm:$0xff]  ;;  %v1844_v7 = vld [vmem:[#allocation5 + $0xa0] sm:$0xff] }
 0x44a   : > { %1804 = vst.msk [vmem:[#allocation4 + $0xa0] sm:$0xff] %vm1783_vm1, %v1771_v32  ;;  %1801 = vst.msk [vmem:[#allocation4 + $0x88] sm:$0xff] %vm1783_vm1, %v1768_v30  ;;  %v3524_v4 = vpop.f32.mrf.mxu1  ;;  %v1648_v23 = vmul.f32 %v6201_v47, %v1616_v31  ;;  %v1618_v30 = vld [vmem:[#allocation4 + $0xd8] sm:$0xff]  ;;  %v2036_v1 = vmul.f32 %v5642_v56, %v1844_v7 }
 0x44b   : > { %v2353_v15 = vadd.f32 %v3523_v50, %v2032_v51  ;;  %v1723_v28 = vpop.xlane.xlu1 %1722  ;;  %v1714_v21 = vpop.xlane.xlu0 %1713 }
 0x44c   : > { %v1773_v0 = vadd.f32 %v1723_v28, %v1645_v39  ;;  %v3525_v36 = vpop.f32.mrf.mxu1  ;;  %v1770_v12 = vadd.f32 %v1714_v21, %v1642_v22  ;;  %v1845_v39 = vld [vmem:[#allocation5 + $0xf8] sm:$0xff]  ;;  %v1650_v22 = vmul.f32 %v6202_v52, %v1618_v30  ;;  %v1620_v21 = vld [vmem:[#allocation4 + $0xe8] sm:$0xff] }
 0x44d   : > { %2385 = vst [vmem:[#allocation5 + $0xa8] sm:$0xff] %v2353_v15  ;;  %v3526_v43 = vadd.f32 %v3525_v36, %v3524_v4  ;;  %v2037_v56 = vmul.f32 %v5640_v2, %v1845_v39 }
 0x44e   : > { %1806 = vst.msk [vmem:[#allocation4 + $0xb0] sm:$0xff] %vm1783_vm1, %v1773_v0  ;;  %1803 = vst.msk [vmem:[#allocation4 + $0x98] sm:$0xff] %vm1783_vm1, %v1770_v12  ;;  %v3527_v14 = vpop.f32.mrf.mxu1  ;;  %v1653_v0 = vmul.f32 %v5613_v3, %v1621_v26 }
 0x44f   : > { %v2354_v5 = vadd.f32 %v3526_v43, %v2033_v62  ;;  %v1729_v53 = vpop.xlane.xlu1 %1728  ;;  %v1720_v35 = vpop.xlane.xlu0 %1719  ;;  %v6203_v43 = vld [vmem:[#allocation89_spill] sm:$0xff] }
 0x450   : > { %v1775_v33 = vadd.f32 %v1729_v53, %v1647_v48  ;;  %v3528_v38 = vpop.f32.mrf.mxu1  ;;  %v1772_v13 = vadd.f32 %v1720_v35, %v1644_v61  ;;  %v1652_v57 = vmul.f32 %v6203_v43, %v1620_v21  ;;  %v1622_v48 = vld [vmem:[#allocation4 + $0xf8] sm:$0xff] }
 0x451   : > { %2386 = vst [vmem:[#allocation5 + $0xd0] sm:$0xff] %v2354_v5  ;;  %v3529_v8 = vadd.f32 %v3528_v38, %v3527_v14  ;;  %v1654_v3 = vmul.f32 %v5610_v6, %v1622_v48  ;;  %v1846_v5 = vld [vmem:[#allocation5 + $0x20] sm:$0xff]  ;;  %v1847_v38 = vld [vmem:[#allocation5 + $0x98] sm:$0xff] }
 0x452   : > { %1808 = vst.msk [vmem:[#allocation4 + $0xc0] sm:$0xff] %vm1783_vm1, %v1775_v33  ;;  %1805 = vst.msk [vmem:[#allocation4 + $0xa8] sm:$0xff] %vm1783_vm1, %v1772_v13  ;;  %v3530_v11 = vpop.f32.mrf.mxu1 }
 0x453   : > { %v2355_v24 = vadd.f32 %v3529_v8, %v2034_v34  ;;  %v1735_v20 = vpop.xlane.xlu1 %1734  ;;  %v1726_v29 = vpop.xlane.xlu0 %1725 }
 0x454   : > { %v3531_v58 = vpop.f32.mrf.mxu1  ;;  %v1777_v45 = vadd.f32 %v1735_v20, %v1649_v44  ;;  %v1774_v9 = vadd.f32 %v1726_v29, %v1646_v16 }
 0x455   : > { %2387 = vst [vmem:[#allocation5 + $0x10] sm:$0xff] %v2355_v24  ;;  %v3532_v18 = vadd.f32 %v3531_v58, %v3530_v11 }
 0x456   : > { %1810 = vst.msk [vmem:[#allocation4 + $0xd0] sm:$0xff] %vm1783_vm1, %v1777_v45  ;;  %1807 = vst.msk [vmem:[#allocation4 + $0xb8] sm:$0xff] %vm1783_vm1, %v1774_v9  ;;  %v3533_v49 = vpop.f32.mrf.mxu1 }
 0x457   : > { %v2356_v37 = vadd.f32 %v3532_v18, %v2035_v19  ;;  %v1741_v32 = vpop.xlane.xlu1 %1740  ;;  %v1732_v42 = vpop.xlane.xlu0 %1731 }
 0x458   : > { %v3534_v51 = vpop.f32.mrf.mxu1  ;;  %v1779_v50 = vadd.f32 %v1741_v32, %v1651_v63  ;;  %v1776_v54 = vadd.f32 %v1732_v42, %v1648_v23 }
 0x459   : > { %2388 = vst [vmem:[#allocation5 + $0x28] sm:$0xff] %v2356_v37  ;;  %v3535_v4 = vadd.f32 %v3534_v51, %v3533_v49 }
 0x45a   : > { %1812 = vst.msk [vmem:[#allocation4 + $0xe0] sm:$0xff] %vm1783_vm1, %v1779_v50  ;;  %1809 = vst.msk [vmem:[#allocation4 + $0xc8] sm:$0xff] %vm1783_vm1, %v1776_v54  ;;  %v3536_v59 = vpop.f32.mrf.mxu1 }
 0x45b   : > { %v2357_v15 = vadd.f32 %v3535_v4, %v2036_v1  ;;  %v1738_v28 = vpop.xlane.xlu0 %1737 }
 0x45c   : > { %v3537_v40 = vpop.f32.mrf.mxu1  ;;  %v1778_v60 = vadd.f32 %v1738_v28, %v1650_v22 }
 0x45d   : > { %2389 = vst [vmem:[#allocation5 + $0xa0] sm:$0xff] %v2357_v15  ;;  %v3538_v36 = vadd.f32 %v3537_v40, %v3536_v59  ;;  %v1747_v12 = vpop.xlane.xlu1 %1746 }
 0x45e   : > { %1811 = vst.msk [vmem:[#allocation4 + $0xd8] sm:$0xff] %vm1783_vm1, %v1778_v60  ;;  %v1781_v62 = vadd.f32 %v1747_v12, %v1653_v0 }
 0x45f   : > { %v2358_v14 = vadd.f32 %v3538_v36, %v2037_v56  ;;  %v1744_v25 = vpop.xlane.xlu0 %1743 }
 0x460   : > { %1814 = vst.msk [vmem:[#allocation4 + $0xf0] sm:$0xff] %vm1783_vm1, %v1781_v62  ;;  %v1780_v41 = vadd.f32 %v1744_v25, %v1652_v57 }
 0x461   : > { %2390 = vst [vmem:[#allocation5 + $0xf8] sm:$0xff] %v2358_v14  ;;  %v2006_v13 = vpop.permute.xlu1 %2005 }
 0x462   : > { %1813 = vst.msk [vmem:[#allocation4 + $0xe8] sm:$0xff] %vm1783_vm1, %v1780_v41  ;;  %v2039_v11 = vmul.f32 %v2006_v13, %v1847_v38 }
 0x463   : > { %v1750_v2 = vpop.xlane.xlu0 %1749 }
 0x464   : > { %v1782_v61 = vadd.f32 %v1750_v2, %v1654_v3 }
 0x466   : > { %1815 = vst.msk [vmem:[#allocation4 + $0xf8] sm:$0xff] %vm1783_vm1, %v1782_v61 }
 0x46b   : > { %v2001_v53 = vpop.permute.xlu0 %2000 }
 0x46c   : > { %v2038_v46 = vmul.f32 %v2001_v53, %v1846_v5 }
 0x495   : > { %v3539_v35 = vpop.f32.mrf.mxu1 }
 0x497   : > { %v3540_v10 = vpop.f32.mrf.mxu1 }
 0x498   : > { %v3541_v33 = vadd.f32 %v3540_v10, %v3539_v35 }
 0x499   : > { %v3542_v34 = vpop.f32.mrf.mxu1 }
 0x49a   : > { %v2359_v8 = vadd.f32 %v3541_v33, %v2038_v46 }
 0x49b   : > { %v3543_v27 = vpop.f32.mrf.mxu1 }
 0x49c   : > { %2391 = vst [vmem:[#allocation5 + $0x20] sm:$0xff] %v2359_v8  ;;  %v3544_v44 = vadd.f32 %v3543_v27, %v3542_v34  ;;  %2428 = sbr.rel (%p3108_p10) target bundleno = 1390 (0x56e), region = 52 }
 0x49e   : > { %v2360_v55 = vadd.f32 %v3544_v44, %v2039_v11 }
 0x4a0   : > { %2392 = vst [vmem:[#allocation5 + $0x98] sm:$0xff] %v2360_v55 }
 0x4a1   : > { %v2463_v6 = vld [vmem:[#allocation4 + $0x10] sm:$0xff]  ;;  %v2461_v16 = vld [vmem:[#allocation4] sm:$0xff]  ;;  %v2464_v24 = vld [vmem:[#allocation4 + $0x18] sm:$0xff]  ;;  %v4223_v20 = vmov 0  }
 0x4a2   : > { %3924 = vset.pattern.permute.xlu1 %v4223_v20  ;;  %3923 = vset.pattern.permute.xlu0 %v4223_v20  ;;  %3925 = vrcp.f32 %v2463_v6  ;;  %v2462_v29 = vld [vmem:[#allocation4 + $0x8] sm:$0xff]  ;;  %v2465_v31 = vld [vmem:[#allocation4 + $0x20] sm:$0xff]  ;;  %v2468_v58 = vld [vmem:[#allocation4 + $0x38] sm:$0xff] }
 0x4a3   : > { %3927 = vrcp.f32 %v2461_v16  ;;  %v2466_v17 = vld [vmem:[#allocation4 + $0x28] sm:$0xff]  ;;  %v2467_v45 = vld [vmem:[#allocation4 + $0x30] sm:$0xff]  ;;  %v2469_v19 = vld [vmem:[#allocation4 + $0x40] sm:$0xff] }
 0x4a4   : > { %3929 = vrcp.f32 %v2464_v24  ;;  %v2470_v9 = vld [vmem:[#allocation4 + $0x48] sm:$0xff]  ;;  %v2472_v63 = vld [vmem:[#allocation4 + $0x58] sm:$0xff]  ;;  %v2471_v23 = vld [vmem:[#allocation4 + $0x50] sm:$0xff] }
 0x4a5   : > { %3931 = vrcp.f32 %v2462_v29  ;;  %v2474_v32 = vld [vmem:[#allocation4 + $0x68] sm:$0xff]  ;;  %v2473_v30 = vld [vmem:[#allocation4 + $0x60] sm:$0xff]  ;;  %v2476_v50 = vld [vmem:[#allocation4 + $0x78] sm:$0xff] }
 0x4a6   : > { %3933 = vrcp.f32 %v2466_v17  ;;  %v2475_v1 = vld [vmem:[#allocation4 + $0x70] sm:$0xff]  ;;  %v2478_v26 = vld [vmem:[#allocation4 + $0x88] sm:$0xff]  ;;  %v2477_v59 = vld [vmem:[#allocation4 + $0x80] sm:$0xff] }
 0x4a7   : > { %3935 = vrcp.f32 %v2465_v31  ;;  %v2480_v22 = vld [vmem:[#allocation4 + $0x98] sm:$0xff]  ;;  %v2479_v28 = vld [vmem:[#allocation4 + $0x90] sm:$0xff]  ;;  %v2482_v40 = vld [vmem:[#allocation4 + $0xa8] sm:$0xff] }
 0x4a8   : > { %3937 = vrcp.f32 %v2468_v58  ;;  %v2481_v0 = vld [vmem:[#allocation4 + $0xa0] sm:$0xff]  ;;  %v2484_v36 = vld [vmem:[#allocation4 + $0xb8] sm:$0xff]  ;;  %v2483_v62 = vld [vmem:[#allocation4 + $0xb0] sm:$0xff] }
 0x4a9   : > { %3939 = vrcp.f32 %v2467_v45  ;;  %v2486_v57 = vld [vmem:[#allocation4 + $0xc8] sm:$0xff]  ;;  %v2485_v25 = vld [vmem:[#allocation4 + $0xc0] sm:$0xff]  ;;  %v2488_v41 = vld [vmem:[#allocation4 + $0xd8] sm:$0xff] }
 0x4aa   : > { %3941 = vrcp.f32 %v2470_v9  ;;  %v2487_v2 = vld [vmem:[#allocation4 + $0xd0] sm:$0xff]  ;;  %v2490_v5 = vld [vmem:[#allocation4 + $0xe8] sm:$0xff]  ;;  %v2489_v35 = vld [vmem:[#allocation4 + $0xe0] sm:$0xff] }
 0x4ab   : > { %3943 = vrcp.f32 %v2469_v19  ;;  %v2492_v46 = vld [vmem:[#allocation4 + $0xf8] sm:$0xff]  ;;  %v2491_v38 = vld [vmem:[#allocation4 + $0xf0] sm:$0xff]  ;;  %v2430_v31 = vld [vmem:[#allocation5] sm:$0xff] }
 0x4ac   : > { %3945 = vrcp.f32 %v2472_v63  ;;  %v2431_v20 = vld [vmem:[#allocation5 + $0xd8] sm:$0xff]  ;;  %v2429_v17 = vld [vmem:[#allocation5 + $0xb0] sm:$0xff] }
 0x4ad   : > { %3947 = vrcp.f32 %v2471_v23  ;;  %v2432_v29 = vld [vmem:[#allocation5 + $0x18] sm:$0xff] }
 0x4ae   : > { %3949 = vrcp.f32 %v2474_v32 }
 0x4af   : > { %v3926_v18 = vpop.eup %3925  ;;  %3951 = vrcp.f32 %v2473_v30 }
 0x4b0   : > { %v3928_v7 = vpop.eup %3927  ;;  %2537 = vperm.xlu1 %3924, %v3926_v18   ;;  %3953 = vrcp.f32 %v2476_v50  ;;  %v2435_v50 = vld [vmem:[#allocation5 + $0x30] sm:$0xff] }
 0x4b1   : > { %v3930_v49 = vpop.eup %3929  ;;  %2527 = vperm.xlu0 %3923, %v3928_v7   ;;  %3955 = vrcp.f32 %v2475_v1 }
 0x4b2   : > { %v3932_v47 = vpop.eup %3931  ;;  %3957 = vrcp.f32 %v2478_v26 }
 0x4b3   : > { %v3934_v37 = vpop.eup %3933  ;;  %3959 = vrcp.f32 %v2477_v59  ;;  %v2438_v59 = vld [vmem:[#allocation5 + $0x88] sm:$0xff] }
 0x4b4   : > { %2542 = vperm.xlu1 %3924, %v3930_v49   ;;  %v3936_v42 = vpop.eup %3935  ;;  %3961 = vrcp.f32 %v2480_v22  ;;  %v2434_v49 = vld [vmem:[#allocation5 + $0x68] sm:$0xff] }
 0x4b5   : > { %2532 = vperm.xlu0 %3923, %v3932_v47   ;;  %v3938_v51 = vpop.eup %3937  ;;  %3963 = vrcp.f32 %v2479_v28  ;;  %v2433_v47 = vld [vmem:[#allocation5 + $0x50] sm:$0xff] }
 0x4b6   : > { %v3940_v54 = vpop.eup %3939  ;;  %3965 = vrcp.f32 %v2482_v40 }
 0x4b7   : > { %v3942_v4 = vpop.eup %3941  ;;  %3967 = vrcp.f32 %v2481_v0  ;;  %v2439_v0 = vld [vmem:[#allocation5 + $0xe8] sm:$0xff] }
 0x4b8   : > { %2552 = vperm.xlu1 %3924, %v3934_v37   ;;  %v3944_v39 = vpop.eup %3943  ;;  %3969 = vrcp.f32 %v2484_v36 }
 0x4b9   : > { %2547 = vperm.xlu0 %3923, %v3936_v42   ;;  %v3946_v52 = vpop.eup %3945  ;;  %3971 = vrcp.f32 %v2483_v62 }
 0x4ba   : > { %v3948_v15 = vpop.eup %3947  ;;  %3973 = vrcp.f32 %v2486_v57  ;;  %v2442_v57 = vld [vmem:[#allocation5 + $0xf0] sm:$0xff] }
 0x4bb   : > { %v3950_v21 = vpop.eup %3949  ;;  %3975 = vrcp.f32 %v2485_v25 }
 0x4bc   : > { %2562 = vperm.xlu1 %3924, %v3938_v51   ;;  %v3952_v60 = vpop.eup %3951  ;;  %3977 = vrcp.f32 %v2488_v41  ;;  %v2436_v51 = vld [vmem:[#allocation5 + $0x48] sm:$0xff] }
 0x4bd   : > { %2557 = vperm.xlu0 %3923, %v3940_v54   ;;  %v3954_v56 = vpop.eup %3953  ;;  %3979 = vrcp.f32 %v2487_v2 }
 0x4be   : > { %v3956_v12 = vpop.eup %3955  ;;  %3981 = vrcp.f32 %v2490_v5  ;;  %v2443_v5 = vld [vmem:[#allocation5 + $0x8] sm:$0xff] }
 0x4bf   : > { %v3958_v43 = vpop.eup %3957  ;;  %3983 = vrcp.f32 %v2489_v35 }
 0x4c0   : > { %2572 = vperm.xlu1 %3924, %v3942_v4   ;;  %v3960_v14 = vpop.eup %3959  ;;  %3985 = vrcp.f32 %v2492_v46 }
 0x4c1   : > { %2567 = vperm.xlu0 %3923, %v3944_v39   ;;  %v3962_v48 = vpop.eup %3961  ;;  %3987 = vrcp.f32 %v2491_v38  ;;  %v2446_v38 = vld [vmem:[#allocation5 + $0x58] sm:$0xff] }
 0x4c2   : > { %v3964_v3 = vpop.eup %3963 }
 0x4c3   : > { %v3966_v61 = vpop.eup %3965 }
 0x4c4   : > { %2582 = vperm.xlu1 %3924, %v3946_v52   ;;  %v3968_v53 = vpop.eup %3967  ;;  %v2437_v52 = vld [vmem:[#allocation5 + $0x80] sm:$0xff] }
 0x4c5   : > { %2577 = vperm.xlu0 %3923, %v3948_v15   ;;  %v3970_v10 = vpop.eup %3969 }
 0x4c6   : > { %v3972_v33 = vpop.eup %3971 }
 0x4c7   : > { %v3974_v13 = vpop.eup %3973 }
 0x4c8   : > { %2592 = vperm.xlu1 %3924, %v3950_v21   ;;  %v3976_v34 = vpop.eup %3975 }
 0x4c9   : > { %2587 = vperm.xlu0 %3923, %v3952_v60   ;;  %v3978_v8 = vpop.eup %3977  ;;  %v2440_v60 = vld [vmem:[#allocation5 + $0xb8] sm:$0xff] }
 0x4ca   : > { %v3980_v27 = vpop.eup %3979 }
 0x4cb   : > { %v3982_v11 = vpop.eup %3981 }
 0x4cc   : > { %2602 = vperm.xlu1 %3924, %v3954_v56   ;;  %v3984_v44 = vpop.eup %3983 }
 0x4cd   : > { %2597 = vperm.xlu0 %3923, %v3956_v12   ;;  %v3986_v55 = vpop.eup %3985 }
 0x4ce   : > { %v3988_v6 = vpop.eup %3987 }
 0x4d0   : > { %2612 = vperm.xlu1 %3924, %v3958_v43  }
 0x4d1   : > { %2607 = vperm.xlu0 %3923, %v3960_v14   ;;  %v2441_v14 = vld [vmem:[#allocation5 + $0x60] sm:$0xff] }
 0x4d4   : > { %2622 = vperm.xlu1 %3924, %v3962_v48  }
 0x4d5   : > { %2617 = vperm.xlu0 %3923, %v3964_v3  }
 0x4d8   : > { %2632 = vperm.xlu1 %3924, %v3966_v61   ;;  %v2444_v61 = vld [vmem:[#allocation5 + $0x78] sm:$0xff] }
 0x4d9   : > { %2627 = vperm.xlu0 %3923, %v3968_v53  }
 0x4dc   : > { %2642 = vperm.xlu1 %3924, %v3970_v10  }
 0x4dd   : > { %2637 = vperm.xlu0 %3923, %v3972_v33  }
 0x4e0   : > { %2652 = vperm.xlu1 %3924, %v3974_v13   ;;  %v2445_v13 = vld [vmem:[#allocation5 + $0x38] sm:$0xff] }
 0x4e1   : > { %2647 = vperm.xlu0 %3923, %v3976_v34  }
 0x4e4   : > { %2662 = vperm.xlu1 %3924, %v3978_v8  }
 0x4e5   : > { %2657 = vperm.xlu0 %3923, %v3980_v27  }
 0x4e8   : > { %2672 = vperm.xlu1 %3924, %v3982_v11  }
 0x4e9   : > { %2667 = vperm.xlu0 %3923, %v3984_v44  }
 0x4ec   : > { %2682 = vperm.xlu1 %3924, %v3986_v55   ;;  %v2448_v55 = vld [vmem:[#allocation5 + $0xc8] sm:$0xff] }
 0x4ed   : > { %2677 = vperm.xlu0 %3923, %v3988_v6   ;;  %v2447_v6 = vld [vmem:[#allocation5 + $0x40] sm:$0xff] }
 0x52b   : > { %v2538_v16 = vpop.permute.xlu1 %2537 }
 0x52c   : > { %v2528_v24 = vpop.permute.xlu0 %2527  ;;  %v2687_v45 = vmul.f32 %v2538_v16, %v2431_v20 }
 0x52d   : > { %v2685_v18 = vmul.f32 %v2528_v24, %v2429_v17 }
 0x52f   : > { %v2543_v58 = vpop.permute.xlu1 %2542 }
 0x530   : > { %v2688_v9 = vmul.f32 %v2543_v58, %v2432_v29  ;;  %v2533_v19 = vpop.permute.xlu0 %2532  ;;  %v2449_v58 = vld [vmem:[#allocation5 + $0xe0] sm:$0xff] }
 0x531   : > { %v2686_v7 = vmul.f32 %v2533_v19, %v2430_v31  ;;  %v2450_v31 = vld [vmem:[#allocation5 + $0x90] sm:$0xff] }
 0x532   : > { %v3267_v63 = vpack.c.bf16 %v2688_v9, %v2687_v45 }
 0x533   : > { %v3262_v23 = vpack.c.bf16 %v2686_v7, %v2685_v18  ;;  %v2553_v37 = vpop.permute.xlu1 %2552 }
 0x534   : > { %3370 = vst [vmem:[%s4518_s4 + $0x8] sm:$0xff] %v3267_v63   ;;  %v2690_v32 = vmul.f32 %v2553_v37, %v2434_v49  ;;  %v2548_v42 = vpop.permute.xlu0 %2547  ;;  %v2452_v49 = vld [vmem:[#allocation5 + $0xc0] sm:$0xff]  ;;  %v2451_v63 = vld [vmem:[#allocation5 + $0x70] sm:$0xff] }
 0x535   : > { %3263 = vst [vmem:[%s4518_s4] sm:$0xff] %v3262_v23   ;;  %v2689_v30 = vmul.f32 %v2548_v42, %v2433_v47 }
 0x537   : > { %v3272_v54 = vpack.c.bf16 %v2690_v32, %v2689_v30  ;;  %v2563_v1 = vpop.permute.xlu1 %2562  ;;  %v2454_v30 = vld [vmem:[#allocation5 + $0xd0] sm:$0xff] }
 0x538   : > { %v2692_v4 = vmul.f32 %v2563_v1, %v2436_v51  ;;  %v2558_v26 = vpop.permute.xlu0 %2557  ;;  %v2453_v51 = vld [vmem:[#allocation5 + $0xa8] sm:$0xff] }
 0x539   : > { %3371 = vst [vmem:[%s4518_s4 + $0x10] sm:$0xff] %v3272_v54   ;;  %v2691_v39 = vmul.f32 %v2558_v26, %v2435_v50 }
 0x53b   : > { %v3277_v22 = vpack.c.bf16 %v2692_v4, %v2691_v39  ;;  %v2573_v15 = vpop.permute.xlu1 %2572  ;;  %v2456_v39 = vld [vmem:[#allocation5 + $0x28] sm:$0xff] }
 0x53c   : > { %v2694_v28 = vmul.f32 %v2573_v15, %v2438_v59  ;;  %v2568_v21 = vpop.permute.xlu0 %2567  ;;  %v2455_v59 = vld [vmem:[#allocation5 + $0x10] sm:$0xff] }
 0x53d   : > { %3372 = vst [vmem:[%s4518_s4 + $0x18] sm:$0xff] %v3277_v22   ;;  %v2693_v40 = vmul.f32 %v2568_v21, %v2437_v52 }
 0x53f   : > { %v3282_v56 = vpack.c.bf16 %v2694_v28, %v2693_v40  ;;  %v2583_v36 = vpop.permute.xlu1 %2582  ;;  %v2458_v40 = vld [vmem:[#allocation5 + $0xf8] sm:$0xff] }
 0x540   : > { %v2696_v12 = vmul.f32 %v2583_v36, %v2440_v60  ;;  %v2578_v62 = vpop.permute.xlu0 %2577  ;;  %v2457_v60 = vld [vmem:[#allocation5 + $0xa0] sm:$0xff] }
 0x541   : > { %3373 = vst [vmem:[%s4518_s4 + $0x20] sm:$0xff] %v3282_v56   ;;  %v2695_v43 = vmul.f32 %v2578_v62, %v2439_v0 }
 0x543   : > { %v3287_v25 = vpack.c.bf16 %v2696_v12, %v2695_v43  ;;  %v2593_v48 = vpop.permute.xlu1 %2592  ;;  %v2460_v43 = vld [vmem:[#allocation5 + $0x98] sm:$0xff] }
 0x544   : > { %v2698_v41 = vmul.f32 %v2593_v48, %v2442_v57  ;;  %v2588_v3 = vpop.permute.xlu0 %2587  ;;  %v2459_v57 = vld [vmem:[#allocation5 + $0x20] sm:$0xff] }
 0x545   : > { %3374 = vst [vmem:[%s4518_s4 + $0x28] sm:$0xff] %v3287_v25   ;;  %v2697_v2 = vmul.f32 %v2588_v3, %v2441_v14 }
 0x547   : > { %v3292_v53 = vpack.c.bf16 %v2698_v41, %v2697_v2  ;;  %v2603_v35 = vpop.permute.xlu1 %2602 }
 0x548   : > { %v2700_v10 = vmul.f32 %v2603_v35, %v2444_v61  ;;  %v2598_v46 = vpop.permute.xlu0 %2597 }
 0x549   : > { %3375 = vst [vmem:[%s4518_s4 + $0x30] sm:$0xff] %v3292_v53   ;;  %v2699_v33 = vmul.f32 %v2598_v46, %v2443_v5 }
 0x54b   : > { %v3297_v34 = vpack.c.bf16 %v2700_v10, %v2699_v33  ;;  %v2613_v8 = vpop.permute.xlu1 %2612 }
 0x54c   : > { %v2702_v27 = vmul.f32 %v2613_v8, %v2446_v38  ;;  %v2608_v11 = vpop.permute.xlu0 %2607 }
 0x54d   : > { %3376 = vst [vmem:[%s4518_s4 + $0x38] sm:$0xff] %v3297_v34   ;;  %v2701_v44 = vmul.f32 %v2608_v11, %v2445_v13 }
 0x54f   : > { %v3302_v16 = vpack.c.bf16 %v2702_v27, %v2701_v44  ;;  %v2623_v24 = vpop.permute.xlu1 %2622 }
 0x550   : > { %v2704_v20 = vmul.f32 %v2623_v24, %v2448_v55  ;;  %v2618_v29 = vpop.permute.xlu0 %2617 }
 0x551   : > { %3377 = vst [vmem:[%s4518_s4 + $0x40] sm:$0xff] %v3302_v16   ;;  %v2703_v17 = vmul.f32 %v2618_v29, %v2447_v6 }
 0x553   : > { %v3307_v45 = vpack.c.bf16 %v2704_v20, %v2703_v17  ;;  %v2633_v9 = vpop.permute.xlu1 %2632 }
 0x554   : > { %v2706_v19 = vmul.f32 %v2633_v9, %v2450_v31  ;;  %v2628_v18 = vpop.permute.xlu0 %2627 }
 0x555   : > { %3378 = vst [vmem:[%s4518_s4 + $0x48] sm:$0xff] %v3307_v45   ;;  %v2705_v7 = vmul.f32 %v2628_v18, %v2449_v58 }
 0x557   : > { %v3312_v47 = vpack.c.bf16 %v2706_v19, %v2705_v7  ;;  %v2643_v23 = vpop.permute.xlu1 %2642 }
 0x558   : > { %v2708_v37 = vmul.f32 %v2643_v23, %v2452_v49  ;;  %v2638_v32 = vpop.permute.xlu0 %2637 }
 0x559   : > { %3379 = vst [vmem:[%s4518_s4 + $0x50] sm:$0xff] %v3312_v47   ;;  %v2707_v42 = vmul.f32 %v2638_v32, %v2451_v63 }
 0x55b   : > { %v3317_v50 = vpack.c.bf16 %v2708_v37, %v2707_v42  ;;  %v2653_v54 = vpop.permute.xlu1 %2652 }
 0x55c   : > { %v2710_v1 = vmul.f32 %v2653_v54, %v2454_v30  ;;  %v2648_v4 = vpop.permute.xlu0 %2647 }
 0x55d   : > { %3380 = vst [vmem:[%s4518_s4 + $0x58] sm:$0xff] %v3317_v50   ;;  %v2709_v26 = vmul.f32 %v2648_v4, %v2453_v51 }
 0x55f   : > { %v3322_v52 = vpack.c.bf16 %v2710_v1, %v2709_v26  ;;  %v2663_v22 = vpop.permute.xlu1 %2662 }
 0x560   : > { %v2712_v15 = vmul.f32 %v2663_v22, %v2456_v39  ;;  %v2658_v28 = vpop.permute.xlu0 %2657 }
 0x561   : > { %3381 = vst [vmem:[%s4518_s4 + $0x60] sm:$0xff] %v3322_v52   ;;  %v2711_v21 = vmul.f32 %v2658_v28, %v2455_v59 }
 0x563   : > { %v3327_v0 = vpack.c.bf16 %v2712_v15, %v2711_v21  ;;  %v2673_v56 = vpop.permute.xlu1 %2672 }
 0x564   : > { %v2714_v36 = vmul.f32 %v2673_v56, %v2458_v40  ;;  %v2668_v12 = vpop.permute.xlu0 %2667 }
 0x565   : > { %3382 = vst [vmem:[%s4518_s4 + $0x68] sm:$0xff] %v3327_v0   ;;  %v2713_v62 = vmul.f32 %v2668_v12, %v2457_v60 }
 0x567   : > { %v3332_v14 = vpack.c.bf16 %v2714_v36, %v2713_v62  ;;  %v2683_v25 = vpop.permute.xlu1 %2682 }
 0x568   : > { %v2716_v48 = vmul.f32 %v2683_v25, %v2460_v43  ;;  %v2678_v41 = vpop.permute.xlu0 %2677 }
 0x569   : > { %3383 = vst [vmem:[%s4518_s4 + $0x70] sm:$0xff] %v3332_v14   ;;  %v2715_v3 = vmul.f32 %v2678_v41, %v2459_v57 }
 0x56b   : > { %v3337_v2 = vpack.c.bf16 %v2716_v48, %v2715_v3 }
 0x56d   : > { %3384 = vst [vmem:[%s4518_s4 + $0x78] sm:$0xff] %v3337_v2  }
 0x56e PF: > { %s6205_s19 = sld [smem:[#allocation20_spill]]  ;;  %s2893_s12 = sshll.u32 %s4518_s4, 4  ;;  %s5742_s12 = int_to_ptr.vmem [resolvable:$true] %s2893_s12 }
 0x56f   : > { %s6206_s20 = sld [smem:[#allocation21_spill]]  ;;  %s2878_s15 = scalar_lea.sflag [#allocation8], %s4498_s7 }
 0x570   : > { %s6207_s29 = sld [smem:[#allocation28_spill]]  ;;  %s4073_s1 = scalar_lea.vmem %s5742_s12, 2048 }
 0x571   : > { %s6208_s27 = sld [smem:[#allocation104_spill]]  ;;  %p4074_p9 = scmp.ne.s32.totalorder %s5742_s12, %s4073_s1 }
 0x572   : > { %s4224_s25 = smov [#allocation12]  }
 0x573   : > { %s4077_s16 = sshll.u32 %s4224_s25, 4  ;;  %s4078_s16 = int_to_ptr.vmem [resolvable:$false] %s4077_s16 }
 0x574   : > { %s3142_s5 = sshll.u32 %s6205_s19, 5  ;;  %s4079_s22 = scalar_lea.vmem %s4078_s16, 4096 }
 0x575   : > { %s3143_s9 = sshll.u32 %s6206_s20, 6  ;;  %p4080_p6 = scmp.lt.s32.totalorder %s5742_s12, %s4078_s16 }
 0x576   : > { %s2890_s10 = sadd.s32 %s3143_s9, %s3142_s5  ;;  %p6209_p1 = scmp.ne.s32.totalorder %s6207_s29, 0 }
 0x577   : > { %s3144_s3 = sshll.u32 %s2890_s10, 6  ;;  %p4081_p0 = scmp.lt.s32.totalorder %s4079_s22, %s4073_s1 }
 0x578   : > { %s5747_s28 = scalar_lea.hbm %s6208_s27, %s3144_s3  ;;  %p4075_p13 = pnand %p4074_p9, %p6209_p1 }
 0x579   : > { %p4082_p11 = por %p4081_p0, %p4080_p6 }
 0x57a   : > { %p4076_p7 = pneg %p4075_p13 }
 0x57c   : > { %p4083_p4 = pnand %p4082_p11, %p4076_p7 }
 0x57e   : > { %4086 = shalt.err (!%p4083_p4)
}
 0x57f   : > { %s4087_s18 = scalar_lea.hbm %s5747_s28, 2048  ;;  %s4091_s11 = scalar_lea.hbm %s6208_s27, 16384 }
 0x580   : > { %p4088_p3 = scmp.ne.s32.totalorder %s5747_s28, %s4087_s18  ;;  %p4092_p8 = scmp.lt.s32.totalorder %s5747_s28, %s6208_s27 }
 0x581   : > { %p4093_p12 = scmp.lt.s32.totalorder %s4091_s11, %s4087_s18 }
 0x582   : > { %p4089_p5 = pnand %p4088_p3, %p6209_p1 }
 0x583   : > { %p4094_p10 = por %p4093_p12, %p4092_p8 }
 0x584   : > { %p4090_p2 = pneg %p4089_p5 }
 0x586   : > { %p4095_p9 = pnand %p4094_p10, %p4090_p2 }
 0x588   : > { %4098 = shalt.err (!%p4095_p9)
}
 0x589   : > { %s4225_s5 = smov 64   ;;  %s4226_s9 = smov 4  }
 0x58a   : > { %3551 = dma.vmem_to_hbm [thread:$0]  (%p6209_p1), %s5742_s12, 2048, %s5747_s28, %s2878_s15, %s4225_s5, %s4225_s5, %s4226_s9  }
 0x58b PF: > { %s6210_s10 = sld [smem:[#allocation17_spill]]  ;;  %p3568_p13 = scmp.ge.s32.totalorder %s4213_s24, 2 }
 0x58c   : > { %s6211_s3 = sld [smem:[#allocation30_spill]] }
 0x591   : > { %s2908_s8 = sand.u32 1, %s6210_s10  }
 0x592   : > { %p6212_p7 = scmp.ne.s32.totalorder %s6211_s3, 0  ;;  %s2909_s2 = scalar_lea.sflag [#allocation8], %s2908_s8 }
 0x594   : > { %p3564_p6 = pnand %p3568_p13, %p6212_p7 }
 0x596   : > { %p3565_p0 = pneg %p3564_p6 }
 0x598   : > { %4160 = dma.done.wait (%p3565_p0), %s2909_s2, 2048  }
 0x599   : > { %4162 = vsyncadd (%p3565_p0), %s2909_s2, 4294965248  ;;  %s22_s24 = sadd.s32 1, %s4213_s24   ;;  %s6214_s12 = sld [smem:[#allocation16_spill]] }
 0x59a   : > { %p5777_p11 = scmp.ge.s32.totalorder %s22_s24, 18   ;;  %s6215_s15 = sld [smem:[#allocation18_spill]] }
 0x59b   : > { %s6216_s7 = smov %s4445_s13  ;;  %s6217_s19 = sld [smem:[#allocation22_spill]] }
 0x59c   : > { %s6218_s22 = sld [smem:[#allocation27_spill]]  ;;  %s6220_s13 = smov %s4173_s14 }
 0x59d   : > { %s6219_s29 = sld [smem:[#allocation29_spill]]  ;;  %s6221_s14 = smov %s4450_s30 }
 0x59e   : > { %s6222_s16 = smov %s4185_s17  ;;  %s6223_s17 = smov %s6216_s7 }
 0x59f   : > { %s6224_s18 = smov %s4201_s21  ;;  %s6225_s20 = smov %s4209_s23 }
 0x5a0   : > { %s6226_s21 = smov %s6229_s26  ;;  %21 = sbr.rel (!%p5777_p11) target bundleno = 16 (0x10), region = 109 }
 0x5a3   : > { %s6227_s23 = smov %s6219_s29 }
 0x5a5   :  { %2914 = vsyncpa [#allocation7], 1 }
 0x5a6   :  { %2916 = vsyncpa [#allocation7 + $0x1], 1 }
 0x5a7   :  { %2917 = vsyncpa [#allocation10], 1 }
 0x5a8   :  { %2919 = vsyncpa [#allocation10 + $0x1], 1 }
 0x5a9   :  { %2920 = vsyncpa [#allocation8], 1 }
 0x5aa   :  { %2922 = vsyncpa [#allocation8 + $0x1], 1 }

</bundles_post_ra>
